<compile_context>
chip_gen: v7x
topology: tpu7x:2x2x1
jax: 0.10.0
libtpu: 0.0.40
codegen_flags: <defaults>
</compile_context>

<pallas_src>
import functools

import jax
import jax.numpy as jnp
from jax import lax
from jax.experimental import pallas as pl
from jax.experimental.pallas import tpu as pltpu


# ---------------------------------------------------------------------------
# In-kernel helpers
# ---------------------------------------------------------------------------
def _zero_halo(p_ref):
    """Zero only the 1-pixel halo ring of a padded NHWC scratch.

    p_ref: [BB, Ho+2, Wo+2, C].  The interior is fully overwritten every grid
    step, so re-zeroing just the ring each step is cheap and megacore-safe.
    """
    bb, hp, wp, c = p_ref.shape
    row = jnp.zeros((bb, 1, wp, c), p_ref.dtype)
    col = jnp.zeros((bb, hp, 1, c), p_ref.dtype)
    p_ref[:, 0:1, :, :] = row
    p_ref[:, hp - 1:hp, :, :] = row
    p_ref[:, :, 0:1, :] = col
    p_ref[:, :, wp - 1:wp, :] = col


def _conv3x3_relu(p_ref, q_ref, w_ref, b_ref, ho, wo, stride):
    """3x3 conv + bias + ReLU as ONE matmul over a K = 9*Cin im2col patch.

    p_ref : [BB, Hi+2, Wi+2, Cin]  zero-padded input (NHWC scratch)
    q_ref : [BB*ho*wo, 9*Cin]      im2col patch scratch (rows ordered (b, h, w))
    w_ref : [Cout, 9*Cin]          weights, columns ordered (kh, kw, ci)
    b_ref : [Cout, 1]
    Returns the lane-dense [Cout, BB*ho*wo] result (M on lanes).
    """
    cout, k9 = w_ref.shape
    cin = k9 // 9
    bb = p_ref.shape[0]
    m = bb * ho * wo
    # Build the patch once per layer (9 shifted-window copies), then one matmul.
    for kh in range(3):
        for kw in range(3):
            if stride == 1:
                tap = p_ref[:, pl.ds(kh, ho), pl.ds(kw, wo), :]
            else:
                # stride-2 DownSample: strides land on the H (higher) and
                # W (sublane) dims only; the lane dim (channels) is contiguous.
                tap = p_ref[:, pl.ds(kh, ho, stride), pl.ds(kw, wo, stride), :]
            t = kh * 3 + kw
            q_ref[:, t * cin:(t + 1) * cin] = tap.reshape(m, cin)
    y = lax.dot_general(w_ref[...], q_ref[...],
                        dimension_numbers=(((1,), (1,)), ((), ())),
                        preferred_element_type=jnp.float32)
    return jnp.maximum(y + b_ref[...], 0.0)


def _stash(y_cm, p_ref, bb, ho, wo, cout):
    """Store a [Cout, M] conv result into the next layer's padded NHWC scratch."""
    _zero_halo(p_ref)
    p_ref[:, 1:ho + 1, 1:wo + 1, :] = y_cm.T.reshape(bb, ho, wo, cout)


def _supervised_kernel(x_ref,
                       w1_ref, b1_ref, w2_ref, b2_ref,
                       w3_ref, b3_ref, w4_ref, b4_ref,
                       wf1_ref, bf1_ref, wf2_ref, bf2_ref,
                       out_ref,
                       p1, p2, p3, p4, q1, q23, q4, flat_ref,
                       *, dims):
    bb, h, w, c = dims
    hh2, ww2, hh4, ww4 = h // 2, w // 2, h // 4, w // 4
    c2, ch = 2 * c, c // 2
    hw4 = hh4 * ww4

    # ---- self.down: BasicBlock / DownSample / BasicBlock / DownSample ------
    _zero_halo(p1)
    p1[:, 1:h + 1, 1:w + 1, :] = x_ref[...]
    y1 = _conv3x3_relu(p1, q1, w1_ref, b1_ref, h, w, 1)          # [2c, bb*h*w]
    _stash(y1, p2, bb, h, w, c2)
    y2 = _conv3x3_relu(p2, q23, w2_ref, b2_ref, hh2, ww2, 2)     # [2c, bb*h2*w2]
    _stash(y2, p3, bb, hh2, ww2, c2)
    y3 = _conv3x3_relu(p3, q23, w3_ref, b3_ref, hh2, ww2, 1)     # [c,  bb*h2*w2]
    _stash(y3, p4, bb, hh2, ww2, c)
    y4 = _conv3x3_relu(p4, q4, w4_ref, b4_ref, hh4, ww4, 2)      # [c//2, bb*h4*w4]

    # ---- nn.Flatten(1) of the NCHW tensor == per-sample (c, h, w) order ----
    # Fused with the head via a tiny [BB, lin_inp] staging buffer (ch*bb <= 16
    # small slice copies; kept slice-based for lowering robustness).
    for cc in range(ch):
        for b in range(bb):
            flat_ref[b:b + 1, cc * hw4:(cc + 1) * hw4] = \
                y4[cc:cc + 1, b * hw4:(b + 1) * hw4]

    # ---- self.linear: Linear + ReLU + Linear + Sigmoid (VMEM resident) ----
    xf = flat_ref[...]
    hid = jnp.maximum(
        jnp.dot(xf, wf1_ref[...], preferred_element_type=jnp.float32)
        + bf1_ref[...], 0.0)
    logits = (jnp.dot(hid, wf2_ref[...], preferred_element_type=jnp.float32)
              + bf2_ref[...])
    out_ref[...] = jax.nn.sigmoid(logits)


# ---------------------------------------------------------------------------
# Parameters: PyTorch-layout init + one-time kernel-layout preprocessing
# ---------------------------------------------------------------------------
def init_params(key, input_dim, action_space):
    c, h, w = input_dim
    lin_inp = (c // 2) * (h // 4) * (w // 4)

    def conv_p(k, cin, cout):
        kw_, kb_ = jax.random.split(k)
        scale = 1.0 / jnp.sqrt(9.0 * cin)
        return (jax.random.normal(kw_, (cout, cin, 3, 3), jnp.float32) * scale,
                jax.random.normal(kb_, (cout,), jnp.float32) * 0.01)

    def lin_p(k, fin, fout):
        kw_, kb_ = jax.random.split(k)
        scale = 1.0 / jnp.sqrt(fin)
        return (jax.random.normal(kw_, (fout, fin), jnp.float32) * scale,
                jax.random.normal(kb_, (fout,), jnp.float32) * 0.01)

    ks = jax.random.split(key, 6)
    p = {}
    p["conv1_w"], p["conv1_b"] = conv_p(ks[0], c, c * 2)        # BasicBlock(c, 2c)
    p["conv2_w"], p["conv2_b"] = conv_p(ks[1], c * 2, c * 2)    # DownSample(2c, 2c)
    p["conv3_w"], p["conv3_b"] = conv_p(ks[2], c * 2, c)        # BasicBlock(2c, c)
    p["conv4_w"], p["conv4_b"] = conv_p(ks[3], c, c // 2)       # DownSample(c, c//2)
    p["fc1_w"], p["fc1_b"] = lin_p(ks[4], lin_inp, lin_inp // 2)
    p["fc2_w"], p["fc2_b"] = lin_p(ks[5], lin_inp // 2, action_space)
    return p


def prepare_params(params):
    """One-time layout prep: conv weights -> [Cout, 9*Cin] (columns (kh,kw,ci)),
    fc weights -> [in, out], biases -> broadcast-ready 2-D."""
    def conv_w(wt):          # [Cout, Cin, 3, 3] -> [Cout, 9*Cin]
        co, ci = wt.shape[0], wt.shape[1]
        return jnp.transpose(wt, (0, 2, 3, 1)).reshape(co, 9 * ci)

    kp = {
        "c1_w": conv_w(params["conv1_w"]), "c1_b": params["conv1_b"].reshape(-1, 1),
        "c2_w": conv_w(params["conv2_w"]), "c2_b": params["conv2_b"].reshape(-1, 1),
        "c3_w": conv_w(params["conv3_w"]), "c3_b": params["conv3_b"].reshape(-1, 1),
        "c4_w": conv_w(params["conv4_w"]), "c4_b": params["conv4_b"].reshape(-1, 1),
        "fc1_w": params["fc1_w"].T, "fc1_b": params["fc1_b"].reshape(1, -1),
        "fc2_w": params["fc2_w"].T, "fc2_b": params["fc2_b"].reshape(1, -1),
    }
    return jax.tree_util.tree_map(lambda a: a.astype(jnp.float32), kp)


# ---------------------------------------------------------------------------
# Forward pass (single fused pallas_call)
# ---------------------------------------------------------------------------
def _pick_batch_block(batch, cap=8):
    """Largest divisor of `batch` (<= cap) that still yields >= 2 grid steps,
    so both v7x TensorCores get work; falls back to 1."""
    if batch <= 1:
        return 1
    best = 1
    for bb in range(1, min(batch, cap) + 1):
        if batch % bb == 0 and batch // bb >= 2:
            best = bb
    return best


@jax.jit
def supervised_forward(x_nchw, kp):
    B, C, H, W = x_nchw.shape
    assert H % 4 == 0 and W % 4 == 0 and C % 2 == 0, (C, H, W)
    A = kp["fc2_w"].shape[1]
    lin_inp = kp["fc1_w"].shape[0]

    BB = _pick_batch_block(B)
    nb = B // BB

    # NCHW (PyTorch) -> NHWC once at the boundary.  Kept in the wrapper on
    # purpose: the input is tiny and this keeps the kernel's input stash a
    # plain copy with an (8,128)-legal BlockSpec (no in-kernel relayout).
    x_nhwc = jnp.transpose(x_nchw, (0, 2, 3, 1)).astype(jnp.float32)

    weight_names = ["c1_w", "c1_b", "c2_w", "c2_b", "c3_w", "c3_b",
                    "c4_w", "c4_b", "fc1_w", "fc1_b", "fc2_w", "fc2_b"]
    w_args = [kp[n] for n in weight_names]

    in_specs = [pl.BlockSpec((BB, H, W, C), lambda i: (i, 0, 0, 0))]
    in_specs += [pl.BlockSpec(a.shape, lambda i: (0, 0)) for a in w_args]

    kernel = functools.partial(_supervised_kernel, dims=(BB, H, W, C))

    out3 = pl.pallas_call(
        kernel,
        out_shape=jax.ShapeDtypeStruct((nb, BB, A), jnp.float32),
        grid=(nb,),
        in_specs=in_specs,
        out_specs=pl.BlockSpec((None, BB, A), lambda i: (i, 0, 0)),
        scratch_shapes=[
            pltpu.VMEM((BB, H + 2, W + 2, C), jnp.float32),                   # p1
            pltpu.VMEM((BB, H + 2, W + 2, 2 * C), jnp.float32),               # p2
            pltpu.VMEM((BB, H // 2 + 2, W // 2 + 2, 2 * C), jnp.float32),     # p3
            pltpu.VMEM((BB, H // 2 + 2, W // 2 + 2, C), jnp.float32),         # p4
            pltpu.VMEM((BB * H * W, 9 * C), jnp.float32),                     # q1
            pltpu.VMEM((BB * (H // 2) * (W // 2), 9 * 2 * C), jnp.float32),   # q2/q3
            pltpu.VMEM((BB * (H // 4) * (W // 4), 9 * C), jnp.float32),       # q4
            pltpu.VMEM((BB, lin_inp), jnp.float32),                           # flat
        ],
        compiler_params=pltpu.CompilerParams(
            dimension_semantics=("parallel",),
            vmem_limit_bytes=32 * 1024 * 1024),
    )(x_nhwc, *w_args)
    return out3.reshape(B, A)


# ---------------------------------------------------------------------------
# Pure-JAX reference (independent of the kernel), for correctness checking
# ---------------------------------------------------------------------------
@jax.jit
def reference_forward(x_nchw, params):
    def conv(x, w, b, s):
        y = lax.conv_general_dilated(
            x, w, (s, s), [(1, 1), (1, 1)],
            dimension_numbers=("NCHW", "OIHW", "NCHW"))
        return jax.nn.relu(y + b[None, :, None, None])

    y = conv(x_nchw, params["conv1_w"], params["conv1_b"], 1)
    y = conv(y, params["conv2_w"], params["conv2_b"], 2)
    y = conv(y, params["conv3_w"], params["conv3_b"], 1)
    y = conv(y, params["conv4_w"], params["conv4_b"], 2)
    y = y.reshape(y.shape[0], -1)                       # nn.Flatten(1) on NCHW
    y = jax.nn.relu(y @ params["fc1_w"].T + params["fc1_b"])
    y = jax.nn.sigmoid(y @ params["fc2_w"].T + params["fc2_b"])
    return y


if __name__ == "__main__":
    input_dim = [4, 16, 16]      # (C, H, W) like the PyTorch module's inputDim
    action_space = 6
    batch = 2

    key = jax.random.PRNGKey(0)
    kx, kparam = jax.random.split(key)
    x = jax.random.normal(kx, (batch, *input_dim), jnp.float32)   # NCHW

    params = init_params(kparam, input_dim, action_space)          # PyTorch layouts
    kparams = prepare_params(params)                               # kernel layouts

    out = jax.block_until_ready(supervised_forward(x, kparams))

    assert out.shape == (batch, action_space), out.shape
    assert bool(jnp.all((out >= 0.0) & (out <= 1.0))), "sigmoid range violated"

    ref = jax.block_until_ready(reference_forward(x, params))
    err = float(jnp.max(jnp.abs(out - ref)))
    assert err <= 1e-5, f"mismatch vs pure-JAX reference: max abs err = {err}"

    print("KERNEL_OK")
</pallas_src>

<mosaic_0001>
module attributes {stable_mosaic.version = 11 : i64} {
  func.func @_supervised_kernel(%arg0: i32, %arg1: memref<1x16x16x4xf32, #tpu.memory_space<vmem>>, %arg2: memref<8x36xf32, #tpu.memory_space<vmem>>, %arg3: memref<8x1xf32, #tpu.memory_space<vmem>>, %arg4: memref<8x72xf32, #tpu.memory_space<vmem>>, %arg5: memref<8x1xf32, #tpu.memory_space<vmem>>, %arg6: memref<4x72xf32, #tpu.memory_space<vmem>>, %arg7: memref<4x1xf32, #tpu.memory_space<vmem>>, %arg8: memref<2x36xf32, #tpu.memory_space<vmem>>, %arg9: memref<2x1xf32, #tpu.memory_space<vmem>>, %arg10: memref<32x16xf32, #tpu.memory_space<vmem>>, %arg11: memref<1x16xf32, #tpu.memory_space<vmem>>, %arg12: memref<16x6xf32, #tpu.memory_space<vmem>>, %arg13: memref<1x6xf32, #tpu.memory_space<vmem>>, %arg14: memref<1x1x6xf32, #tpu.memory_space<vmem>>, %arg15: memref<1x18x18x4xf32, #tpu.memory_space<vmem>>, %arg16: memref<1x18x18x8xf32, #tpu.memory_space<vmem>>, %arg17: memref<1x10x10x8xf32, #tpu.memory_space<vmem>>, %arg18: memref<1x10x10x4xf32, #tpu.memory_space<vmem>>, %arg19: memref<256x36xf32, #tpu.memory_space<vmem>>, %arg20: memref<64x72xf32, #tpu.memory_space<vmem>>, %arg21: memref<16x36xf32, #tpu.memory_space<vmem>>, %arg22: memref<1x32xf32, #tpu.memory_space<vmem>>) attributes {dimension_semantics = [#tpu.dimension_semantics<parallel>], iteration_bounds = array<i64: 2>, scalar_prefetch = 0 : i64, scratch_operands = 8 : i64, tpu.core_type = #tpu.core_type<tc>, window_params = [{transform_indices = @transform_0, window_bounds = array<i64: 1, 16, 16, 4>}, {pipeline_mode = #tpu.pipeline_mode<synchronous>, transform_indices = @transform_1, window_bounds = array<i64: 8, 36>}, {pipeline_mode = #tpu.pipeline_mode<synchronous>, transform_indices = @transform_2, window_bounds = array<i64: 8, 1>}, {pipeline_mode = #tpu.pipeline_mode<synchronous>, transform_indices = @transform_3, window_bounds = array<i64: 8, 72>}, {pipeline_mode = #tpu.pipeline_mode<synchronous>, transform_indices = @transform_4, window_bounds = array<i64: 8, 1>}, {pipeline_mode = #tpu.pipeline_mode<synchronous>, transform_indices = @transform_5, window_bounds = array<i64: 4, 72>}, {pipeline_mode = #tpu.pipeline_mode<synchronous>, transform_indices = @transform_6, window_bounds = array<i64: 4, 1>}, {pipeline_mode = #tpu.pipeline_mode<synchronous>, transform_indices = @transform_7, window_bounds = array<i64: 2, 36>}, {pipeline_mode = #tpu.pipeline_mode<synchronous>, transform_indices = @transform_8, window_bounds = array<i64: 2, 1>}, {pipeline_mode = #tpu.pipeline_mode<synchronous>, transform_indices = @transform_9, window_bounds = array<i64: 32, 16>}, {pipeline_mode = #tpu.pipeline_mode<synchronous>, transform_indices = @transform_10, window_bounds = array<i64: 1, 16>}, {pipeline_mode = #tpu.pipeline_mode<synchronous>, transform_indices = @transform_11, window_bounds = array<i64: 16, 6>}, {pipeline_mode = #tpu.pipeline_mode<synchronous>, transform_indices = @transform_12, window_bounds = array<i64: 1, 6>}, {transform_indices = @transform_13, window_bounds = array<i64: 1, 1, 6>}]} {
    %cst = arith.constant 0.000000e+00 : f32
    %0 = vector.broadcast %cst : f32 to vector<1x1x18x4xf32>
    %cst_0 = arith.constant 0.000000e+00 : f32
    %1 = vector.broadcast %cst_0 : f32 to vector<1x18x1x4xf32>
    %c0 = arith.constant 0 : index
    %c0_1 = arith.constant 0 : index
    %c0_2 = arith.constant 0 : index
    %c0_3 = arith.constant 0 : index
    %2 = vector.load %arg15[%c0, %c0_1, %c0_2, %c0_3] : memref<1x18x18x4xf32, #tpu.memory_space<vmem>>, vector<1x1x18x4xf32>
    tpu.vector_store %arg15[%c0, %c0_1, %c0_2, %c0_3], %0 {strides = array<i32>} : memref<1x18x18x4xf32, #tpu.memory_space<vmem>>, vector<1x1x18x4xf32>,
    %c0_4 = arith.constant 0 : index
    %c17 = arith.constant 17 : index
    %c0_5 = arith.constant 0 : index
    %c0_6 = arith.constant 0 : index
    %3 = vector.load %arg15[%c0_4, %c17, %c0_5, %c0_6] : memref<1x18x18x4xf32, #tpu.memory_space<vmem>>, vector<1x1x18x4xf32>
    tpu.vector_store %arg15[%c0_4, %c17, %c0_5, %c0_6], %0 {strides = array<i32>} : memref<1x18x18x4xf32, #tpu.memory_space<vmem>>, vector<1x1x18x4xf32>,
    %c0_7 = arith.constant 0 : index
    %c0_8 = arith.constant 0 : index
    %c0_9 = arith.constant 0 : index
    %c0_10 = arith.constant 0 : index
    %4 = vector.load %arg15[%c0_7, %c0_8, %c0_9, %c0_10] : memref<1x18x18x4xf32, #tpu.memory_space<vmem>>, vector<1x18x1x4xf32>
    tpu.vector_store %arg15[%c0_7, %c0_8, %c0_9, %c0_10], %1 {strides = array<i32>} : memref<1x18x18x4xf32, #tpu.memory_space<vmem>>, vector<1x18x1x4xf32>,
    %c0_11 = arith.constant 0 : index
    %c0_12 = arith.constant 0 : index
    %c17_13 = arith.constant 17 : index
    %c0_14 = arith.constant 0 : index
    %5 = vector.load %arg15[%c0_11, %c0_12, %c17_13, %c0_14] : memref<1x18x18x4xf32, #tpu.memory_space<vmem>>, vector<1x18x1x4xf32>
    tpu.vector_store %arg15[%c0_11, %c0_12, %c17_13, %c0_14], %1 {strides = array<i32>} : memref<1x18x18x4xf32, #tpu.memory_space<vmem>>, vector<1x18x1x4xf32>,
    %c0_15 = arith.constant 0 : index
    %c0_16 = arith.constant 0 : index
    %c0_17 = arith.constant 0 : index
    %c0_18 = arith.constant 0 : index
    %6 = vector.load %arg1[%c0_15, %c0_16, %c0_17, %c0_18] : memref<1x16x16x4xf32, #tpu.memory_space<vmem>>, vector<1x16x16x4xf32>
    %c0_19 = arith.constant 0 : index
    %c1 = arith.constant 1 : index
    %c1_20 = arith.constant 1 : index
    %c0_21 = arith.constant 0 : index
    %7 = vector.load %arg15[%c0_19, %c1, %c1_20, %c0_21] : memref<1x18x18x4xf32, #tpu.memory_space<vmem>>, vector<1x16x16x4xf32>
    tpu.vector_store %arg15[%c0_19, %c1, %c1_20, %c0_21], %6 {strides = array<i32>} : memref<1x18x18x4xf32, #tpu.memory_space<vmem>>, vector<1x16x16x4xf32>,
    %c0_22 = arith.constant 0 : index
    %c0_23 = arith.constant 0 : index
    %c0_24 = arith.constant 0 : index
    %c0_25 = arith.constant 0 : index
    %8 = vector.load %arg15[%c0_22, %c0_23, %c0_24, %c0_25] : memref<1x18x18x4xf32, #tpu.memory_space<vmem>>, vector<1x16x16x4xf32>
    %9 = vector.shape_cast %8 : vector<1x16x16x4xf32> to vector<256x4xf32>
    %c0_26 = arith.constant 0 : index
    %c0_27 = arith.constant 0 : index
    %10 = vector.load %arg19[%c0_26, %c0_27] : memref<256x36xf32, #tpu.memory_space<vmem>>, vector<256x4xf32>
    tpu.vector_store %arg19[%c0_26, %c0_27], %9 {strides = array<i32>} : memref<256x36xf32, #tpu.memory_space<vmem>>, vector<256x4xf32>,
    %c0_28 = arith.constant 0 : index
    %c0_29 = arith.constant 0 : index
    %c1_30 = arith.constant 1 : index
    %c0_31 = arith.constant 0 : index
    %11 = vector.load %arg15[%c0_28, %c0_29, %c1_30, %c0_31] : memref<1x18x18x4xf32, #tpu.memory_space<vmem>>, vector<1x16x16x4xf32>
    %12 = vector.shape_cast %11 : vector<1x16x16x4xf32> to vector<256x4xf32>
    %c0_32 = arith.constant 0 : index
    %c4 = arith.constant 4 : index
    %13 = vector.load %arg19[%c0_32, %c4] : memref<256x36xf32, #tpu.memory_space<vmem>>, vector<256x4xf32>
    tpu.vector_store %arg19[%c0_32, %c4], %12 {strides = array<i32>} : memref<256x36xf32, #tpu.memory_space<vmem>>, vector<256x4xf32>,
    %c0_33 = arith.constant 0 : index
    %c0_34 = arith.constant 0 : index
    %c2 = arith.constant 2 : index
    %c0_35 = arith.constant 0 : index
    %14 = vector.load %arg15[%c0_33, %c0_34, %c2, %c0_35] : memref<1x18x18x4xf32, #tpu.memory_space<vmem>>, vector<1x16x16x4xf32>
    %15 = vector.shape_cast %14 : vector<1x16x16x4xf32> to vector<256x4xf32>
    %c0_36 = arith.constant 0 : index
    %c8 = arith.constant 8 : index
    %16 = vector.load %arg19[%c0_36, %c8] : memref<256x36xf32, #tpu.memory_space<vmem>>, vector<256x4xf32>
    tpu.vector_store %arg19[%c0_36, %c8], %15 {strides = array<i32>} : memref<256x36xf32, #tpu.memory_space<vmem>>, vector<256x4xf32>,
    %c0_37 = arith.constant 0 : index
    %c1_38 = arith.constant 1 : index
    %c0_39 = arith.constant 0 : index
    %c0_40 = arith.constant 0 : index
    %17 = vector.load %arg15[%c0_37, %c1_38, %c0_39, %c0_40] : memref<1x18x18x4xf32, #tpu.memory_space<vmem>>, vector<1x16x16x4xf32>
    %18 = vector.shape_cast %17 : vector<1x16x16x4xf32> to vector<256x4xf32>
    %c0_41 = arith.constant 0 : index
    %c12 = arith.constant 12 : index
    %19 = vector.load %arg19[%c0_41, %c12] : memref<256x36xf32, #tpu.memory_space<vmem>>, vector<256x4xf32>
    tpu.vector_store %arg19[%c0_41, %c12], %18 {strides = array<i32>} : memref<256x36xf32, #tpu.memory_space<vmem>>, vector<256x4xf32>,
    %c0_42 = arith.constant 0 : index
    %c1_43 = arith.constant 1 : index
    %c1_44 = arith.constant 1 : index
    %c0_45 = arith.constant 0 : index
    %20 = vector.load %arg15[%c0_42, %c1_43, %c1_44, %c0_45] : memref<1x18x18x4xf32, #tpu.memory_space<vmem>>, vector<1x16x16x4xf32>
    %21 = vector.shape_cast %20 : vector<1x16x16x4xf32> to vector<256x4xf32>
    %c0_46 = arith.constant 0 : index
    %c16 = arith.constant 16 : index
    %22 = vector.load %arg19[%c0_46, %c16] : memref<256x36xf32, #tpu.memory_space<vmem>>, vector<256x4xf32>
    tpu.vector_store %arg19[%c0_46, %c16], %21 {strides = array<i32>} : memref<256x36xf32, #tpu.memory_space<vmem>>, vector<256x4xf32>,
    %c0_47 = arith.constant 0 : index
    %c1_48 = arith.constant 1 : index
    %c2_49 = arith.constant 2 : index
    %c0_50 = arith.constant 0 : index
    %23 = vector.load %arg15[%c0_47, %c1_48, %c2_49, %c0_50] : memref<1x18x18x4xf32, #tpu.memory_space<vmem>>, vector<1x16x16x4xf32>
    %24 = vector.shape_cast %23 : vector<1x16x16x4xf32> to vector<256x4xf32>
    %c0_51 = arith.constant 0 : index
    %c20 = arith.constant 20 : index
    %25 = vector.load %arg19[%c0_51, %c20] : memref<256x36xf32, #tpu.memory_space<vmem>>, vector<256x4xf32>
    tpu.vector_store %arg19[%c0_51, %c20], %24 {strides = array<i32>} : memref<256x36xf32, #tpu.memory_space<vmem>>, vector<256x4xf32>,
    %c0_52 = arith.constant 0 : index
    %c2_53 = arith.constant 2 : index
    %c0_54 = arith.constant 0 : index
    %c0_55 = arith.constant 0 : index
    %26 = vector.load %arg15[%c0_52, %c2_53, %c0_54, %c0_55] : memref<1x18x18x4xf32, #tpu.memory_space<vmem>>, vector<1x16x16x4xf32>
    %27 = vector.shape_cast %26 : vector<1x16x16x4xf32> to vector<256x4xf32>
    %c0_56 = arith.constant 0 : index
    %c24 = arith.constant 24 : index
    %28 = vector.load %arg19[%c0_56, %c24] : memref<256x36xf32, #tpu.memory_space<vmem>>, vector<256x4xf32>
    tpu.vector_store %arg19[%c0_56, %c24], %27 {strides = array<i32>} : memref<256x36xf32, #tpu.memory_space<vmem>>, vector<256x4xf32>,
    %c0_57 = arith.constant 0 : index
    %c2_58 = arith.constant 2 : index
    %c1_59 = arith.constant 1 : index
    %c0_60 = arith.constant 0 : index
    %29 = vector.load %arg15[%c0_57, %c2_58, %c1_59, %c0_60] : memref<1x18x18x4xf32, #tpu.memory_space<vmem>>, vector<1x16x16x4xf32>
    %30 = vector.shape_cast %29 : vector<1x16x16x4xf32> to vector<256x4xf32>
    %c0_61 = arith.constant 0 : index
    %c28 = arith.constant 28 : index
    %31 = vector.load %arg19[%c0_61, %c28] : memref<256x36xf32, #tpu.memory_space<vmem>>, vector<256x4xf32>
    tpu.vector_store %arg19[%c0_61, %c28], %30 {strides = array<i32>} : memref<256x36xf32, #tpu.memory_space<vmem>>, vector<256x4xf32>,
    %c0_62 = arith.constant 0 : index
    %c2_63 = arith.constant 2 : index
    %c2_64 = arith.constant 2 : index
    %c0_65 = arith.constant 0 : index
    %32 = vector.load %arg15[%c0_62, %c2_63, %c2_64, %c0_65] : memref<1x18x18x4xf32, #tpu.memory_space<vmem>>, vector<1x16x16x4xf32>
    %33 = vector.shape_cast %32 : vector<1x16x16x4xf32> to vector<256x4xf32>
    %c0_66 = arith.constant 0 : index
    %c32 = arith.constant 32 : index
    %34 = vector.load %arg19[%c0_66, %c32] : memref<256x36xf32, #tpu.memory_space<vmem>>, vector<256x4xf32>
    tpu.vector_store %arg19[%c0_66, %c32], %33 {strides = array<i32>} : memref<256x36xf32, #tpu.memory_space<vmem>>, vector<256x4xf32>,
    %c0_67 = arith.constant 0 : index
    %c0_68 = arith.constant 0 : index
    %35 = vector.load %arg2[%c0_67, %c0_68] : memref<8x36xf32, #tpu.memory_space<vmem>>, vector<8x36xf32>
    %c0_69 = arith.constant 0 : index
    %c0_70 = arith.constant 0 : index
    %36 = vector.load %arg19[%c0_69, %c0_70] : memref<256x36xf32, #tpu.memory_space<vmem>>, vector<256x36xf32>
    %cst_71 = arith.constant dense<0.000000e+00> : vector<8x256xf32>
    %37 = tpu.matmul %35, %36, %cst_71 {dimension_numbers = #tpu.dot_dimension_numbers<[1], [1], [0], [0], [0, 0, 1, 0], [], []>} : vector<8x36xf32>, vector<256x36xf32>, vector<8x256xf32> -> vector<8x256xf32>
    %c0_72 = arith.constant 0 : index
    %c0_73 = arith.constant 0 : index
    %38 = vector.load %arg3[%c0_72, %c0_73] : memref<8x1xf32, #tpu.memory_space<vmem>>, vector<8x1xf32>
    %39 = vector.broadcast %38 : vector<8x1xf32> to vector<8x256xf32>
    %40 = arith.addf %37, %39 : vector<8x256xf32>
    %cst_74 = arith.constant 0.000000e+00 : f32
    %41 = vector.broadcast %cst_74 : f32 to vector<8x256xf32>
    %42 = arith.maximumf %40, %41 : vector<8x256xf32>
    %cst_75 = arith.constant 0.000000e+00 : f32
    %43 = vector.broadcast %cst_75 : f32 to vector<1x1x18x8xf32>
    %cst_76 = arith.constant 0.000000e+00 : f32
    %44 = vector.broadcast %cst_76 : f32 to vector<1x18x1x8xf32>
    %c0_77 = arith.constant 0 : index
    %c0_78 = arith.constant 0 : index
    %c0_79 = arith.constant 0 : index
    %c0_80 = arith.constant 0 : index
    %45 = vector.load %arg16[%c0_77, %c0_78, %c0_79, %c0_80] : memref<1x18x18x8xf32, #tpu.memory_space<vmem>>, vector<1x1x18x8xf32>
    tpu.vector_store %arg16[%c0_77, %c0_78, %c0_79, %c0_80], %43 {strides = array<i32>} : memref<1x18x18x8xf32, #tpu.memory_space<vmem>>, vector<1x1x18x8xf32>,
    %c0_81 = arith.constant 0 : index
    %c17_82 = arith.constant 17 : index
    %c0_83 = arith.constant 0 : index
    %c0_84 = arith.constant 0 : index
    %46 = vector.load %arg16[%c0_81, %c17_82, %c0_83, %c0_84] : memref<1x18x18x8xf32, #tpu.memory_space<vmem>>, vector<1x1x18x8xf32>
    tpu.vector_store %arg16[%c0_81, %c17_82, %c0_83, %c0_84], %43 {strides = array<i32>} : memref<1x18x18x8xf32, #tpu.memory_space<vmem>>, vector<1x1x18x8xf32>,
    %c0_85 = arith.constant 0 : index
    %c0_86 = arith.constant 0 : index
    %c0_87 = arith.constant 0 : index
    %c0_88 = arith.constant 0 : index
    %47 = vector.load %arg16[%c0_85, %c0_86, %c0_87, %c0_88] : memref<1x18x18x8xf32, #tpu.memory_space<vmem>>, vector<1x18x1x8xf32>
    tpu.vector_store %arg16[%c0_85, %c0_86, %c0_87, %c0_88], %44 {strides = array<i32>} : memref<1x18x18x8xf32, #tpu.memory_space<vmem>>, vector<1x18x1x8xf32>,
    %c0_89 = arith.constant 0 : index
    %c0_90 = arith.constant 0 : index
    %c17_91 = arith.constant 17 : index
    %c0_92 = arith.constant 0 : index
    %48 = vector.load %arg16[%c0_89, %c0_90, %c17_91, %c0_92] : memref<1x18x18x8xf32, #tpu.memory_space<vmem>>, vector<1x18x1x8xf32>
    tpu.vector_store %arg16[%c0_89, %c0_90, %c17_91, %c0_92], %44 {strides = array<i32>} : memref<1x18x18x8xf32, #tpu.memory_space<vmem>>, vector<1x18x1x8xf32>,
    %49 = tpu.transpose %42, [1, 0] : vector<8x256xf32> -> vector<256x8xf32>
    %50 = vector.shape_cast %49 : vector<256x8xf32> to vector<1x16x16x8xf32>
    %c0_93 = arith.constant 0 : index
    %c1_94 = arith.constant 1 : index
    %c1_95 = arith.constant 1 : index
    %c0_96 = arith.constant 0 : index
    %51 = vector.load %arg16[%c0_93, %c1_94, %c1_95, %c0_96] : memref<1x18x18x8xf32, #tpu.memory_space<vmem>>, vector<1x16x16x8xf32>
    tpu.vector_store %arg16[%c0_93, %c1_94, %c1_95, %c0_96], %50 {strides = array<i32>} : memref<1x18x18x8xf32, #tpu.memory_space<vmem>>, vector<1x16x16x8xf32>,
    %c0_97 = arith.constant 0 : index
    %c0_98 = arith.constant 0 : index
    %c0_99 = arith.constant 0 : index
    %c0_100 = arith.constant 0 : index
    %52 = tpu.strided_load %arg16[%c0_97, %c0_98, %c0_99, %c0_100] {strides = array<i32: 1, 2, 2, 1>} : memref<1x18x18x8xf32, #tpu.memory_space<vmem>>, vector<1x8x8x8xf32>
    %53 = vector.shape_cast %52 : vector<1x8x8x8xf32> to vector<64x8xf32>
    %c0_101 = arith.constant 0 : index
    %c0_102 = arith.constant 0 : index
    %54 = vector.load %arg20[%c0_101, %c0_102] : memref<64x72xf32, #tpu.memory_space<vmem>>, vector<64x8xf32>
    tpu.vector_store %arg20[%c0_101, %c0_102], %53 {strides = array<i32>} : memref<64x72xf32, #tpu.memory_space<vmem>>, vector<64x8xf32>,
    %c0_103 = arith.constant 0 : index
    %c0_104 = arith.constant 0 : index
    %c1_105 = arith.constant 1 : index
    %c0_106 = arith.constant 0 : index
    %55 = tpu.strided_load %arg16[%c0_103, %c0_104, %c1_105, %c0_106] {strides = array<i32: 1, 2, 2, 1>} : memref<1x18x18x8xf32, #tpu.memory_space<vmem>>, vector<1x8x8x8xf32>
    %56 = vector.shape_cast %55 : vector<1x8x8x8xf32> to vector<64x8xf32>
    %c0_107 = arith.constant 0 : index
    %c8_108 = arith.constant 8 : index
    %57 = vector.load %arg20[%c0_107, %c8_108] : memref<64x72xf32, #tpu.memory_space<vmem>>, vector<64x8xf32>
    tpu.vector_store %arg20[%c0_107, %c8_108], %56 {strides = array<i32>} : memref<64x72xf32, #tpu.memory_space<vmem>>, vector<64x8xf32>,
    %c0_109 = arith.constant 0 : index
    %c0_110 = arith.constant 0 : index
    %c2_111 = arith.constant 2 : index
    %c0_112 = arith.constant 0 : index
    %58 = tpu.strided_load %arg16[%c0_109, %c0_110, %c2_111, %c0_112] {strides = array<i32: 1, 2, 2, 1>} : memref<1x18x18x8xf32, #tpu.memory_space<vmem>>, vector<1x8x8x8xf32>
    %59 = vector.shape_cast %58 : vector<1x8x8x8xf32> to vector<64x8xf32>
    %c0_113 = arith.constant 0 : index
    %c16_114 = arith.constant 16 : index
    %60 = vector.load %arg20[%c0_113, %c16_114] : memref<64x72xf32, #tpu.memory_space<vmem>>, vector<64x8xf32>
    tpu.vector_store %arg20[%c0_113, %c16_114], %59 {strides = array<i32>} : memref<64x72xf32, #tpu.memory_space<vmem>>, vector<64x8xf32>,
    %c0_115 = arith.constant 0 : index
    %c1_116 = arith.constant 1 : index
    %c0_117 = arith.constant 0 : index
    %c0_118 = arith.constant 0 : index
    %61 = tpu.strided_load %arg16[%c0_115, %c1_116, %c0_117, %c0_118] {strides = array<i32: 1, 2, 2, 1>} : memref<1x18x18x8xf32, #tpu.memory_space<vmem>>, vector<1x8x8x8xf32>
    %62 = vector.shape_cast %61 : vector<1x8x8x8xf32> to vector<64x8xf32>
    %c0_119 = arith.constant 0 : index
    %c24_120 = arith.constant 24 : index
    %63 = vector.load %arg20[%c0_119, %c24_120] : memref<64x72xf32, #tpu.memory_space<vmem>>, vector<64x8xf32>
    tpu.vector_store %arg20[%c0_119, %c24_120], %62 {strides = array<i32>} : memref<64x72xf32, #tpu.memory_space<vmem>>, vector<64x8xf32>,
    %c0_121 = arith.constant 0 : index
    %c1_122 = arith.constant 1 : index
    %c1_123 = arith.constant 1 : index
    %c0_124 = arith.constant 0 : index
    %64 = tpu.strided_load %arg16[%c0_121, %c1_122, %c1_123, %c0_124] {strides = array<i32: 1, 2, 2, 1>} : memref<1x18x18x8xf32, #tpu.memory_space<vmem>>, vector<1x8x8x8xf32>
    %65 = vector.shape_cast %64 : vector<1x8x8x8xf32> to vector<64x8xf32>
    %c0_125 = arith.constant 0 : index
    %c32_126 = arith.constant 32 : index
    %66 = vector.load %arg20[%c0_125, %c32_126] : memref<64x72xf32, #tpu.memory_space<vmem>>, vector<64x8xf32>
    tpu.vector_store %arg20[%c0_125, %c32_126], %65 {strides = array<i32>} : memref<64x72xf32, #tpu.memory_space<vmem>>, vector<64x8xf32>,
    %c0_127 = arith.constant 0 : index
    %c1_128 = arith.constant 1 : index
    %c2_129 = arith.constant 2 : index
    %c0_130 = arith.constant 0 : index
    %67 = tpu.strided_load %arg16[%c0_127, %c1_128, %c2_129, %c0_130] {strides = array<i32: 1, 2, 2, 1>} : memref<1x18x18x8xf32, #tpu.memory_space<vmem>>, vector<1x8x8x8xf32>
    %68 = vector.shape_cast %67 : vector<1x8x8x8xf32> to vector<64x8xf32>
    %c0_131 = arith.constant 0 : index
    %c40 = arith.constant 40 : index
    %69 = vector.load %arg20[%c0_131, %c40] : memref<64x72xf32, #tpu.memory_space<vmem>>, vector<64x8xf32>
    tpu.vector_store %arg20[%c0_131, %c40], %68 {strides = array<i32>} : memref<64x72xf32, #tpu.memory_space<vmem>>, vector<64x8xf32>,
    %c0_132 = arith.constant 0 : index
    %c2_133 = arith.constant 2 : index
    %c0_134 = arith.constant 0 : index
    %c0_135 = arith.constant 0 : index
    %70 = tpu.strided_load %arg16[%c0_132, %c2_133, %c0_134, %c0_135] {strides = array<i32: 1, 2, 2, 1>} : memref<1x18x18x8xf32, #tpu.memory_space<vmem>>, vector<1x8x8x8xf32>
    %71 = vector.shape_cast %70 : vector<1x8x8x8xf32> to vector<64x8xf32>
    %c0_136 = arith.constant 0 : index
    %c48 = arith.constant 48 : index
    %72 = vector.load %arg20[%c0_136, %c48] : memref<64x72xf32, #tpu.memory_space<vmem>>, vector<64x8xf32>
    tpu.vector_store %arg20[%c0_136, %c48], %71 {strides = array<i32>} : memref<64x72xf32, #tpu.memory_space<vmem>>, vector<64x8xf32>,
    %c0_137 = arith.constant 0 : index
    %c2_138 = arith.constant 2 : index
    %c1_139 = arith.constant 1 : index
    %c0_140 = arith.constant 0 : index
    %73 = tpu.strided_load %arg16[%c0_137, %c2_138, %c1_139, %c0_140] {strides = array<i32: 1, 2, 2, 1>} : memref<1x18x18x8xf32, #tpu.memory_space<vmem>>, vector<1x8x8x8xf32>
    %74 = vector.shape_cast %73 : vector<1x8x8x8xf32> to vector<64x8xf32>
    %c0_141 = arith.constant 0 : index
    %c56 = arith.constant 56 : index
    %75 = vector.load %arg20[%c0_141, %c56] : memref<64x72xf32, #tpu.memory_space<vmem>>, vector<64x8xf32>
    tpu.vector_store %arg20[%c0_141, %c56], %74 {strides = array<i32>} : memref<64x72xf32, #tpu.memory_space<vmem>>, vector<64x8xf32>,
    %c0_142 = arith.constant 0 : index
    %c2_143 = arith.constant 2 : index
    %c2_144 = arith.constant 2 : index
    %c0_145 = arith.constant 0 : index
    %76 = tpu.strided_load %arg16[%c0_142, %c2_143, %c2_144, %c0_145] {strides = array<i32: 1, 2, 2, 1>} : memref<1x18x18x8xf32, #tpu.memory_space<vmem>>, vector<1x8x8x8xf32>
    %77 = vector.shape_cast %76 : vector<1x8x8x8xf32> to vector<64x8xf32>
    %c0_146 = arith.constant 0 : index
    %c64 = arith.constant 64 : index
    %78 = vector.load %arg20[%c0_146, %c64] : memref<64x72xf32, #tpu.memory_space<vmem>>, vector<64x8xf32>
    tpu.vector_store %arg20[%c0_146, %c64], %77 {strides = array<i32>} : memref<64x72xf32, #tpu.memory_space<vmem>>, vector<64x8xf32>,
    %c0_147 = arith.constant 0 : index
    %c0_148 = arith.constant 0 : index
    %79 = vector.load %arg4[%c0_147, %c0_148] : memref<8x72xf32, #tpu.memory_space<vmem>>, vector<8x72xf32>
    %c0_149 = arith.constant 0 : index
    %c0_150 = arith.constant 0 : index
    %80 = vector.load %arg20[%c0_149, %c0_150] : memref<64x72xf32, #tpu.memory_space<vmem>>, vector<64x72xf32>
    %cst_151 = arith.constant dense<0.000000e+00> : vector<8x64xf32>
    %81 = tpu.matmul %79, %80, %cst_151 {dimension_numbers = #tpu.dot_dimension_numbers<[1], [1], [0], [0], [0, 0, 1, 0], [], []>} : vector<8x72xf32>, vector<64x72xf32>, vector<8x64xf32> -> vector<8x64xf32>
    %c0_152 = arith.constant 0 : index
    %c0_153 = arith.constant 0 : index
    %82 = vector.load %arg5[%c0_152, %c0_153] : memref<8x1xf32, #tpu.memory_space<vmem>>, vector<8x1xf32>
    %83 = vector.broadcast %82 : vector<8x1xf32> to vector<8x64xf32>
    %84 = arith.addf %81, %83 : vector<8x64xf32>
    %cst_154 = arith.constant 0.000000e+00 : f32
    %85 = vector.broadcast %cst_154 : f32 to vector<8x64xf32>
    %86 = arith.maximumf %84, %85 : vector<8x64xf32>
    %cst_155 = arith.constant 0.000000e+00 : f32
    %87 = vector.broadcast %cst_155 : f32 to vector<1x1x10x8xf32>
    %cst_156 = arith.constant 0.000000e+00 : f32
    %88 = vector.broadcast %cst_156 : f32 to vector<1x10x1x8xf32>
    %c0_157 = arith.constant 0 : index
    %c0_158 = arith.constant 0 : index
    %c0_159 = arith.constant 0 : index
    %c0_160 = arith.constant 0 : index
    %89 = vector.load %arg17[%c0_157, %c0_158, %c0_159, %c0_160] : memref<1x10x10x8xf32, #tpu.memory_space<vmem>>, vector<1x1x10x8xf32>
    tpu.vector_store %arg17[%c0_157, %c0_158, %c0_159, %c0_160], %87 {strides = array<i32>} : memref<1x10x10x8xf32, #tpu.memory_space<vmem>>, vector<1x1x10x8xf32>,
    %c0_161 = arith.constant 0 : index
    %c9 = arith.constant 9 : index
    %c0_162 = arith.constant 0 : index
    %c0_163 = arith.constant 0 : index
    %90 = vector.load %arg17[%c0_161, %c9, %c0_162, %c0_163] : memref<1x10x10x8xf32, #tpu.memory_space<vmem>>, vector<1x1x10x8xf32>
    tpu.vector_store %arg17[%c0_161, %c9, %c0_162, %c0_163], %87 {strides = array<i32>} : memref<1x10x10x8xf32, #tpu.memory_space<vmem>>, vector<1x1x10x8xf32>,
    %c0_164 = arith.constant 0 : index
    %c0_165 = arith.constant 0 : index
    %c0_166 = arith.constant 0 : index
    %c0_167 = arith.constant 0 : index
    %91 = vector.load %arg17[%c0_164, %c0_165, %c0_166, %c0_167] : memref<1x10x10x8xf32, #tpu.memory_space<vmem>>, vector<1x10x1x8xf32>
    tpu.vector_store %arg17[%c0_164, %c0_165, %c0_166, %c0_167], %88 {strides = array<i32>} : memref<1x10x10x8xf32, #tpu.memory_space<vmem>>, vector<1x10x1x8xf32>,
    %c0_168 = arith.constant 0 : index
    %c0_169 = arith.constant 0 : index
    %c9_170 = arith.constant 9 : index
    %c0_171 = arith.constant 0 : index
    %92 = vector.load %arg17[%c0_168, %c0_169, %c9_170, %c0_171] : memref<1x10x10x8xf32, #tpu.memory_space<vmem>>, vector<1x10x1x8xf32>
    tpu.vector_store %arg17[%c0_168, %c0_169, %c9_170, %c0_171], %88 {strides = array<i32>} : memref<1x10x10x8xf32, #tpu.memory_space<vmem>>, vector<1x10x1x8xf32>,
    %93 = tpu.transpose %86, [1, 0] : vector<8x64xf32> -> vector<64x8xf32>
    %94 = vector.shape_cast %93 : vector<64x8xf32> to vector<1x8x8x8xf32>
    %c0_172 = arith.constant 0 : index
    %c1_173 = arith.constant 1 : index
    %c1_174 = arith.constant 1 : index
    %c0_175 = arith.constant 0 : index
    %95 = vector.load %arg17[%c0_172, %c1_173, %c1_174, %c0_175] : memref<1x10x10x8xf32, #tpu.memory_space<vmem>>, vector<1x8x8x8xf32>
    tpu.vector_store %arg17[%c0_172, %c1_173, %c1_174, %c0_175], %94 {strides = array<i32>} : memref<1x10x10x8xf32, #tpu.memory_space<vmem>>, vector<1x8x8x8xf32>,
    %c0_176 = arith.constant 0 : index
    %c0_177 = arith.constant 0 : index
    %c0_178 = arith.constant 0 : index
    %c0_179 = arith.constant 0 : index
    %96 = vector.load %arg17[%c0_176, %c0_177, %c0_178, %c0_179] : memref<1x10x10x8xf32, #tpu.memory_space<vmem>>, vector<1x8x8x8xf32>
    %97 = vector.shape_cast %96 : vector<1x8x8x8xf32> to vector<64x8xf32>
    %c0_180 = arith.constant 0 : index
    %c0_181 = arith.constant 0 : index
    %98 = vector.load %arg20[%c0_180, %c0_181] : memref<64x72xf32, #tpu.memory_space<vmem>>, vector<64x8xf32>
    tpu.vector_store %arg20[%c0_180, %c0_181], %97 {strides = array<i32>} : memref<64x72xf32, #tpu.memory_space<vmem>>, vector<64x8xf32>,
    %c0_182 = arith.constant 0 : index
    %c0_183 = arith.constant 0 : index
    %c1_184 = arith.constant 1 : index
    %c0_185 = arith.constant 0 : index
    %99 = vector.load %arg17[%c0_182, %c0_183, %c1_184, %c0_185] : memref<1x10x10x8xf32, #tpu.memory_space<vmem>>, vector<1x8x8x8xf32>
    %100 = vector.shape_cast %99 : vector<1x8x8x8xf32> to vector<64x8xf32>
    %c0_186 = arith.constant 0 : index
    %c8_187 = arith.constant 8 : index
    %101 = vector.load %arg20[%c0_186, %c8_187] : memref<64x72xf32, #tpu.memory_space<vmem>>, vector<64x8xf32>
    tpu.vector_store %arg20[%c0_186, %c8_187], %100 {strides = array<i32>} : memref<64x72xf32, #tpu.memory_space<vmem>>, vector<64x8xf32>,
    %c0_188 = arith.constant 0 : index
    %c0_189 = arith.constant 0 : index
    %c2_190 = arith.constant 2 : index
    %c0_191 = arith.constant 0 : index
    %102 = vector.load %arg17[%c0_188, %c0_189, %c2_190, %c0_191] : memref<1x10x10x8xf32, #tpu.memory_space<vmem>>, vector<1x8x8x8xf32>
    %103 = vector.shape_cast %102 : vector<1x8x8x8xf32> to vector<64x8xf32>
    %c0_192 = arith.constant 0 : index
    %c16_193 = arith.constant 16 : index
    %104 = vector.load %arg20[%c0_192, %c16_193] : memref<64x72xf32, #tpu.memory_space<vmem>>, vector<64x8xf32>
    tpu.vector_store %arg20[%c0_192, %c16_193], %103 {strides = array<i32>} : memref<64x72xf32, #tpu.memory_space<vmem>>, vector<64x8xf32>,
    %c0_194 = arith.constant 0 : index
    %c1_195 = arith.constant 1 : index
    %c0_196 = arith.constant 0 : index
    %c0_197 = arith.constant 0 : index
    %105 = vector.load %arg17[%c0_194, %c1_195, %c0_196, %c0_197] : memref<1x10x10x8xf32, #tpu.memory_space<vmem>>, vector<1x8x8x8xf32>
    %106 = vector.shape_cast %105 : vector<1x8x8x8xf32> to vector<64x8xf32>
    %c0_198 = arith.constant 0 : index
    %c24_199 = arith.constant 24 : index
    %107 = vector.load %arg20[%c0_198, %c24_199] : memref<64x72xf32, #tpu.memory_space<vmem>>, vector<64x8xf32>
    tpu.vector_store %arg20[%c0_198, %c24_199], %106 {strides = array<i32>} : memref<64x72xf32, #tpu.memory_space<vmem>>, vector<64x8xf32>,
    %c0_200 = arith.constant 0 : index
    %c1_201 = arith.constant 1 : index
    %c1_202 = arith.constant 1 : index
    %c0_203 = arith.constant 0 : index
    %108 = vector.load %arg17[%c0_200, %c1_201, %c1_202, %c0_203] : memref<1x10x10x8xf32, #tpu.memory_space<vmem>>, vector<1x8x8x8xf32>
    %109 = vector.shape_cast %108 : vector<1x8x8x8xf32> to vector<64x8xf32>
    %c0_204 = arith.constant 0 : index
    %c32_205 = arith.constant 32 : index
    %110 = vector.load %arg20[%c0_204, %c32_205] : memref<64x72xf32, #tpu.memory_space<vmem>>, vector<64x8xf32>
    tpu.vector_store %arg20[%c0_204, %c32_205], %109 {strides = array<i32>} : memref<64x72xf32, #tpu.memory_space<vmem>>, vector<64x8xf32>,
    %c0_206 = arith.constant 0 : index
    %c1_207 = arith.constant 1 : index
    %c2_208 = arith.constant 2 : index
    %c0_209 = arith.constant 0 : index
    %111 = vector.load %arg17[%c0_206, %c1_207, %c2_208, %c0_209] : memref<1x10x10x8xf32, #tpu.memory_space<vmem>>, vector<1x8x8x8xf32>
    %112 = vector.shape_cast %111 : vector<1x8x8x8xf32> to vector<64x8xf32>
    %c0_210 = arith.constant 0 : index
    %c40_211 = arith.constant 40 : index
    %113 = vector.load %arg20[%c0_210, %c40_211] : memref<64x72xf32, #tpu.memory_space<vmem>>, vector<64x8xf32>
    tpu.vector_store %arg20[%c0_210, %c40_211], %112 {strides = array<i32>} : memref<64x72xf32, #tpu.memory_space<vmem>>, vector<64x8xf32>,
    %c0_212 = arith.constant 0 : index
    %c2_213 = arith.constant 2 : index
    %c0_214 = arith.constant 0 : index
    %c0_215 = arith.constant 0 : index
    %114 = vector.load %arg17[%c0_212, %c2_213, %c0_214, %c0_215] : memref<1x10x10x8xf32, #tpu.memory_space<vmem>>, vector<1x8x8x8xf32>
    %115 = vector.shape_cast %114 : vector<1x8x8x8xf32> to vector<64x8xf32>
    %c0_216 = arith.constant 0 : index
    %c48_217 = arith.constant 48 : index
    %116 = vector.load %arg20[%c0_216, %c48_217] : memref<64x72xf32, #tpu.memory_space<vmem>>, vector<64x8xf32>
    tpu.vector_store %arg20[%c0_216, %c48_217], %115 {strides = array<i32>} : memref<64x72xf32, #tpu.memory_space<vmem>>, vector<64x8xf32>,
    %c0_218 = arith.constant 0 : index
    %c2_219 = arith.constant 2 : index
    %c1_220 = arith.constant 1 : index
    %c0_221 = arith.constant 0 : index
    %117 = vector.load %arg17[%c0_218, %c2_219, %c1_220, %c0_221] : memref<1x10x10x8xf32, #tpu.memory_space<vmem>>, vector<1x8x8x8xf32>
    %118 = vector.shape_cast %117 : vector<1x8x8x8xf32> to vector<64x8xf32>
    %c0_222 = arith.constant 0 : index
    %c56_223 = arith.constant 56 : index
    %119 = vector.load %arg20[%c0_222, %c56_223] : memref<64x72xf32, #tpu.memory_space<vmem>>, vector<64x8xf32>
    tpu.vector_store %arg20[%c0_222, %c56_223], %118 {strides = array<i32>} : memref<64x72xf32, #tpu.memory_space<vmem>>, vector<64x8xf32>,
    %c0_224 = arith.constant 0 : index
    %c2_225 = arith.constant 2 : index
    %c2_226 = arith.constant 2 : index
    %c0_227 = arith.constant 0 : index
    %120 = vector.load %arg17[%c0_224, %c2_225, %c2_226, %c0_227] : memref<1x10x10x8xf32, #tpu.memory_space<vmem>>, vector<1x8x8x8xf32>
    %121 = vector.shape_cast %120 : vector<1x8x8x8xf32> to vector<64x8xf32>
    %c0_228 = arith.constant 0 : index
    %c64_229 = arith.constant 64 : index
    %122 = vector.load %arg20[%c0_228, %c64_229] : memref<64x72xf32, #tpu.memory_space<vmem>>, vector<64x8xf32>
    tpu.vector_store %arg20[%c0_228, %c64_229], %121 {strides = array<i32>} : memref<64x72xf32, #tpu.memory_space<vmem>>, vector<64x8xf32>,
    %c0_230 = arith.constant 0 : index
    %c0_231 = arith.constant 0 : index
    %123 = vector.load %arg6[%c0_230, %c0_231] : memref<4x72xf32, #tpu.memory_space<vmem>>, vector<4x72xf32>
    %c0_232 = arith.constant 0 : index
    %c0_233 = arith.constant 0 : index
    %124 = vector.load %arg20[%c0_232, %c0_233] : memref<64x72xf32, #tpu.memory_space<vmem>>, vector<64x72xf32>
    %cst_234 = arith.constant dense<0.000000e+00> : vector<4x64xf32>
    %125 = tpu.matmul %123, %124, %cst_234 {dimension_numbers = #tpu.dot_dimension_numbers<[1], [1], [0], [0], [0, 0, 1, 0], [], []>} : vector<4x72xf32>, vector<64x72xf32>, vector<4x64xf32> -> vector<4x64xf32>
    %c0_235 = arith.constant 0 : index
    %c0_236 = arith.constant 0 : index
    %126 = vector.load %arg7[%c0_235, %c0_236] : memref<4x1xf32, #tpu.memory_space<vmem>>, vector<4x1xf32>
    %127 = vector.broadcast %126 : vector<4x1xf32> to vector<4x64xf32>
    %128 = arith.addf %125, %127 : vector<4x64xf32>
    %cst_237 = arith.constant 0.000000e+00 : f32
    %129 = vector.broadcast %cst_237 : f32 to vector<4x64xf32>
    %130 = arith.maximumf %128, %129 : vector<4x64xf32>
    %cst_238 = arith.constant 0.000000e+00 : f32
    %131 = vector.broadcast %cst_238 : f32 to vector<1x1x10x4xf32>
    %cst_239 = arith.constant 0.000000e+00 : f32
    %132 = vector.broadcast %cst_239 : f32 to vector<1x10x1x4xf32>
    %c0_240 = arith.constant 0 : index
    %c0_241 = arith.constant 0 : index
    %c0_242 = arith.constant 0 : index
    %c0_243 = arith.constant 0 : index
    %133 = vector.load %arg18[%c0_240, %c0_241, %c0_242, %c0_243] : memref<1x10x10x4xf32, #tpu.memory_space<vmem>>, vector<1x1x10x4xf32>
    tpu.vector_store %arg18[%c0_240, %c0_241, %c0_242, %c0_243], %131 {strides = array<i32>} : memref<1x10x10x4xf32, #tpu.memory_space<vmem>>, vector<1x1x10x4xf32>,
    %c0_244 = arith.constant 0 : index
    %c9_245 = arith.constant 9 : index
    %c0_246 = arith.constant 0 : index
    %c0_247 = arith.constant 0 : index
    %134 = vector.load %arg18[%c0_244, %c9_245, %c0_246, %c0_247] : memref<1x10x10x4xf32, #tpu.memory_space<vmem>>, vector<1x1x10x4xf32>
    tpu.vector_store %arg18[%c0_244, %c9_245, %c0_246, %c0_247], %131 {strides = array<i32>} : memref<1x10x10x4xf32, #tpu.memory_space<vmem>>, vector<1x1x10x4xf32>,
    %c0_248 = arith.constant 0 : index
    %c0_249 = arith.constant 0 : index
    %c0_250 = arith.constant 0 : index
    %c0_251 = arith.constant 0 : index
    %135 = vector.load %arg18[%c0_248, %c0_249, %c0_250, %c0_251] : memref<1x10x10x4xf32, #tpu.memory_space<vmem>>, vector<1x10x1x4xf32>
    tpu.vector_store %arg18[%c0_248, %c0_249, %c0_250, %c0_251], %132 {strides = array<i32>} : memref<1x10x10x4xf32, #tpu.memory_space<vmem>>, vector<1x10x1x4xf32>,
    %c0_252 = arith.constant 0 : index
    %c0_253 = arith.constant 0 : index
    %c9_254 = arith.constant 9 : index
    %c0_255 = arith.constant 0 : index
    %136 = vector.load %arg18[%c0_252, %c0_253, %c9_254, %c0_255] : memref<1x10x10x4xf32, #tpu.memory_space<vmem>>, vector<1x10x1x4xf32>
    tpu.vector_store %arg18[%c0_252, %c0_253, %c9_254, %c0_255], %132 {strides = array<i32>} : memref<1x10x10x4xf32, #tpu.memory_space<vmem>>, vector<1x10x1x4xf32>,
    %137 = tpu.transpose %130, [1, 0] : vector<4x64xf32> -> vector<64x4xf32>
    %138 = vector.shape_cast %137 : vector<64x4xf32> to vector<1x8x8x4xf32>
    %c0_256 = arith.constant 0 : index
    %c1_257 = arith.constant 1 : index
    %c1_258 = arith.constant 1 : index
    %c0_259 = arith.constant 0 : index
    %139 = vector.load %arg18[%c0_256, %c1_257, %c1_258, %c0_259] : memref<1x10x10x4xf32, #tpu.memory_space<vmem>>, vector<1x8x8x4xf32>
    tpu.vector_store %arg18[%c0_256, %c1_257, %c1_258, %c0_259], %138 {strides = array<i32>} : memref<1x10x10x4xf32, #tpu.memory_space<vmem>>, vector<1x8x8x4xf32>,
    %c0_260 = arith.constant 0 : index
    %c0_261 = arith.constant 0 : index
    %c0_262 = arith.constant 0 : index
    %c0_263 = arith.constant 0 : index
    %140 = tpu.strided_load %arg18[%c0_260, %c0_261, %c0_262, %c0_263] {strides = array<i32: 1, 2, 2, 1>} : memref<1x10x10x4xf32, #tpu.memory_space<vmem>>, vector<1x4x4x4xf32>
    %141 = vector.shape_cast %140 : vector<1x4x4x4xf32> to vector<16x4xf32>
    %c0_264 = arith.constant 0 : index
    %c0_265 = arith.constant 0 : index
    %142 = vector.load %arg21[%c0_264, %c0_265] : memref<16x36xf32, #tpu.memory_space<vmem>>, vector<16x4xf32>
    tpu.vector_store %arg21[%c0_264, %c0_265], %141 {strides = array<i32>} : memref<16x36xf32, #tpu.memory_space<vmem>>, vector<16x4xf32>,
    %c0_266 = arith.constant 0 : index
    %c0_267 = arith.constant 0 : index
    %c1_268 = arith.constant 1 : index
    %c0_269 = arith.constant 0 : index
    %143 = tpu.strided_load %arg18[%c0_266, %c0_267, %c1_268, %c0_269] {strides = array<i32: 1, 2, 2, 1>} : memref<1x10x10x4xf32, #tpu.memory_space<vmem>>, vector<1x4x4x4xf32>
    %144 = vector.shape_cast %143 : vector<1x4x4x4xf32> to vector<16x4xf32>
    %c0_270 = arith.constant 0 : index
    %c4_271 = arith.constant 4 : index
    %145 = vector.load %arg21[%c0_270, %c4_271] : memref<16x36xf32, #tpu.memory_space<vmem>>, vector<16x4xf32>
    tpu.vector_store %arg21[%c0_270, %c4_271], %144 {strides = array<i32>} : memref<16x36xf32, #tpu.memory_space<vmem>>, vector<16x4xf32>,
    %c0_272 = arith.constant 0 : index
    %c0_273 = arith.constant 0 : index
    %c2_274 = arith.constant 2 : index
    %c0_275 = arith.constant 0 : index
    %146 = tpu.strided_load %arg18[%c0_272, %c0_273, %c2_274, %c0_275] {strides = array<i32: 1, 2, 2, 1>} : memref<1x10x10x4xf32, #tpu.memory_space<vmem>>, vector<1x4x4x4xf32>
    %147 = vector.shape_cast %146 : vector<1x4x4x4xf32> to vector<16x4xf32>
    %c0_276 = arith.constant 0 : index
    %c8_277 = arith.constant 8 : index
    %148 = vector.load %arg21[%c0_276, %c8_277] : memref<16x36xf32, #tpu.memory_space<vmem>>, vector<16x4xf32>
    tpu.vector_store %arg21[%c0_276, %c8_277], %147 {strides = array<i32>} : memref<16x36xf32, #tpu.memory_space<vmem>>, vector<16x4xf32>,
    %c0_278 = arith.constant 0 : index
    %c1_279 = arith.constant 1 : index
    %c0_280 = arith.constant 0 : index
    %c0_281 = arith.constant 0 : index
    %149 = tpu.strided_load %arg18[%c0_278, %c1_279, %c0_280, %c0_281] {strides = array<i32: 1, 2, 2, 1>} : memref<1x10x10x4xf32, #tpu.memory_space<vmem>>, vector<1x4x4x4xf32>
    %150 = vector.shape_cast %149 : vector<1x4x4x4xf32> to vector<16x4xf32>
    %c0_282 = arith.constant 0 : index
    %c12_283 = arith.constant 12 : index
    %151 = vector.load %arg21[%c0_282, %c12_283] : memref<16x36xf32, #tpu.memory_space<vmem>>, vector<16x4xf32>
    tpu.vector_store %arg21[%c0_282, %c12_283], %150 {strides = array<i32>} : memref<16x36xf32, #tpu.memory_space<vmem>>, vector<16x4xf32>,
    %c0_284 = arith.constant 0 : index
    %c1_285 = arith.constant 1 : index
    %c1_286 = arith.constant 1 : index
    %c0_287 = arith.constant 0 : index
    %152 = tpu.strided_load %arg18[%c0_284, %c1_285, %c1_286, %c0_287] {strides = array<i32: 1, 2, 2, 1>} : memref<1x10x10x4xf32, #tpu.memory_space<vmem>>, vector<1x4x4x4xf32>
    %153 = vector.shape_cast %152 : vector<1x4x4x4xf32> to vector<16x4xf32>
    %c0_288 = arith.constant 0 : index
    %c16_289 = arith.constant 16 : index
    %154 = vector.load %arg21[%c0_288, %c16_289] : memref<16x36xf32, #tpu.memory_space<vmem>>, vector<16x4xf32>
    tpu.vector_store %arg21[%c0_288, %c16_289], %153 {strides = array<i32>} : memref<16x36xf32, #tpu.memory_space<vmem>>, vector<16x4xf32>,
    %c0_290 = arith.constant 0 : index
    %c1_291 = arith.constant 1 : index
    %c2_292 = arith.constant 2 : index
    %c0_293 = arith.constant 0 : index
    %155 = tpu.strided_load %arg18[%c0_290, %c1_291, %c2_292, %c0_293] {strides = array<i32: 1, 2, 2, 1>} : memref<1x10x10x4xf32, #tpu.memory_space<vmem>>, vector<1x4x4x4xf32>
    %156 = vector.shape_cast %155 : vector<1x4x4x4xf32> to vector<16x4xf32>
    %c0_294 = arith.constant 0 : index
    %c20_295 = arith.constant 20 : index
    %157 = vector.load %arg21[%c0_294, %c20_295] : memref<16x36xf32, #tpu.memory_space<vmem>>, vector<16x4xf32>
    tpu.vector_store %arg21[%c0_294, %c20_295], %156 {strides = array<i32>} : memref<16x36xf32, #tpu.memory_space<vmem>>, vector<16x4xf32>,
    %c0_296 = arith.constant 0 : index
    %c2_297 = arith.constant 2 : index
    %c0_298 = arith.constant 0 : index
    %c0_299 = arith.constant 0 : index
    %158 = tpu.strided_load %arg18[%c0_296, %c2_297, %c0_298, %c0_299] {strides = array<i32: 1, 2, 2, 1>} : memref<1x10x10x4xf32, #tpu.memory_space<vmem>>, vector<1x4x4x4xf32>
    %159 = vector.shape_cast %158 : vector<1x4x4x4xf32> to vector<16x4xf32>
    %c0_300 = arith.constant 0 : index
    %c24_301 = arith.constant 24 : index
    %160 = vector.load %arg21[%c0_300, %c24_301] : memref<16x36xf32, #tpu.memory_space<vmem>>, vector<16x4xf32>
    tpu.vector_store %arg21[%c0_300, %c24_301], %159 {strides = array<i32>} : memref<16x36xf32, #tpu.memory_space<vmem>>, vector<16x4xf32>,
    %c0_302 = arith.constant 0 : index
    %c2_303 = arith.constant 2 : index
    %c1_304 = arith.constant 1 : index
    %c0_305 = arith.constant 0 : index
    %161 = tpu.strided_load %arg18[%c0_302, %c2_303, %c1_304, %c0_305] {strides = array<i32: 1, 2, 2, 1>} : memref<1x10x10x4xf32, #tpu.memory_space<vmem>>, vector<1x4x4x4xf32>
    %162 = vector.shape_cast %161 : vector<1x4x4x4xf32> to vector<16x4xf32>
    %c0_306 = arith.constant 0 : index
    %c28_307 = arith.constant 28 : index
    %163 = vector.load %arg21[%c0_306, %c28_307] : memref<16x36xf32, #tpu.memory_space<vmem>>, vector<16x4xf32>
    tpu.vector_store %arg21[%c0_306, %c28_307], %162 {strides = array<i32>} : memref<16x36xf32, #tpu.memory_space<vmem>>, vector<16x4xf32>,
    %c0_308 = arith.constant 0 : index
    %c2_309 = arith.constant 2 : index
    %c2_310 = arith.constant 2 : index
    %c0_311 = arith.constant 0 : index
    %164 = tpu.strided_load %arg18[%c0_308, %c2_309, %c2_310, %c0_311] {strides = array<i32: 1, 2, 2, 1>} : memref<1x10x10x4xf32, #tpu.memory_space<vmem>>, vector<1x4x4x4xf32>
    %165 = vector.shape_cast %164 : vector<1x4x4x4xf32> to vector<16x4xf32>
    %c0_312 = arith.constant 0 : index
    %c32_313 = arith.constant 32 : index
    %166 = vector.load %arg21[%c0_312, %c32_313] : memref<16x36xf32, #tpu.memory_space<vmem>>, vector<16x4xf32>
    tpu.vector_store %arg21[%c0_312, %c32_313], %165 {strides = array<i32>} : memref<16x36xf32, #tpu.memory_space<vmem>>, vector<16x4xf32>,
    %c0_314 = arith.constant 0 : index
    %c0_315 = arith.constant 0 : index
    %167 = vector.load %arg8[%c0_314, %c0_315] : memref<2x36xf32, #tpu.memory_space<vmem>>, vector<2x36xf32>
    %c0_316 = arith.constant 0 : index
    %c0_317 = arith.constant 0 : index
    %168 = vector.load %arg21[%c0_316, %c0_317] : memref<16x36xf32, #tpu.memory_space<vmem>>, vector<16x36xf32>
    %cst_318 = arith.constant dense<0.000000e+00> : vector<2x16xf32>
    %169 = tpu.matmul %167, %168, %cst_318 {dimension_numbers = #tpu.dot_dimension_numbers<[1], [1], [0], [0], [0, 0, 1, 0], [], []>} : vector<2x36xf32>, vector<16x36xf32>, vector<2x16xf32> -> vector<2x16xf32>
    %c0_319 = arith.constant 0 : index
    %c0_320 = arith.constant 0 : index
    %170 = vector.load %arg9[%c0_319, %c0_320] : memref<2x1xf32, #tpu.memory_space<vmem>>, vector<2x1xf32>
    %171 = vector.broadcast %170 : vector<2x1xf32> to vector<2x16xf32>
    %172 = arith.addf %169, %171 : vector<2x16xf32>
    %cst_321 = arith.constant 0.000000e+00 : f32
    %173 = vector.broadcast %cst_321 : f32 to vector<2x16xf32>
    %174 = arith.maximumf %172, %173 : vector<2x16xf32>
    %175 = vector.extract_strided_slice %174 {offsets = [0, 0], sizes = [1, 16], strides = [1, 1]} : vector<2x16xf32> to vector<1x16xf32>
    %c0_322 = arith.constant 0 : index
    %c0_323 = arith.constant 0 : index
    %176 = vector.load %arg22[%c0_322, %c0_323] : memref<1x32xf32, #tpu.memory_space<vmem>>, vector<1x16xf32>
    tpu.vector_store %arg22[%c0_322, %c0_323], %175 {strides = array<i32>} : memref<1x32xf32, #tpu.memory_space<vmem>>, vector<1x16xf32>,
    %177 = vector.extract_strided_slice %174 {offsets = [1, 0], sizes = [1, 16], strides = [1, 1]} : vector<2x16xf32> to vector<1x16xf32>
    %c0_324 = arith.constant 0 : index
    %c16_325 = arith.constant 16 : index
    %178 = vector.load %arg22[%c0_324, %c16_325] : memref<1x32xf32, #tpu.memory_space<vmem>>, vector<1x16xf32>
    tpu.vector_store %arg22[%c0_324, %c16_325], %177 {strides = array<i32>} : memref<1x32xf32, #tpu.memory_space<vmem>>, vector<1x16xf32>,
    %c0_326 = arith.constant 0 : index
    %c0_327 = arith.constant 0 : index
    %179 = vector.load %arg22[%c0_326, %c0_327] : memref<1x32xf32, #tpu.memory_space<vmem>>, vector<1x32xf32>
    %c0_328 = arith.constant 0 : index
    %c0_329 = arith.constant 0 : index
    %180 = vector.load %arg10[%c0_328, %c0_329] : memref<32x16xf32, #tpu.memory_space<vmem>>, vector<32x16xf32>
    %cst_330 = arith.constant dense<0.000000e+00> : vector<1x16xf32>
    %181 = tpu.matmul %179, %180, %cst_330 {dimension_numbers = #tpu.dot_dimension_numbers<[1], [0], [0], [1], [0, 0, 1, 1], [], []>} : vector<1x32xf32>, vector<32x16xf32>, vector<1x16xf32> -> vector<1x16xf32>
    %c0_331 = arith.constant 0 : index
    %c0_332 = arith.constant 0 : index
    %182 = vector.load %arg11[%c0_331, %c0_332] : memref<1x16xf32, #tpu.memory_space<vmem>>, vector<1x16xf32>
    %183 = arith.addf %181, %182 : vector<1x16xf32>
    %cst_333 = arith.constant 0.000000e+00 : f32
    %184 = vector.broadcast %cst_333 : f32 to vector<1x16xf32>
    %185 = arith.maximumf %183, %184 : vector<1x16xf32>
    %c0_334 = arith.constant 0 : index
    %c0_335 = arith.constant 0 : index
    %186 = vector.load %arg12[%c0_334, %c0_335] : memref<16x6xf32, #tpu.memory_space<vmem>>, vector<16x6xf32>
    %cst_336 = arith.constant dense<0.000000e+00> : vector<1x6xf32>
    %187 = tpu.matmul %185, %186, %cst_336 {dimension_numbers = #tpu.dot_dimension_numbers<[1], [0], [0], [1], [0, 0, 1, 1], [], []>} : vector<1x16xf32>, vector<16x6xf32>, vector<1x6xf32> -> vector<1x6xf32>
    %c0_337 = arith.constant 0 : index
    %c0_338 = arith.constant 0 : index
    %188 = vector.load %arg13[%c0_337, %c0_338] : memref<1x6xf32, #tpu.memory_space<vmem>>, vector<1x6xf32>
    %189 = arith.addf %187, %188 : vector<1x6xf32>
    %190 = arith.negf %189 : vector<1x6xf32>
    %191 = math.exp %190 : vector<1x6xf32>
    %cst_339 = arith.constant 1.000000e+00 : f32
    %192 = vector.broadcast %cst_339 : f32 to vector<1x6xf32>
    %193 = arith.addf %192, %191 : vector<1x6xf32>
    %194 = arith.divf %192, %193 : vector<1x6xf32>
    %c0_340 = arith.constant 0 : index
    %c0_341 = arith.constant 0 : index
    %c0_342 = arith.constant 0 : index
    %195 = vector.load %arg14[%c0_340, %c0_341, %c0_342] : memref<1x1x6xf32, #tpu.memory_space<vmem>>, vector<1x1x6xf32>
    %196 = vector.shape_cast %195 : vector<1x1x6xf32> to vector<1x6xf32>
    %197 = vector.shape_cast %194 : vector<1x6xf32> to vector<1x1x6xf32>
    tpu.vector_store %arg14[%c0_340, %c0_341, %c0_342], %197 {strides = array<i32>} : memref<1x1x6xf32, #tpu.memory_space<vmem>>, vector<1x1x6xf32>,
    return
  }
  func.func @transform_0(%arg0: i32) -> (i32, i32, i32, i32) {
    %c0_i32 = arith.constant 0 : i32
    %c0_i32_0 = arith.constant 0 : i32
    %c0_i32_1 = arith.constant 0 : i32
    %c0_i32_2 = arith.constant 0 : i32
    return %arg0, %c0_i32, %c0_i32_0, %c0_i32_1 : i32, i32, i32, i32
  }
  func.func @transform_1(%arg0: i32) -> (i32, i32) {
    %c0_i32 = arith.constant 0 : i32
    %c0_i32_0 = arith.constant 0 : i32
    %c0_i32_1 = arith.constant 0 : i32
    return %c0_i32, %c0_i32_0 : i32, i32
  }
  func.func @transform_2(%arg0: i32) -> (i32, i32) {
    %c0_i32 = arith.constant 0 : i32
    %c0_i32_0 = arith.constant 0 : i32
    %c0_i32_1 = arith.constant 0 : i32
    return %c0_i32, %c0_i32_0 : i32, i32
  }
  func.func @transform_3(%arg0: i32) -> (i32, i32) {
    %c0_i32 = arith.constant 0 : i32
    %c0_i32_0 = arith.constant 0 : i32
    %c0_i32_1 = arith.constant 0 : i32
    return %c0_i32, %c0_i32_0 : i32, i32
  }
  func.func @transform_4(%arg0: i32) -> (i32, i32) {
    %c0_i32 = arith.constant 0 : i32
    %c0_i32_0 = arith.constant 0 : i32
    %c0_i32_1 = arith.constant 0 : i32
    return %c0_i32, %c0_i32_0 : i32, i32
  }
  func.func @transform_5(%arg0: i32) -> (i32, i32) {
    %c0_i32 = arith.constant 0 : i32
    %c0_i32_0 = arith.constant 0 : i32
    %c0_i32_1 = arith.constant 0 : i32
    return %c0_i32, %c0_i32_0 : i32, i32
  }
  func.func @transform_6(%arg0: i32) -> (i32, i32) {
    %c0_i32 = arith.constant 0 : i32
    %c0_i32_0 = arith.constant 0 : i32
    %c0_i32_1 = arith.constant 0 : i32
    return %c0_i32, %c0_i32_0 : i32, i32
  }
  func.func @transform_7(%arg0: i32) -> (i32, i32) {
    %c0_i32 = arith.constant 0 : i32
    %c0_i32_0 = arith.constant 0 : i32
    %c0_i32_1 = arith.constant 0 : i32
    return %c0_i32, %c0_i32_0 : i32, i32
  }
  func.func @transform_8(%arg0: i32) -> (i32, i32) {
    %c0_i32 = arith.constant 0 : i32
    %c0_i32_0 = arith.constant 0 : i32
    %c0_i32_1 = arith.constant 0 : i32
    return %c0_i32, %c0_i32_0 : i32, i32
  }
  func.func @transform_9(%arg0: i32) -> (i32, i32) {
    %c0_i32 = arith.constant 0 : i32
    %c0_i32_0 = arith.constant 0 : i32
    %c0_i32_1 = arith.constant 0 : i32
    return %c0_i32, %c0_i32_0 : i32, i32
  }
  func.func @transform_10(%arg0: i32) -> (i32, i32) {
    %c0_i32 = arith.constant 0 : i32
    %c0_i32_0 = arith.constant 0 : i32
    %c0_i32_1 = arith.constant 0 : i32
    return %c0_i32, %c0_i32_0 : i32, i32
  }
  func.func @transform_11(%arg0: i32) -> (i32, i32) {
    %c0_i32 = arith.constant 0 : i32
    %c0_i32_0 = arith.constant 0 : i32
    %c0_i32_1 = arith.constant 0 : i32
    return %c0_i32, %c0_i32_0 : i32, i32
  }
  func.func @transform_12(%arg0: i32) -> (i32, i32) {
    %c0_i32 = arith.constant 0 : i32
    %c0_i32_0 = arith.constant 0 : i32
    %c0_i32_1 = arith.constant 0 : i32
    return %c0_i32, %c0_i32_0 : i32, i32
  }
  func.func @transform_13(%arg0: i32) -> (i32, i32, i32) {
    %c0_i32 = arith.constant 0 : i32
    %c0_i32_0 = arith.constant 0 : i32
    %c0_i32_1 = arith.constant 0 : i32
    return %arg0, %c0_i32, %c0_i32_0 : i32, i32, i32
  }
}

</mosaic_0001>

<bundles_post_ra>
// kernel: supervised_forward.1
= control target key start
LH: loop header
LB: loop body
LE: loop exit
PB: predicated region body
PF: predicated region fallthrough
CT: control target
= control target key end

     0   :  { %s6697_s0 = inlined_call_operand.vmem [shape: f32[2,16,16,4], index: 0, kind: input, shape index: {}]   ;;  %s6698_s1 = inlined_call_operand.vmem [shape: f32[8,36], index: 1, kind: input, shape index: {}]   ;;  %s6699_s2 = inlined_call_operand.vmem [shape: f32[8,1], index: 2, kind: input, shape index: {}]   ;;  %s6700_s3 = inlined_call_operand.vmem [shape: f32[8,72], index: 3, kind: input, shape index: {}]   ;;  %s6701_s4 = inlined_call_operand.vmem [shape: f32[8,1], index: 4, kind: input, shape index: {}]   ;;  %s6702_s5 = inlined_call_operand.vmem [shape: f32[4,72], index: 5, kind: input, shape index: {}]   ;;  %s6703_s6 = inlined_call_operand.vmem [shape: f32[4,1], index: 6, kind: input, shape index: {}]   ;;  %s6704_s7 = inlined_call_operand.vmem [shape: f32[2,36], index: 7, kind: input, shape index: {}]   ;;  %s6705_s8 = inlined_call_operand.vmem [shape: f32[2,1], index: 8, kind: input, shape index: {}]   ;;  %s6706_s9 = inlined_call_operand.vmem [shape: f32[32,16], index: 9, kind: input, shape index: {}]   ;;  %s6707_s10 = inlined_call_operand.vmem [shape: f32[1,16], index: 10, kind: input, shape index: {}]   ;;  %s6708_s11 = inlined_call_operand.vmem [shape: f32[16,6], index: 11, kind: input, shape index: {}]   ;;  %s6709_s12 = inlined_call_operand.vmem [shape: f32[1,6], index: 12, kind: input, shape index: {}]   ;;  %s6710_s13 = inlined_call_operand.hbm [shape: f32[2,1,6], index: 13, kind: output, shape index: {}]  }
   0x1   :  { %6741 = sst [smem:[#allocation15_spill]] %s6697_s0 }
   0x2   :  { %6742 = sst [smem:[#allocation16_spill]] %s6698_s1 }
   0x3   :  { %6743 = sst [smem:[#allocation17_spill]] %s6699_s2 }
   0x4   :  { %18 = vsyncpa [#allocation11], 0 }
   0x5   :  { %20 = vsyncpa [#allocation11 + $0x1], 0  ;;  %s4839_s25 = smov 0   ;;  %s4841_s26 = smov 0  }
   0x6   :  { %s4843_s27 = smov 0   ;;  %s4845_s28 = smov 0  }
   0x7 LB: > { %6744 = sst [smem:[#allocation13_spill]] %s4746_s27  ;;  %s4860_s29 = sadd.s32 4294967295, %s4750_s28   ;;  %s4750_s28 = sphi %s4845_s28, %s6783_s28   ;;  %s4746_s27 = sphi %s4843_s27, %s6780_s27   ;;  %s4742_s26 = sphi %s4841_s26, %s6782_s26   ;;  %s4738_s25 = sphi %s4839_s25, %s6781_s25  }
   0x8   : > { %s4342_s30 = sadd.s32 4294967294, %s4750_s28   ;;  %s4864_s14 = sadd.s32 1, %s4750_s28  }
   0x9   : > { %s311_s15 = sadd.s32 1, %s4746_s27  ;;  %s308_s16 = ssub.s32 %s4750_s28, %s4864_s14 }
   0xa   : > { %p321_p0 = scmp.ne.s32.totalorder %s4746_s27, %s4742_s26  ;;  %p309_p1 = scmp.eq.s32.totalorder %s308_s16, 0 }
   0xb   : > { %p322_p2 = scmp.eq.s32.totalorder %s4860_s29, 1  ;;  %p327_p3 = scmp.ne.s32.totalorder %s4742_s26, %s4738_s25 }
   0xc   : > { %p328_p4 = scmp.eq.s32.totalorder %s4342_s30, 1  ;;  %p4345_p7 = scmp.ge.s32.totalorder %s4750_s28, 1 }
   0xd   : > { %s4875_s17 = scalar_select %p309_p1, %s4746_s27, %s311_s15  }
   0xe   : > { %p4877_p5 = por %p322_p2, %p321_p0  ;;  %p4881_p6 = por %p328_p4, %p327_p3 }
   0xf   : > { %6745 = sst [smem:[#allocation14_spill]] %s4875_s17  ;;  %p390_p8 = scmp.lt.s32.totalorder %s4750_s28, 3 }
  0x11   : > { %p391_p9 = pnand %p4345_p7, %p390_p8 }
  0x12   : > { %vm438_vm0 = vcmask (!%p391_p9), 31744   ;;  %vm447_vm1 = vcmask (!%p391_p9), 24576   ;;  %vm441_vm2 = vcmask (!%p391_p9), 25600   ;;  %v4752_v0 = vmov (!%p391_p9), 0.0   ;;  %p433_p10 = scmp.lt.s32.totalorder (!%p391_p9), %s4860_s29, 1  ;;  %s6748_s0 = sld [smem:[#allocation15_spill]] (!%p391_p9) }
  0x13   : > { %394 = sbr.rel (%p391_p9) target bundleno = 3313 (0xcf1), region = 72  ;;  %439 = vst.msk [vmem:[#allocation2] sm:$0xff] (!%p391_p9), %vm438_vm0, %v4752_v0  ;;  %440 = vst.msk [vmem:[#allocation2 + $0x8] sm:$0xff] (!%p391_p9), %vm438_vm0, %v4752_v0  ;;  %s6723_s30 = smov (!%p391_p9), 4   ;;  %vm773_vm3 = vcmask (!%p391_p9), 64544   ;;  %vm966_vm4 = vcmask (!%p391_p9), 97344  }
  0x14   : > { %444 = vst.msk [vmem:[#allocation2 + $0x198] sm:$0xff] (!%p391_p9), %vm438_vm0, %v4752_v0  ;;  %445 = vst.msk [vmem:[#allocation2 + $0x1a0] sm:$0xff] (!%p391_p9), %vm438_vm0, %v4752_v0  ;;  %s6715_s15 = smov (!%p391_p9), 8   ;;  %s6721_s16 = smov (!%p391_p9), 12   ;;  %vm6740_vm5 = vcmask (!%p391_p9), 130144   ;;  %vm6739_vm6 = vcmask (!%p391_p9), 162944  }
  0x15   : > { %449 = vst.msk [vmem:[#allocation2 + $0x18] sm:$0x1] (!%p391_p9), %vm447_vm1, %v4752_v0  ;;  %450 = vst.msk [vmem:[#allocation2 + $0x30] sm:$0x1] (!%p391_p9), %vm447_vm1, %v4752_v0  ;;  %s6711_s22 = smov (!%p391_p9), 24   ;;  %s6717_s23 = smov (!%p391_p9), 28  }
  0x16   : > { %451 = vst.msk [vmem:[#allocation2 + $0x48] sm:$0x1] (!%p391_p9), %vm447_vm1, %v4752_v0  ;;  %452 = vst.msk [vmem:[#allocation2 + $0x60] sm:$0x1] (!%p391_p9), %vm447_vm1, %v4752_v0  ;;  %vm6738_vm7 = vcmask (!%p391_p9), 195744   ;;  %vm6737_vm8 = vcmask (!%p391_p9), 228544  }
  0x17   : > { %453 = vst.msk [vmem:[#allocation2 + $0x78] sm:$0x1] (!%p391_p9), %vm447_vm1, %v4752_v0  ;;  %454 = vst.msk [vmem:[#allocation2 + $0x90] sm:$0x1] (!%p391_p9), %vm447_vm1, %v4752_v0  ;;  %vm6736_vm9 = vcmask (!%p391_p9), 261344   ;;  %vm6735_vm10 = vcmask (!%p391_p9), 294144  }
  0x18   : > { %455 = vst.msk [vmem:[#allocation2 + $0xa8] sm:$0x1] (!%p391_p9), %vm447_vm1, %v4752_v0  ;;  %456 = vst.msk [vmem:[#allocation2 + $0xc0] sm:$0x1] (!%p391_p9), %vm447_vm1, %v4752_v0  ;;  %vm6734_vm11 = vcmask (!%p391_p9), 293888   ;;  %s6757_s1 = sld [smem:[#allocation16_spill]] (!%p391_p9) }
  0x19   : > { %457 = vst.msk [vmem:[#allocation2 + $0xd8] sm:$0x1] (!%p391_p9), %vm447_vm1, %v4752_v0  ;;  %458 = vst.msk [vmem:[#allocation2 + $0xf0] sm:$0x1] (!%p391_p9), %vm447_vm1, %v4752_v0  ;;  %s6758_s2 = sld [smem:[#allocation17_spill]] (!%p391_p9)  ;;  %vm2370_vm13 = vcmask (!%p391_p9), 64512  }
  0x1a   : > { %459 = vst.msk [vmem:[#allocation2 + $0x108] sm:$0x1] %vm447_vm1, %v4752_v0  ;;  %460 = vst.msk [vmem:[#allocation2 + $0x120] sm:$0x1] %vm447_vm1, %v4752_v0  ;;  %s434_s20 = scalar_select %p433_p10, %s4860_s29, 1  ;;  %v613_v4 = vld [vmem:[#allocation2 + $0x1] sm:$0xff] }
  0x1b   : > { %461 = vst.msk [vmem:[#allocation2 + $0x138] sm:$0x1] %vm447_vm1, %v4752_v0  ;;  %462 = vst.msk [vmem:[#allocation2 + $0x150] sm:$0x1] %vm447_vm1, %v4752_v0  ;;  %v806_v5 = vld [vmem:[#allocation2 + $0x2] sm:$0xff]  ;;  %677 = vrot.lane.b32.xlu1 %v613_v4, %s6723_s30  ;;  %vm2379_vm14 = vcmask 57344  }
  0x1c   : > { %463 = vst.msk [vmem:[#allocation2 + $0x168] sm:$0x1] %vm447_vm1, %v4752_v0  ;;  %464 = vst.msk [vmem:[#allocation2 + $0x180] sm:$0x1] %vm447_vm1, %v4752_v0  ;;  %s4408_s21 = sshll.u32 %s434_s20, 8  ;;  %870 = vrot.lane.b32.xlu0 %v806_v5, %s6715_s15  ;;  %v550_v19 = vld [vmem:[#allocation2 + $0x8] sm:$0xff] }
  0x1d   : > { %467 = vst.msk [vmem:[#allocation2 + $0x29] sm:$0x1] %vm447_vm1, %v4752_v0  ;;  %468 = vst.msk [vmem:[#allocation2 + $0x41] sm:$0x1] %vm447_vm1, %v4752_v0  ;;  %s4998_s24 = scalar_lea.vmem %s6748_s0, %s4408_s21  ;;  %s6713_s20 = smov 16   ;;  %vm2373_vm15 = vcmask 58368  }
  0x1e   : > { %469 = vst.msk [vmem:[#allocation2 + $0x59] sm:$0x1] %vm447_vm1, %v4752_v0  ;;  %470 = vst.msk [vmem:[#allocation2 + $0x71] sm:$0x1] %vm447_vm1, %v4752_v0  ;;  %v498_v1 = vld [vmem:[%s4998_s24 + $0x70] sm:$0xff]  ;;  %v499_v2 = vld [vmem:[%s4998_s24 + $0x78] sm:$0xff] }
  0x1f   : > { %471 = vst.msk [vmem:[#allocation2 + $0x89] sm:$0x1] %vm447_vm1, %v4752_v0  ;;  %472 = vst.msk [vmem:[#allocation2 + $0xa1] sm:$0x1] %vm447_vm1, %v4752_v0  ;;  %v500_v3 = vld [vmem:[%s4998_s24 + $0x80] sm:$0xff]  ;;  %v501_v7 = vld [vmem:[%s4998_s24 + $0x88] sm:$0xff] }
  0x20   : > { %473 = vst.msk [vmem:[#allocation2 + $0xb9] sm:$0x1] %vm447_vm1, %v4752_v0  ;;  %474 = vst.msk [vmem:[#allocation2 + $0xd1] sm:$0x1] %vm447_vm1, %v4752_v0  ;;  %v484_v8 = vld [vmem:[%s4998_s24] sm:$0xff]  ;;  %v485_v9 = vld [vmem:[%s4998_s24 + $0x8] sm:$0xff] }
  0x21   : > { %475 = vst.msk [vmem:[#allocation2 + $0xe9] sm:$0x1] %vm447_vm1, %v4752_v0  ;;  %476 = vst.msk [vmem:[#allocation2 + $0x101] sm:$0x1] %vm447_vm1, %v4752_v0  ;;  %v502_v10 = vld [vmem:[%s4998_s24 + $0x90] sm:$0xff]  ;;  %v503_v11 = vld [vmem:[%s4998_s24 + $0x98] sm:$0xff] }
  0x22   : > { %477 = vst.msk [vmem:[#allocation2 + $0x119] sm:$0x1] %vm447_vm1, %v4752_v0  ;;  %478 = vst.msk [vmem:[#allocation2 + $0x131] sm:$0x1] %vm447_vm1, %v4752_v0  ;;  %v486_v12 = vld [vmem:[%s4998_s24 + $0x10] sm:$0xff]  ;;  %v487_v13 = vld [vmem:[%s4998_s24 + $0x18] sm:$0xff] }
  0x23   : > { %479 = vst.msk [vmem:[#allocation2 + $0x149] sm:$0x1] %vm447_vm1, %v4752_v0  ;;  %480 = vst.msk [vmem:[#allocation2 + $0x161] sm:$0x1] %vm447_vm1, %v4752_v0  ;;  %v504_v14 = vld [vmem:[%s4998_s24 + $0xa0] sm:$0xff]  ;;  %v505_v15 = vld [vmem:[%s4998_s24 + $0xa8] sm:$0xff] }
  0x24   : > { %481 = vst.msk [vmem:[#allocation2 + $0x179] sm:$0x1] %vm447_vm1, %v4752_v0  ;;  %482 = vst.msk [vmem:[#allocation2 + $0x191] sm:$0x1] %vm447_vm1, %v4752_v0  ;;  %v488_v16 = vld [vmem:[%s4998_s24 + $0x20] sm:$0xff]  ;;  %v489_v17 = vld [vmem:[%s4998_s24 + $0x28] sm:$0xff] }
  0x25   : > { %3685 = vst.msk [vmem:[#allocation5] sm:$0xff] %vm438_vm0, %v4752_v0  ;;  %531 = vst.msk [vmem:[#allocation2 + $0xc1] sm:$0xff] %vm438_vm0, %v498_v1  ;;  %s6719_s21 = smov 20   ;;  %v506_v46 = vld [vmem:[%s4998_s24 + $0xb0] sm:$0xff]  ;;  %v507_v47 = vld [vmem:[%s4998_s24 + $0xb8] sm:$0xff]  ;;  %s6725_s0 = smov 40  }
  0x26   : > { %3691 = vst.msk [vmem:[#allocation5 + $0x10] sm:$0x1] %vm447_vm1, %v4752_v0  ;;  %3692 = vst.msk [vmem:[#allocation5 + $0x20] sm:$0x1] %vm447_vm1, %v4752_v0  ;;  %v490_v49 = vld [vmem:[%s4998_s24 + $0x30] sm:$0xff]  ;;  %v491_v50 = vld [vmem:[%s4998_s24 + $0x38] sm:$0xff] }
  0x27   : > { %3693 = vst.msk [vmem:[#allocation5 + $0x30] sm:$0x1] %vm447_vm1, %v4752_v0  ;;  %3694 = vst.msk [vmem:[#allocation5 + $0x40] sm:$0x1] %vm447_vm1, %v4752_v0  ;;  %v508_v63 = vld [vmem:[%s4998_s24 + $0xc0] sm:$0xff]  ;;  %v509_v1 = vld [vmem:[%s4998_s24 + $0xc8] sm:$0xff] }
  0x28   : > { %3695 = vst.msk [vmem:[#allocation5 + $0x50] sm:$0x1] %vm447_vm1, %v4752_v0  ;;  %3696 = vst.msk [vmem:[#allocation5 + $0x60] sm:$0x1] %vm447_vm1, %v4752_v0  ;;  %s6765_s27 = smov 4  }
  0x29   : > { %3697 = vst.msk [vmem:[#allocation5 + $0x70] sm:$0x1] %vm447_vm1, %v4752_v0  ;;  %3698 = vst.msk [vmem:[#allocation5 + $0x80] sm:$0x1] %vm447_vm1, %v4752_v0 }
  0x2a   : > { %442 = vst.msk [vmem:[#allocation2 + $0x10] sm:$0x3] %vm441_vm2, %v4752_v0  ;;  %446 = vst.msk [vmem:[#allocation2 + $0x1a8] sm:$0x3] %vm441_vm2, %v4752_v0 }
  0x2b   : > { %3686 = vst.msk [vmem:[#allocation5 + $0x8] sm:$0x3] %vm441_vm2, %v4752_v0  ;;  %vm5369_vm12 = vmpackc.low %vm6734_vm11, %vm6734_vm11  ;;  %vm2641_vm2 = vcmask 195712  }
  0x2c   : > { %448 = vst.msk [vmem:[#allocation2] sm:$0x1] %vm447_vm1, %v4752_v0  ;;  %465 = vst.msk [vmem:[#allocation2 + $0x198] sm:$0x1] %vm447_vm1, %v4752_v0  ;;  %v629_v21 = vld [vmem:[#allocation2 + $0xc1] sm:$0xff] }
  0x2d   : > { %3690 = vst.msk [vmem:[#allocation5] sm:$0x1] %vm447_vm1, %v4752_v0  ;;  %466 = vst.msk [vmem:[#allocation2 + $0x11] sm:$0x1] %vm447_vm1, %v4752_v0  ;;  %709 = vrot.lane.b32.xlu0 %v629_v21, %s6723_s30  ;;  %v565_v37 = vld [vmem:[#allocation2 + $0xc0] sm:$0xff] }
  0x2e   : > { %483 = vst.msk [vmem:[#allocation2 + $0x1a9] sm:$0x1] %vm447_vm1, %v4752_v0  ;;  %vm2584_vm1 = vcmask 130112  }
  0x2f   : > { %532 = vst.msk [vmem:[#allocation2 + $0xc9] sm:$0xff] %vm438_vm0, %v499_v2  ;;  %533 = vst.msk [vmem:[#allocation2 + $0xd9] sm:$0xff] %vm438_vm0, %v500_v3  ;;  %v492_v2 = vld [vmem:[%s4998_s24 + $0x40] sm:$0xff]  ;;  %v493_v3 = vld [vmem:[%s4998_s24 + $0x48] sm:$0xff] }
  0x30   : > { %534 = vst.msk [vmem:[#allocation2 + $0xe1] sm:$0xff] %vm438_vm0, %v501_v7  ;;  %517 = vst.msk [vmem:[#allocation2 + $0x19] sm:$0xff] %vm438_vm0, %v484_v8 }
  0x31   : > { %v614_v6 = vld [vmem:[#allocation2 + $0x9] sm:$0xff]  ;;  %518 = vst.msk [vmem:[#allocation2 + $0x21] sm:$0xff] %vm438_vm0, %v485_v9  ;;  %535 = vst.msk [vmem:[#allocation2 + $0xf1] sm:$0xff] %vm438_vm0, %v502_v10 }
  0x32   : > { %536 = vst.msk [vmem:[#allocation2 + $0xf9] sm:$0xff] %vm438_vm0, %v503_v11  ;;  %519 = vst.msk [vmem:[#allocation2 + $0x31] sm:$0xff] %vm438_vm0, %v486_v12  ;;  %679 = vrot.lane.b32.xlu1 %v614_v6, %s6723_s30 }
  0x33   : > { %520 = vst.msk [vmem:[#allocation2 + $0x39] sm:$0xff] %vm438_vm0, %v487_v13  ;;  %537 = vst.msk [vmem:[#allocation2 + $0x109] sm:$0xff] %vm438_vm0, %v504_v14  ;;  %v549_v18 = vld [vmem:[#allocation2] sm:$0xff] }
  0x34   : > { %538 = vst.msk [vmem:[#allocation2 + $0x111] sm:$0xff] %vm438_vm0, %v505_v15  ;;  %521 = vst.msk [vmem:[#allocation2 + $0x49] sm:$0xff] %vm438_vm0, %v488_v16  ;;  %v807_v20 = vld [vmem:[#allocation2 + $0xa] sm:$0xff] }
  0x35   : > { %522 = vst.msk [vmem:[#allocation2 + $0x51] sm:$0xff] %vm438_vm0, %v489_v17  ;;  %581 = vst.msk [vmem:[#allocation6] sm:$0xff] %vm438_vm0, %v549_v18 }
  0x36   : > { %582 = vst.msk [vmem:[#allocation6 + $0x8] sm:$0xff] %vm438_vm0, %v550_v19  ;;  %v1015_v22 = vld [vmem:[#allocation2 + $0xd8] sm:$0xff]  ;;  %872 = vrot.lane.b32.xlu1 %v807_v20, %s6715_s15  ;;  %v630_v23 = vld [vmem:[#allocation2 + $0xc9] sm:$0xff]  ;;  %597 = vst.msk [vmem:[#allocation6 + $0x80] sm:$0xff] %vm438_vm0, %v565_v37 }
  0x37   : > { %v1016_v24 = vld [vmem:[#allocation2 + $0xe0] sm:$0xff]  ;;  %v999_v25 = vld [vmem:[#allocation2 + $0x18] sm:$0xff]  ;;  %599 = vst.msk [vmem:[#allocation6 + $0x90] sm:$0xff] %vm438_vm0, %v1015_v22  ;;  %v823_v26 = vld [vmem:[#allocation2 + $0xca] sm:$0xff]  ;;  %711 = vrot.lane.b32.xlu0 %v630_v23, %s6723_s30 }
  0x38   : > { %v1000_v27 = vld [vmem:[#allocation2 + $0x20] sm:$0xff]  ;;  %600 = vst.msk [vmem:[#allocation6 + $0x98] sm:$0xff] %vm438_vm0, %v1016_v24  ;;  %583 = vst.msk [vmem:[#allocation6 + $0x10] sm:$0xff] %vm438_vm0, %v999_v25  ;;  %v5042_v29 = vld [vmem:[#allocation2 + $0xf0] sm:$0xff] }
  0x39   : > { %584 = vst.msk [vmem:[#allocation6 + $0x18] sm:$0xff] %vm438_vm0, %v1000_v27  ;;  %v5040_v28 = vld [vmem:[#allocation2 + $0xf8] sm:$0xff]  ;;  %v822_v30 = vld [vmem:[#allocation2 + $0xc2] sm:$0xff]  ;;  %v5047_v32 = vld [vmem:[#allocation2 + $0x30] sm:$0xff] }
  0x3a   : > { %904 = vrot.lane.b32.xlu1 %v823_v26, %s6715_s15  ;;  %v5045_v31 = vld [vmem:[#allocation2 + $0x38] sm:$0xff]  ;;  %602 = vst.msk [vmem:[#allocation6 + $0xa8] sm:$0xff] %vm438_vm0, %v5040_v28  ;;  %601 = vst.msk [vmem:[#allocation6 + $0xa0] sm:$0xff] %vm438_vm0, %v5042_v29  ;;  %v5060_v34 = vld [vmem:[#allocation2 + $0x108] sm:$0xff] }
  0x3b   : > { %586 = vst.msk [vmem:[#allocation6 + $0x28] sm:$0xff] %vm438_vm0, %v5045_v31  ;;  %585 = vst.msk [vmem:[#allocation6 + $0x20] sm:$0xff] %vm438_vm0, %v5047_v32  ;;  %902 = vrot.lane.b32.xlu0 %v822_v30, %s6715_s15  ;;  %v5058_v33 = vld [vmem:[#allocation2 + $0x110] sm:$0xff]  ;;  %v5065_v36 = vld [vmem:[#allocation2 + $0x48] sm:$0xff] }
  0x3c   : > { %v5063_v35 = vld [vmem:[#allocation2 + $0x50] sm:$0xff]  ;;  %604 = vst.msk [vmem:[#allocation6 + $0xb8] sm:$0xff] %vm438_vm0, %v5058_v33  ;;  %603 = vst.msk [vmem:[#allocation6 + $0xb0] sm:$0xff] %vm438_vm0, %v5060_v34  ;;  %v566_v38 = vld [vmem:[#allocation2 + $0xc8] sm:$0xff] }
  0x3d   : > { %588 = vst.msk [vmem:[#allocation6 + $0x38] sm:$0xff] %vm438_vm0, %v5063_v35  ;;  %587 = vst.msk [vmem:[#allocation6 + $0x30] sm:$0xff] %vm438_vm0, %v5065_v36  ;;  %v1209_v39 = vld [vmem:[#allocation2 + $0xe1] sm:$0xff]  ;;  %v1208_v40 = vld [vmem:[#allocation2 + $0xd9] sm:$0xff] }
  0x3e   : > { %1097 = vrot.lane.b32.xlu1 %v1016_v24, %s6721_s16  ;;  %598 = vst.msk [vmem:[#allocation6 + $0x88] sm:$0xff] %vm438_vm0, %v566_v38  ;;  %v1193_v41 = vld [vmem:[#allocation2 + $0x21] sm:$0xff]  ;;  %v1192_v42 = vld [vmem:[#allocation2 + $0x19] sm:$0xff]  ;;  %539 = vst.msk [vmem:[#allocation2 + $0x121] sm:$0xff] %vm438_vm0, %v506_v46 }
  0x3f   : > { %1095 = vrot.lane.b32.xlu0 %v1015_v22, %s6721_s16  ;;  %v1402_v43 = vld [vmem:[#allocation2 + $0xe2] sm:$0xff]  ;;  %v1401_v44 = vld [vmem:[#allocation2 + $0xda] sm:$0xff]  ;;  %540 = vst.msk [vmem:[#allocation2 + $0x129] sm:$0xff] %vm438_vm0, %v507_v47  ;;  %523 = vst.msk [vmem:[#allocation2 + $0x61] sm:$0xff] %vm438_vm0, %v490_v49 }
  0x40   : > { %v1386_v45 = vld [vmem:[#allocation2 + $0x22] sm:$0xff]  ;;  %v1385_v48 = vld [vmem:[#allocation2 + $0x1a] sm:$0xff]  ;;  %524 = vst.msk [vmem:[#allocation2 + $0x69] sm:$0xff] %vm438_vm0, %v491_v50  ;;  %v5124_v56 = vld [vmem:[#allocation2 + $0xf1] sm:$0xff] }
  0x41   : > { %v5110_v53 = vld [vmem:[#allocation2 + $0xf9] sm:$0xff]  ;;  %v5132_v58 = vld [vmem:[#allocation2 + $0x31] sm:$0xff]  ;;  %541 = vst.msk [vmem:[#allocation2 + $0x139] sm:$0xff] %vm438_vm0, %v508_v63  ;;  %542 = vst.msk [vmem:[#allocation2 + $0x141] sm:$0xff] %vm438_vm0, %v509_v1 }
  0x42   : > { %1065 = vrot.lane.b32.xlu1 %v1000_v27, %s6721_s16  ;;  %v5126_v57 = vld [vmem:[#allocation2 + $0x39] sm:$0xff]  ;;  %525 = vst.msk [vmem:[#allocation2 + $0x79] sm:$0xff] %vm438_vm0, %v492_v2  ;;  %526 = vst.msk [vmem:[#allocation2 + $0x81] sm:$0xff] %vm438_vm0, %v493_v3  ;;  %v5206_v6 = vld [vmem:[#allocation2 + $0x111] sm:$0xff] }
  0x43   : > { %1063 = vrot.lane.b32.xlu0 %v999_v25, %s6721_s16  ;;  %v5134_v59 = vld [vmem:[#allocation2 + $0xfa] sm:$0xff]  ;;  %v5140_v60 = vld [vmem:[#allocation2 + $0xf2] sm:$0xff]  ;;  %v5220_v9 = vld [vmem:[#allocation2 + $0x109] sm:$0xff]  ;;  %2371 = vst.msk [vmem:[#allocation3] sm:$0xff] %vm2370_vm13, %v4752_v0 }
  0x44   : > { %v5145_v61 = vld [vmem:[#allocation2 + $0x3a] sm:$0xff]  ;;  %v5150_v62 = vld [vmem:[#allocation2 + $0x32] sm:$0xff]  ;;  %v5230_v13 = vld [vmem:[#allocation2 + $0x49] sm:$0xff]  ;;  %2372 = vst.msk [vmem:[#allocation3 + $0x8] sm:$0xff] %vm2370_vm13, %v4752_v0 }
  0x45   : > { %v5100_v52 = vld [vmem:[#allocation2 + $0x120] sm:$0xff]  ;;  %v5222_v10 = vld [vmem:[#allocation2 + $0x51] sm:$0xff]  ;;  %3105 = vst.msk [vmem:[#allocation4] sm:$0xff] %vm2370_vm13, %v4752_v0  ;;  %3108 = vst.msk [vmem:[#allocation4 + $0x90] sm:$0xff] %vm2370_vm13, %v4752_v0 }
  0x46   : > { %1290 = vrot.lane.b32.xlu1 %v1209_v39, %s6713_s20  ;;  %v5098_v51 = vld [vmem:[#allocation2 + $0x128] sm:$0xff]  ;;  %605 = vst.msk [vmem:[#allocation6 + $0xc0] sm:$0xff] %vm438_vm0, %v5100_v52  ;;  %v5114_v55 = vld [vmem:[#allocation2 + $0x60] sm:$0xff]  ;;  %v5232_v14 = vld [vmem:[#allocation2 + $0x112] sm:$0xff] }
  0x47   : > { %1288 = vrot.lane.b32.xlu0 %v1208_v40, %s6713_s20  ;;  %606 = vst.msk [vmem:[#allocation6 + $0xc8] sm:$0xff] %vm438_vm0, %v5098_v51  ;;  %v5112_v54 = vld [vmem:[#allocation2 + $0x68] sm:$0xff]  ;;  %589 = vst.msk [vmem:[#allocation6 + $0x40] sm:$0xff] %vm438_vm0, %v5114_v55  ;;  %v5247_v20 = vld [vmem:[#allocation2 + $0x52] sm:$0xff] }
  0x48   : > { %590 = vst.msk [vmem:[#allocation6 + $0x48] sm:$0xff] %vm438_vm0, %v5112_v54  ;;  %v5194_v4 = vld [vmem:[#allocation2 + $0x140] sm:$0xff]  ;;  %v5196_v5 = vld [vmem:[#allocation2 + $0x138] sm:$0xff]  ;;  %v5239_v16 = vld [vmem:[#allocation2 + $0x10a] sm:$0xff] }
  0x49   : > { %608 = vst.msk [vmem:[#allocation6 + $0xd8] sm:$0xff] %vm438_vm0, %v5194_v4  ;;  %607 = vst.msk [vmem:[#allocation6 + $0xd0] sm:$0xff] %vm438_vm0, %v5196_v5  ;;  %v5208_v7 = vld [vmem:[#allocation2 + $0x80] sm:$0xff]  ;;  %v5210_v8 = vld [vmem:[#allocation2 + $0x78] sm:$0xff] }
  0x4a   : > { %1258 = vrot.lane.b32.xlu1 %v1193_v41, %s6713_s20  ;;  %592 = vst.msk [vmem:[#allocation6 + $0x58] sm:$0xff] %vm438_vm0, %v5208_v7  ;;  %591 = vst.msk [vmem:[#allocation6 + $0x50] sm:$0xff] %vm438_vm0, %v5210_v8  ;;  %v5255_v22 = vld [vmem:[#allocation2 + $0x4a] sm:$0xff]  ;;  %v495_v46 = vld [vmem:[%s4998_s24 + $0x58] sm:$0xff] }
  0x4b   : > { %1256 = vrot.lane.b32.xlu0 %v1192_v42, %s6713_s20  ;;  %528 = vst.msk [vmem:[#allocation2 + $0x99] sm:$0xff] %vm438_vm0, %v495_v46  ;;  %v5365_v2 = vld [vmem:[#allocation2 + $0x61] sm:$0xff] }
  0x4c   : > { %2381 = vst.msk [vmem:[#allocation3 + $0x18] sm:$0x1] %vm2379_vm14, %v4752_v0  ;;  %2380 = vst.msk [vmem:[#allocation3] sm:$0x1] %vm2379_vm14, %v4752_v0 }
  0x4d   : > { %2382 = vst.msk [vmem:[#allocation3 + $0x30] sm:$0x1] %vm2379_vm14, %v4752_v0  ;;  %2383 = vst.msk [vmem:[#allocation3 + $0x48] sm:$0x1] %vm2379_vm14, %v4752_v0 }
  0x4e   : > { %1483 = vrot.lane.b32.xlu1 %v1402_v43, %s6719_s21  ;;  %2384 = vst.msk [vmem:[#allocation3 + $0x60] sm:$0x1] %vm2379_vm14, %v4752_v0  ;;  %2385 = vst.msk [vmem:[#allocation3 + $0x78] sm:$0x1] %vm2379_vm14, %v4752_v0 }
  0x4f   : > { %1481 = vrot.lane.b32.xlu0 %v1401_v44, %s6719_s21  ;;  %2386 = vst.msk [vmem:[#allocation3 + $0x90] sm:$0x1] %vm2379_vm14, %v4752_v0  ;;  %2387 = vst.msk [vmem:[#allocation3 + $0xa8] sm:$0x1] %vm2379_vm14, %v4752_v0 }
  0x50   : > { %2388 = vst.msk [vmem:[#allocation3 + $0xc0] sm:$0x1] %vm2379_vm14, %v4752_v0  ;;  %2389 = vst.msk [vmem:[#allocation3 + $0xd8] sm:$0x1] %vm2379_vm14, %v4752_v0 }
  0x51   : > { %2390 = vst.msk [vmem:[#allocation3 + $0xf0] sm:$0x1] %vm2379_vm14, %v4752_v0  ;;  %2391 = vst.msk [vmem:[#allocation3 + $0x108] sm:$0x1] %vm2379_vm14, %v4752_v0 }
  0x52   : > { %1451 = vrot.lane.b32.xlu1 %v1386_v45, %s6719_s21  ;;  %2392 = vst.msk [vmem:[#allocation3 + $0x120] sm:$0x1] %vm2379_vm14, %v4752_v0  ;;  %2393 = vst.msk [vmem:[#allocation3 + $0x138] sm:$0x1] %vm2379_vm14, %v4752_v0 }
  0x53   : > { %1449 = vrot.lane.b32.xlu0 %v1385_v48, %s6719_s21  ;;  %2394 = vst.msk [vmem:[#allocation3 + $0x150] sm:$0x1] %vm2379_vm14, %v4752_v0  ;;  %2395 = vst.msk [vmem:[#allocation3 + $0x168] sm:$0x1] %vm2379_vm14, %v4752_v0 }
  0x54   : > { %2396 = vst.msk [vmem:[#allocation3 + $0x180] sm:$0x1] %vm2379_vm14, %v4752_v0  ;;  %3110 = vst.msk [vmem:[#allocation4] sm:$0x1] %vm2379_vm14, %v4752_v0 }
  0x55   : > { %3111 = vst.msk [vmem:[#allocation4 + $0x10] sm:$0x1] %vm2379_vm14, %v4752_v0  ;;  %3112 = vst.msk [vmem:[#allocation4 + $0x20] sm:$0x1] %vm2379_vm14, %v4752_v0 }
  0x56   : > { %1677 = vrot.lane.b32.xlu1 %v5040_v28, %s6711_s22  ;;  %3113 = vst.msk [vmem:[#allocation4 + $0x30] sm:$0x1] %vm2379_vm14, %v4752_v0  ;;  %3114 = vst.msk [vmem:[#allocation4 + $0x40] sm:$0x1] %vm2379_vm14, %v4752_v0 }
  0x57   : > { %1675 = vrot.lane.b32.xlu0 %v5042_v29, %s6711_s22  ;;  %3115 = vst.msk [vmem:[#allocation4 + $0x50] sm:$0x1] %vm2379_vm14, %v4752_v0  ;;  %3116 = vst.msk [vmem:[#allocation4 + $0x60] sm:$0x1] %vm2379_vm14, %v4752_v0 }
  0x58   : > { %3117 = vst.msk [vmem:[#allocation4 + $0x70] sm:$0x1] %vm2379_vm14, %v4752_v0  ;;  %3118 = vst.msk [vmem:[#allocation4 + $0x80] sm:$0x1] %vm2379_vm14, %v4752_v0 }
  0x59   : > { %3119 = vst.msk [vmem:[#allocation4 + $0x90] sm:$0x1] %vm2379_vm14, %v4752_v0  ;;  %3121 = vst.msk [vmem:[#allocation4 + $0x19] sm:$0x1] %vm2379_vm14, %v4752_v0 }
  0x5a   : > { %1645 = vrot.lane.b32.xlu1 %v5045_v31, %s6711_s22  ;;  %3122 = vst.msk [vmem:[#allocation4 + $0x29] sm:$0x1] %vm2379_vm14, %v4752_v0  ;;  %3123 = vst.msk [vmem:[#allocation4 + $0x39] sm:$0x1] %vm2379_vm14, %v4752_v0 }
  0x5b   : > { %1643 = vrot.lane.b32.xlu0 %v5047_v32, %s6711_s22  ;;  %s6731_s22 = smov 32   ;;  %3124 = vst.msk [vmem:[#allocation4 + $0x49] sm:$0x1] %vm2379_vm14, %v4752_v0  ;;  %3125 = vst.msk [vmem:[#allocation4 + $0x59] sm:$0x1] %vm2379_vm14, %v4752_v0 }
  0x5c   : > { %3126 = vst.msk [vmem:[#allocation4 + $0x69] sm:$0x1] %vm2379_vm14, %v4752_v0  ;;  %3127 = vst.msk [vmem:[#allocation4 + $0x79] sm:$0x1] %vm2379_vm14, %v4752_v0 }
  0x5d   : > { %3128 = vst.msk [vmem:[#allocation4 + $0x89] sm:$0x1] %vm2379_vm14, %v4752_v0 }
  0x5e   : > { %1870 = vrot.lane.b32.xlu1 %v5110_v53, %s6717_s23  ;;  %2374 = vst.msk [vmem:[#allocation3 + $0x10] sm:$0x3] %vm2373_vm15, %v4752_v0  ;;  %3106 = vst.msk [vmem:[#allocation4 + $0x8] sm:$0x3] %vm2373_vm15, %v4752_v0 }
  0x5f   : > { %1868 = vrot.lane.b32.xlu0 %v5124_v56, %s6717_s23  ;;  %3109 = vst.msk [vmem:[#allocation4 + $0x98] sm:$0x3] %vm2373_vm15, %v4752_v0  ;;  %vm2754_vm15 = vcmask 326912  }
  0x60   : > { %3120 = vst.msk [vmem:[#allocation4 + $0x9] sm:$0x1] %vm2379_vm14, %v4752_v0  ;;  %3129 = vst.msk [vmem:[#allocation4 + $0x99] sm:$0x1] %vm2379_vm14, %v4752_v0  ;;  %vm2697_vm14 = vcmask 261312  }
  0x62   : > { %1838 = vrot.lane.b32.xlu1 %v5126_v57, %s6717_s23 }
  0x63   : > { %1836 = vrot.lane.b32.xlu0 %v5132_v58, %s6717_s23 }
  0x66   : > { %2063 = vrot.lane.b32.xlu1 %v5134_v59, %s6731_s22 }
  0x67   : > { %2061 = vrot.lane.b32.xlu0 %v5140_v60, %s6731_s22 }
  0x6a   : > { %715 = vrot.lane.b32.xlu1 %v1209_v39, %s6723_s30 }
  0x6b   : > { %713 = vrot.lane.b32.xlu0 %v1208_v40, %s6723_s30 }
  0x6e   : > { %2031 = vrot.lane.b32.xlu1 %v5145_v61, %s6731_s22 }
  0x6f   : > { %2029 = vrot.lane.b32.xlu0 %v5150_v62, %s6731_s22 }
  0x72   : > { %683 = vrot.lane.b32.xlu1 %v1193_v41, %s6723_s30  ;;  %v510_v41 = vld [vmem:[%s4998_s24 + $0xd0] sm:$0xff] }
  0x73   : > { %681 = vrot.lane.b32.xlu0 %v1192_v42, %s6723_s30  ;;  %v511_v42 = vld [vmem:[%s4998_s24 + $0xd8] sm:$0xff]  ;;  %543 = vst.msk [vmem:[#allocation2 + $0x151] sm:$0xff] %vm438_vm0, %v510_v41  ;;  %v496_v41 = vld [vmem:[%s4998_s24 + $0x60] sm:$0xff] }
  0x74   : > { %544 = vst.msk [vmem:[#allocation2 + $0x159] sm:$0xff] %vm438_vm0, %v511_v42  ;;  %v497_v42 = vld [vmem:[%s4998_s24 + $0x68] sm:$0xff]  ;;  %529 = vst.msk [vmem:[#allocation2 + $0xa9] sm:$0xff] %vm438_vm0, %v496_v41 }
  0x75   : > { %530 = vst.msk [vmem:[#allocation2 + $0xb1] sm:$0xff] %vm438_vm0, %v497_v42 }
  0x76   : > { %908 = vrot.lane.b32.xlu1 %v1402_v43, %s6715_s15 }
  0x77   : > { %906 = vrot.lane.b32.xlu0 %v1401_v44, %s6715_s15 }
  0x7a   : > { %876 = vrot.lane.b32.xlu1 %v1386_v45, %s6715_s15  ;;  %v494_v45 = vld [vmem:[%s4998_s24 + $0x50] sm:$0xff] }
  0x7b   : > { %874 = vrot.lane.b32.xlu0 %v1385_v48, %s6715_s15  ;;  %527 = vst.msk [vmem:[#allocation2 + $0x91] sm:$0xff] %vm438_vm0, %v494_v45  ;;  %v5326_v49 = vld [vmem:[#allocation2 + $0x158] sm:$0xff]  ;;  %v5328_v50 = vld [vmem:[#allocation2 + $0x150] sm:$0xff] }
  0x7c   : > { %610 = vst.msk [vmem:[#allocation6 + $0xe8] sm:$0xff] %vm438_vm0, %v5326_v49  ;;  %609 = vst.msk [vmem:[#allocation6 + $0xe0] sm:$0xff] %vm438_vm0, %v5328_v50  ;;  %v5621_v42 = vld [vmem:[#allocation2 + $0x151] sm:$0xff] }
  0x7e   : > { %1101 = vrot.lane.b32.xlu1 %v5040_v28, %s6721_s16 }
  0x7f   : > { %1099 = vrot.lane.b32.xlu0 %v5042_v29, %s6721_s16 }
  0x82   : > { %1069 = vrot.lane.b32.xlu1 %v5045_v31, %s6721_s16 }
  0x83   : > { %1067 = vrot.lane.b32.xlu0 %v5047_v32, %s6721_s16 }
  0x86   : > { %1294 = vrot.lane.b32.xlu1 %v5110_v53, %s6713_s20 }
  0x87   : > { %1292 = vrot.lane.b32.xlu0 %v5124_v56, %s6713_s20 }
  0x8a   : > { %1262 = vrot.lane.b32.xlu1 %v5126_v57, %s6713_s20 }
  0x8b   : > { %1260 = vrot.lane.b32.xlu0 %v5132_v58, %s6713_s20  ;;  %s6749_s20 = smov 24  }
  0x8d   : > { %v678_v11 = vpop.permute.xlu1 %677 }
  0x8e   : > { %1487 = vrot.lane.b32.xlu1 %v5134_v59, %s6719_s21  ;;  %v871_v12 = vpop.permute.xlu0 %870  ;;  %774 = vst.msk [vmem:[#allocation6] sm:$0xff] %vm773_vm3, %v678_v11 }
  0x8f   : > { %1485 = vrot.lane.b32.xlu0 %v5140_v60, %s6719_s21  ;;  %967 = vst.msk [vmem:[#allocation6] sm:$0xff] %vm966_vm4, %v871_v12  ;;  %v4042_v12 = vld [vmem:[%s6706_s9 + $0x8] sm:$0xff] }
  0x92   : > { %1455 = vrot.lane.b32.xlu1 %v5145_v61, %s6719_s21 }
  0x93   : > { %1453 = vrot.lane.b32.xlu0 %v5150_v62, %s6719_s21 }
  0x96   : > { %1681 = vrot.lane.b32.xlu1 %v5058_v33, %s6749_s20 }
  0x97   : > { %1679 = vrot.lane.b32.xlu0 %v5060_v34, %s6749_s20 }
  0x9a   : > { %1649 = vrot.lane.b32.xlu1 %v5063_v35, %s6749_s20 }
  0x9b   : > { %1647 = vrot.lane.b32.xlu0 %v5065_v36, %s6749_s20 }
  0x9e   : > { %1874 = vrot.lane.b32.xlu1 %v5206_v6, %s6717_s23 }
  0x9f   : > { %1872 = vrot.lane.b32.xlu0 %v5220_v9, %s6717_s23  ;;  %v710_v17 = vpop.permute.xlu0 %709 }
  0xa0   : > { %790 = vst.msk [vmem:[#allocation6 + $0x80] sm:$0xff] %vm773_vm3, %v710_v17 }
  0xa2   : > { %1842 = vrot.lane.b32.xlu1 %v5222_v10, %s6717_s23 }
  0xa3   : > { %1840 = vrot.lane.b32.xlu0 %v5230_v13, %s6717_s23 }
  0xa4   : > { %v680_v15 = vpop.permute.xlu1 %679 }
  0xa5   : > { %775 = vst.msk [vmem:[#allocation6 + $0x8] sm:$0xff] %vm773_vm3, %v680_v15  ;;  %v5373_v15 = vld [vmem:[#allocation2 + $0x12a] sm:$0xff] }
  0xa6   : > { %2067 = vrot.lane.b32.xlu1 %v5232_v14, %s6731_s22 }
  0xa7   : > { %2065 = vrot.lane.b32.xlu0 %v5239_v16, %s6731_s22 }
  0xa8   : > { %v873_v18 = vpop.permute.xlu1 %872 }
  0xa9   : > { %968 = vst.msk [vmem:[#allocation6 + $0x8] sm:$0xff] %vm966_vm4, %v873_v18  ;;  %v712_v19 = vpop.permute.xlu0 %711 }
  0xaa   : > { %719 = vrot.lane.b32.xlu1 %v5110_v53, %s6723_s30  ;;  %791 = vst.msk [vmem:[#allocation6 + $0x88] sm:$0xff] %vm773_vm3, %v712_v19  ;;  %v5383_v19 = vld [vmem:[#allocation2 + $0x122] sm:$0xff] }
  0xab   : > { %717 = vrot.lane.b32.xlu0 %v5124_v56, %s6723_s30  ;;  %v5339_v56 = vld [vmem:[#allocation2 + $0x129] sm:$0xff] }
  0xac   : > { %v905_v21 = vpop.permute.xlu1 %904 }
  0xad   : > { %984 = vst.msk [vmem:[#allocation6 + $0x88] sm:$0xff] %vm966_vm4, %v905_v21  ;;  %v903_v23 = vpop.permute.xlu0 %902 }
  0xae   : > { %2035 = vrot.lane.b32.xlu1 %v5247_v20, %s6731_s22  ;;  %983 = vst.msk [vmem:[#allocation6 + $0x80] sm:$0xff] %vm966_vm4, %v903_v23 }
  0xaf   : > { %2033 = vrot.lane.b32.xlu0 %v5255_v22, %s6731_s22 }
  0xb0   : > { %v1098_v24 = vpop.permute.xlu1 %1097 }
  0xb1   : > { %1177 = vst.msk [vmem:[#allocation6 + $0x88] sm:$0xff] %vm6740_vm5, %v1098_v24  ;;  %v1096_v25 = vpop.permute.xlu0 %1095 }
  0xb2   : > { %687 = vrot.lane.b32.xlu1 %v5126_v57, %s6723_s30  ;;  %1176 = vst.msk [vmem:[#allocation6 + $0x80] sm:$0xff] %vm6740_vm5, %v1096_v25 }
  0xb3   : > { %685 = vrot.lane.b32.xlu0 %v5132_v58, %s6723_s30  ;;  %v5342_v58 = vld [vmem:[#allocation2 + $0x98] sm:$0xff] }
  0xb4   : > { %v1066_v26 = vpop.permute.xlu1 %1065  ;;  %594 = vst.msk [vmem:[#allocation6 + $0x68] sm:$0xff] %vm438_vm0, %v5342_v58 }
  0xb5   : > { %1161 = vst.msk [vmem:[#allocation6 + $0x8] sm:$0xff] %vm6740_vm5, %v1066_v26  ;;  %v1064_v27 = vpop.permute.xlu0 %1063 }
  0xb6   : > { %912 = vrot.lane.b32.xlu1 %v5134_v59, %s6715_s15  ;;  %1160 = vst.msk [vmem:[#allocation6] sm:$0xff] %vm6740_vm5, %v1064_v27  ;;  %v5344_v59 = vld [vmem:[#allocation2 + $0x90] sm:$0xff] }
  0xb7   : > { %910 = vrot.lane.b32.xlu0 %v5140_v60, %s6715_s15  ;;  %593 = vst.msk [vmem:[#allocation6 + $0x60] sm:$0xff] %vm438_vm0, %v5344_v59  ;;  %v5355_v60 = vld [vmem:[#allocation2 + $0x121] sm:$0xff]  ;;  %v5391_v27 = vld [vmem:[#allocation2 + $0x6a] sm:$0xff] }
  0xb8   : > { %v1291_v28 = vpop.permute.xlu1 %1290 }
  0xb9   : > { %1370 = vst.msk [vmem:[#allocation6 + $0x88] sm:$0xff] %vm6739_vm6, %v1291_v28  ;;  %v1289_v29 = vpop.permute.xlu0 %1288 }
  0xba   : > { %880 = vrot.lane.b32.xlu1 %v5145_v61, %s6715_s15  ;;  %1369 = vst.msk [vmem:[#allocation6 + $0x80] sm:$0xff] %vm6739_vm6, %v1289_v29 }
  0xbb   : > { %878 = vrot.lane.b32.xlu0 %v5150_v62, %s6715_s15  ;;  %s6750_s15 = smov 16   ;;  %v5357_v62 = vld [vmem:[#allocation2 + $0x69] sm:$0xff] }
  0xbc   : > { %v1259_v30 = vpop.permute.xlu1 %1258 }
  0xbd   : > { %1354 = vst.msk [vmem:[#allocation6 + $0x8] sm:$0xff] %vm6739_vm6, %v1259_v30  ;;  %v1257_v31 = vpop.permute.xlu0 %1256 }
  0xbe   : > { %1105 = vrot.lane.b32.xlu1 %v5058_v33, %s6721_s16  ;;  %1353 = vst.msk [vmem:[#allocation6] sm:$0xff] %vm6739_vm6, %v1257_v31 }
  0xbf   : > { %1103 = vrot.lane.b32.xlu0 %v5060_v34, %s6721_s16 }
  0xc0   : > { %v1484_v32 = vpop.permute.xlu1 %1483 }
  0xc1   : > { %1563 = vst.msk [vmem:[#allocation6 + $0x88] sm:$0xff] %vm6738_vm7, %v1484_v32  ;;  %v1482_v37 = vpop.permute.xlu0 %1481 }
  0xc2   : > { %1073 = vrot.lane.b32.xlu1 %v5063_v35, %s6721_s16  ;;  %1562 = vst.msk [vmem:[#allocation6 + $0x80] sm:$0xff] %vm6738_vm7, %v1482_v37 }
  0xc3   : > { %1071 = vrot.lane.b32.xlu0 %v5065_v36, %s6721_s16 }
  0xc4   : > { %v1452_v38 = vpop.permute.xlu1 %1451 }
  0xc5   : > { %1547 = vst.msk [vmem:[#allocation6 + $0x8] sm:$0xff] %vm6738_vm7, %v1452_v38  ;;  %v1450_v33 = vpop.permute.xlu0 %1449 }
  0xc6   : > { %1298 = vrot.lane.b32.xlu1 %v5206_v6, %s6750_s15  ;;  %1546 = vst.msk [vmem:[#allocation6] sm:$0xff] %vm6738_vm7, %v1450_v33 }
  0xc7   : > { %1296 = vrot.lane.b32.xlu0 %v5220_v9, %s6750_s15 }
  0xc8   : > { %v1678_v34 = vpop.permute.xlu1 %1677 }
  0xc9   : > { %1757 = vst.msk [vmem:[#allocation6 + $0x88] sm:$0xff] %vm6737_vm8, %v1678_v34  ;;  %v1676_v35 = vpop.permute.xlu0 %1675 }
  0xca   : > { %1266 = vrot.lane.b32.xlu1 %v5222_v10, %s6750_s15  ;;  %1756 = vst.msk [vmem:[#allocation6 + $0x80] sm:$0xff] %vm6737_vm8, %v1676_v35  ;;  %v512_v35 = vld [vmem:[%s4998_s24 + $0xe0] sm:$0xff] }
  0xcb   : > { %1264 = vrot.lane.b32.xlu0 %v5230_v13, %s6750_s15  ;;  %545 = vst.msk [vmem:[#allocation2 + $0x169] sm:$0xff] %vm438_vm0, %v512_v35 }
  0xcc   : > { %v1646_v36 = vpop.permute.xlu1 %1645 }
  0xcd   : > { %1741 = vst.msk [vmem:[#allocation6 + $0x8] sm:$0xff] %vm6737_vm8, %v1646_v36  ;;  %v1644_v39 = vpop.permute.xlu0 %1643  ;;  %v513_v36 = vld [vmem:[%s4998_s24 + $0xe8] sm:$0xff] }
  0xce   : > { %1491 = vrot.lane.b32.xlu1 %v5232_v14, %s6719_s21  ;;  %1740 = vst.msk [vmem:[#allocation6] sm:$0xff] %vm6737_vm8, %v1644_v39 }
  0xcf   : > { %1489 = vrot.lane.b32.xlu0 %v5239_v16, %s6719_s21  ;;  %546 = vst.msk [vmem:[#allocation2 + $0x171] sm:$0xff] %vm438_vm0, %v513_v36 }
  0xd0   : > { %v1871_v40 = vpop.permute.xlu1 %1870 }
  0xd1   : > { %1950 = vst.msk [vmem:[#allocation6 + $0x88] sm:$0xff] %vm6736_vm9, %v1871_v40  ;;  %v1869_v43 = vpop.permute.xlu0 %1868 }
  0xd2   : > { %1459 = vrot.lane.b32.xlu1 %v5247_v20, %s6719_s21  ;;  %1949 = vst.msk [vmem:[#allocation6 + $0x80] sm:$0xff] %vm6736_vm9, %v1869_v43  ;;  %v5474_v46 = vld [vmem:[#allocation2 + $0x168] sm:$0xff] }
  0xd3   : > { %1457 = vrot.lane.b32.xlu0 %v5255_v22, %s6719_s21  ;;  %611 = vst.msk [vmem:[#allocation6 + $0xf0] sm:$0xff] %vm438_vm0, %v5474_v46 }
  0xd4   : > { %v1839_v44 = vpop.permute.xlu1 %1838 }
  0xd5   : > { %1934 = vst.msk [vmem:[#allocation6 + $0x8] sm:$0xff] %vm6736_vm9, %v1839_v44  ;;  %v1837_v47 = vpop.permute.xlu0 %1836 }
  0xd6   : > { %1685 = vrot.lane.b32.xlu1 %v5098_v51, %s6749_s20  ;;  %1933 = vst.msk [vmem:[#allocation6] sm:$0xff] %vm6736_vm9, %v1837_v47  ;;  %v5472_v45 = vld [vmem:[#allocation2 + $0x170] sm:$0xff] }
  0xd7   : > { %1683 = vrot.lane.b32.xlu0 %v5100_v52, %s6749_s20  ;;  %612 = vst.msk [vmem:[#allocation6 + $0xf8] sm:$0xff] %vm438_vm0, %v5472_v45 }
  0xd8   : > { %v2064_v48 = vpop.permute.xlu1 %2063 }
  0xd9   : > { %2143 = vst.msk [vmem:[#allocation6 + $0x88] sm:$0xff] %vm6735_vm10, %v2064_v48  ;;  %v2062_v53 = vpop.permute.xlu0 %2061  ;;  %v5485_v48 = vld [vmem:[#allocation2 + $0x141] sm:$0xff] }
  0xda   : > { %1653 = vrot.lane.b32.xlu1 %v5112_v54, %s6749_s20  ;;  %2142 = vst.msk [vmem:[#allocation6 + $0x80] sm:$0xff] %vm6735_vm10, %v2062_v53 }
  0xdb   : > { %1651 = vrot.lane.b32.xlu0 %v5114_v55, %s6749_s20 }
  0xdc   : > { %v716_v57 = vpop.permute.xlu1 %715 }
  0xdd   : > { %793 = vst.msk [vmem:[#allocation6 + $0x98] sm:$0xff] %vm773_vm3, %v716_v57  ;;  %v714_v61 = vpop.permute.xlu0 %713  ;;  %v5488_v57 = vld [vmem:[#allocation2 + $0xb0] sm:$0xff] }
  0xde   : > { %1878 = vrot.lane.b32.xlu1 %v5339_v56, %s6717_s23  ;;  %792 = vst.msk [vmem:[#allocation6 + $0x90] sm:$0xff] %vm773_vm3, %v714_v61  ;;  %v5490_v61 = vld [vmem:[#allocation2 + $0xa8] sm:$0xff] }
  0xdf   : > { %1876 = vrot.lane.b32.xlu0 %v5355_v60, %s6717_s23  ;;  %596 = vst.msk [vmem:[#allocation6 + $0x78] sm:$0xff] %vm438_vm0, %v5488_v57  ;;  %595 = vst.msk [vmem:[#allocation6 + $0x70] sm:$0xff] %vm438_vm0, %v5490_v61 }
  0xe0   : > { %v2032_v63 = vpop.permute.xlu1 %2031  ;;  %v2176_v1 = vld [vmem:[#allocation6 + $0x88] sm:$0xff] }
  0xe1   : > { %2127 = vst.msk [vmem:[#allocation6 + $0x8] sm:$0xff] %vm6735_vm10, %v2032_v63  ;;  %v2030_v3 = vpop.permute.xlu0 %2029  ;;  %v2175_v11 = vld [vmem:[#allocation6 + $0x80] sm:$0xff] }
  0xe2   : > { %1846 = vrot.lane.b32.xlu1 %v5357_v62, %s6717_s23  ;;  %2126 = vst.msk [vmem:[#allocation6] sm:$0xff] %vm6735_vm10, %v2030_v3  ;;  %v4535_v17 = vpack.c.bf16 %v2176_v1, %v2175_v11  ;;  %v5501_v63 = vld [vmem:[#allocation2 + $0x139] sm:$0xff]  ;;  %v5503_v3 = vld [vmem:[#allocation2 + $0x81] sm:$0xff] }
  0xe3   : > { %1844 = vrot.lane.b32.xlu0 %v5365_v2, %s6717_s23  ;;  %s6753_s23 = smov 8  }
  0xe4   : > { %v684_v18 = vpop.permute.xlu1 %683  ;;  %4537 = vmatprep.subr.msk.bf16.mxu0 %vm5369_vm12, %v4535_v17 }
  0xe5   : > { %777 = vst.msk [vmem:[#allocation6 + $0x18] sm:$0xff] %vm773_vm3, %v684_v18  ;;  %v682_v21 = vpop.permute.xlu0 %681  ;;  %v5511_v18 = vld [vmem:[#allocation2 + $0x79] sm:$0xff] }
  0xe6   : > { %2071 = vrot.lane.b32.xlu1 %v5373_v15, %s6731_s22  ;;  %776 = vst.msk [vmem:[#allocation6 + $0x10] sm:$0xff] %vm773_vm3, %v682_v21 }
  0xe7   : > { %2069 = vrot.lane.b32.xlu0 %v5383_v19, %s6731_s22 }
  0xe8   : > { %v909_v23 = vpop.permute.xlu1 %908  ;;  %v2160_v24 = vld [vmem:[#allocation6 + $0x8] sm:$0xff] }
  0xe9   : > { %986 = vst.msk [vmem:[#allocation6 + $0x98] sm:$0xff] %vm966_vm4, %v909_v23  ;;  %v907_v25 = vpop.permute.xlu0 %906  ;;  %v2159_v26 = vld [vmem:[#allocation6] sm:$0xff] }
  0xea   : > { %723 = vrot.lane.b32.xlu1 %v5206_v6, %s6723_s30  ;;  %985 = vst.msk [vmem:[#allocation6 + $0x90] sm:$0xff] %vm966_vm4, %v907_v25  ;;  %v4538_v28 = vpack.c.bf16 %v2160_v24, %v2159_v26  ;;  %v5401_v6 = vld [vmem:[#allocation2 + $0x62] sm:$0xff] }
  0xeb   : > { %721 = vrot.lane.b32.xlu0 %v5220_v9, %s6723_s30  ;;  %v5513_v24 = vld [vmem:[#allocation2 + $0x142] sm:$0xff] }
  0xec   : > { %v877_v29 = vpop.permute.xlu1 %876  ;;  %4540 = vmatpush3.bf16.xpose.msk.msra.mxu0 %vm5369_vm12, %v4538_v28  ;;  %v5523_v28 = vld [vmem:[#allocation2 + $0x13a] sm:$0xff] }
  0xed   : > { %970 = vst.msk [vmem:[#allocation6 + $0x18] sm:$0xff] %vm966_vm4, %v877_v29  ;;  %v875_v30 = vpop.permute.xlu0 %874 }
  0xee   : > { %2039 = vrot.lane.b32.xlu1 %v5391_v27, %s6731_s22  ;;  %969 = vst.msk [vmem:[#allocation6 + $0x10] sm:$0xff] %vm966_vm4, %v875_v30 }
  0xef   : > { %2037 = vrot.lane.b32.xlu0 %v5401_v6, %s6731_s22 }
  0xf0   : > { %v1102_v31 = vpop.permute.xlu1 %1101 }
  0xf1   : > { %1179 = vst.msk [vmem:[#allocation6 + $0x98] sm:$0xff] %vm6740_vm5, %v1102_v31  ;;  %v1100_v9 = vpop.permute.xlu0 %1099 }
  0xf2   : > { %691 = vrot.lane.b32.xlu1 %v5222_v10, %s6723_s30  ;;  %1178 = vst.msk [vmem:[#allocation6 + $0x90] sm:$0xff] %vm6740_vm5, %v1100_v9 }
  0xf3   : > { %689 = vrot.lane.b32.xlu0 %v5230_v13, %s6723_s30 }
  0xf4   : > { %v1070_v32 = vpop.permute.xlu1 %1069 }
  0xf5   : > { %1163 = vst.msk [vmem:[#allocation6 + $0x18] sm:$0xff] %vm6740_vm5, %v1070_v32  ;;  %v1068_v37 = vpop.permute.xlu0 %1067 }
  0xf6   : > { %916 = vrot.lane.b32.xlu1 %v5232_v14, %s6753_s23  ;;  %1162 = vst.msk [vmem:[#allocation6 + $0x10] sm:$0xff] %vm6740_vm5, %v1068_v37  ;;  %v5531_v37 = vld [vmem:[#allocation2 + $0x82] sm:$0xff] }
  0xf7   : > { %914 = vrot.lane.b32.xlu0 %v5239_v16, %s6753_s23 }
  0xf8   : > { %v1295_v38 = vpop.permute.xlu1 %1294 }
  0xf9   : > { %1372 = vst.msk [vmem:[#allocation6 + $0x98] sm:$0xff] %vm6739_vm6, %v1295_v38  ;;  %v1293_v10 = vpop.permute.xlu0 %1292 }
  0xfa   : > { %884 = vrot.lane.b32.xlu1 %v5247_v20, %s6753_s23  ;;  %1371 = vst.msk [vmem:[#allocation6 + $0x90] sm:$0xff] %vm6739_vm6, %v1293_v10 }
  0xfb   : > { %882 = vrot.lane.b32.xlu0 %v5255_v22, %s6753_s23 }
  0xfc   : > { %v1263_v13 = vpop.permute.xlu1 %1262 }
  0xfd   : > { %1356 = vst.msk [vmem:[#allocation6 + $0x18] sm:$0xff] %vm6739_vm6, %v1263_v13  ;;  %v1261_v14 = vpop.permute.xlu0 %1260 }
  0xfe   : > { %1109 = vrot.lane.b32.xlu1 %v5098_v51, %s6721_s16  ;;  %1355 = vst.msk [vmem:[#allocation6 + $0x10] sm:$0xff] %vm6739_vm6, %v1261_v14 }
  0xff   : > { %1107 = vrot.lane.b32.xlu0 %v5100_v52, %s6721_s16 }
 0x100   : > { %v1488_v16 = vpop.permute.xlu1 %1487 }
 0x101   : > { %1565 = vst.msk [vmem:[#allocation6 + $0x98] sm:$0xff] %vm6738_vm7, %v1488_v16  ;;  %v1486_v20 = vpop.permute.xlu0 %1485 }
 0x102   : > { %1077 = vrot.lane.b32.xlu1 %v5112_v54, %s6721_s16  ;;  %1564 = vst.msk [vmem:[#allocation6 + $0x90] sm:$0xff] %vm6738_vm7, %v1486_v20 }
 0x103   : > { %1075 = vrot.lane.b32.xlu0 %v5114_v55, %s6721_s16 }
 0x104   : > { %v1456_v22 = vpop.permute.xlu1 %1455 }
 0x105   : > { %1549 = vst.msk [vmem:[#allocation6 + $0x18] sm:$0xff] %vm6738_vm7, %v1456_v22  ;;  %v1454_v51 = vpop.permute.xlu0 %1453 }
 0x106   : > { %1302 = vrot.lane.b32.xlu1 %v5339_v56, %s6750_s15  ;;  %1548 = vst.msk [vmem:[#allocation6 + $0x10] sm:$0xff] %vm6738_vm7, %v1454_v51 }
 0x107   : > { %1300 = vrot.lane.b32.xlu0 %v5355_v60, %s6750_s15 }
 0x108   : > { %v1682_v52 = vpop.permute.xlu1 %1681 }
 0x109   : > { %1759 = vst.msk [vmem:[#allocation6 + $0x98] sm:$0xff] %vm6737_vm8, %v1682_v52  ;;  %v1680_v54 = vpop.permute.xlu0 %1679 }
 0x10a   : > { %1270 = vrot.lane.b32.xlu1 %v5357_v62, %s6750_s15  ;;  %1758 = vst.msk [vmem:[#allocation6 + $0x90] sm:$0xff] %vm6737_vm8, %v1680_v54  ;;  %v514_v54 = vld [vmem:[%s4998_s24 + $0xf0] sm:$0xff] }
 0x10b   : > { %1268 = vrot.lane.b32.xlu0 %v5365_v2, %s6750_s15  ;;  %547 = vst.msk [vmem:[#allocation2 + $0x181] sm:$0xff] %vm438_vm0, %v514_v54 }
 0x10c   : > { %v1650_v55 = vpop.permute.xlu1 %1649 }
 0x10d   : > { %1743 = vst.msk [vmem:[#allocation6 + $0x18] sm:$0xff] %vm6737_vm8, %v1650_v55  ;;  %v1648_v33 = vpop.permute.xlu0 %1647  ;;  %v515_v55 = vld [vmem:[%s4998_s24 + $0xf8] sm:$0xff]  ;;  %s6756_s24 = smov 12  }
 0x10e   : > { %1495 = vrot.lane.b32.xlu1 %v5373_v15, %s6719_s21  ;;  %1742 = vst.msk [vmem:[#allocation6 + $0x10] sm:$0xff] %vm6737_vm8, %v1648_v33 }
 0x10f   : > { %1493 = vrot.lane.b32.xlu0 %v5383_v19, %s6719_s21  ;;  %548 = vst.msk [vmem:[#allocation2 + $0x189] sm:$0xff] %vm438_vm0, %v515_v55 }
 0x110   : > { %v1875_v34 = vpop.permute.xlu1 %1874 }
 0x111   : > { %1952 = vst.msk [vmem:[#allocation6 + $0x98] sm:$0xff] %vm6736_vm9, %v1875_v34  ;;  %v1873_v39 = vpop.permute.xlu0 %1872 }
 0x112   : > { %1463 = vrot.lane.b32.xlu1 %v5391_v27, %s6719_s21  ;;  %1951 = vst.msk [vmem:[#allocation6 + $0x90] sm:$0xff] %vm6736_vm9, %v1873_v39 }
 0x113   : > { %1461 = vrot.lane.b32.xlu0 %v5401_v6, %s6719_s21  ;;  %s6754_s21 = smov 28  }
 0x114   : > { %v1843_v40 = vpop.permute.xlu1 %1842 }
 0x115   : > { %1936 = vst.msk [vmem:[#allocation6 + $0x18] sm:$0xff] %vm6736_vm9, %v1843_v40  ;;  %v1841_v43 = vpop.permute.xlu0 %1840  ;;  %v5613_v40 = vld [vmem:[#allocation2 + $0x159] sm:$0xff] }
 0x116   : > { %1689 = vrot.lane.b32.xlu1 %v5194_v4, %s6749_s20  ;;  %1935 = vst.msk [vmem:[#allocation6 + $0x10] sm:$0xff] %vm6736_vm9, %v1841_v43 }
 0x117   : > { %1687 = vrot.lane.b32.xlu0 %v5196_v5, %s6749_s20 }
 0x118   : > { %v2068_v44 = vpop.permute.xlu1 %2067 }
 0x119   : > { %2145 = vst.msk [vmem:[#allocation6 + $0x98] sm:$0xff] %vm6735_vm10, %v2068_v44  ;;  %v2066_v47 = vpop.permute.xlu0 %2065  ;;  %v5623_v44 = vld [vmem:[#allocation2 + $0x99] sm:$0xff] }
 0x11a   : > { %1657 = vrot.lane.b32.xlu1 %v5208_v7, %s6749_s20  ;;  %2144 = vst.msk [vmem:[#allocation6 + $0x90] sm:$0xff] %vm6735_vm10, %v2066_v47 }
 0x11b   : > { %1655 = vrot.lane.b32.xlu0 %v5210_v8, %s6749_s20 }
 0x11c   : > { %v720_v53 = vpop.permute.xlu1 %719 }
 0x11d   : > { %795 = vst.msk [vmem:[#allocation6 + $0xa8] sm:$0xff] %vm773_vm3, %v720_v53  ;;  %v718_v1 = vpop.permute.xlu0 %717 }
 0x11e   : > { %1882 = vrot.lane.b32.xlu1 %v5485_v48, %s6754_s21  ;;  %794 = vst.msk [vmem:[#allocation6 + $0xa0] sm:$0xff] %vm773_vm3, %v718_v1  ;;  %v5631_v1 = vld [vmem:[#allocation2 + $0x91] sm:$0xff] }
 0x11f   : > { %1880 = vrot.lane.b32.xlu0 %v5501_v63, %s6754_s21 }
 0x120   : > { %v2036_v11 = vpop.permute.xlu1 %2035  ;;  %v2178_v17 = vld [vmem:[#allocation6 + $0x98] sm:$0xff] }
 0x121   : > { %2129 = vst.msk [vmem:[#allocation6 + $0x18] sm:$0xff] %vm6735_vm10, %v2036_v11  ;;  %v2034_v21 = vpop.permute.xlu0 %2033  ;;  %v2177_v23 = vld [vmem:[#allocation6 + $0x90] sm:$0xff] }
 0x122   : > { %1850 = vrot.lane.b32.xlu1 %v5503_v3, %s6754_s21  ;;  %2128 = vst.msk [vmem:[#allocation6 + $0x10] sm:$0xff] %vm6735_vm10, %v2034_v21  ;;  %v4541_v25 = vpack.c.bf16 %v2178_v17, %v2177_v23  ;;  %v5633_v21 = vld [vmem:[#allocation2 + $0x15a] sm:$0xff] }
 0x123   : > { %1848 = vrot.lane.b32.xlu0 %v5511_v18, %s6754_s21 }
 0x124   : > { %v688_v26 = vpop.permute.xlu1 %687  ;;  %4543 = vmatprep.subr.msk.bf16.mxu0 %vm5369_vm12, %v4541_v25 }
 0x125   : > { %779 = vst.msk [vmem:[#allocation6 + $0x28] sm:$0xff] %vm773_vm3, %v688_v26  ;;  %v686_v29 = vpop.permute.xlu0 %685  ;;  %v5643_v26 = vld [vmem:[#allocation2 + $0x152] sm:$0xff] }
 0x126   : > { %2075 = vrot.lane.b32.xlu1 %v5513_v24, %s6731_s22  ;;  %778 = vst.msk [vmem:[#allocation6 + $0x20] sm:$0xff] %vm773_vm3, %v686_v29 }
 0x127   : > { %2073 = vrot.lane.b32.xlu0 %v5523_v28, %s6731_s22 }
 0x128   : > { %v913_v30 = vpop.permute.xlu1 %912  ;;  %v2162_v31 = vld [vmem:[#allocation6 + $0x18] sm:$0xff] }
 0x129   : > { %988 = vst.msk [vmem:[#allocation6 + $0xa8] sm:$0xff] %vm966_vm4, %v913_v30  ;;  %v911_v9 = vpop.permute.xlu0 %910  ;;  %v2161_v32 = vld [vmem:[#allocation6 + $0x10] sm:$0xff] }
 0x12a   : > { %727 = vrot.lane.b32.xlu1 %v5339_v56, %s6723_s30  ;;  %987 = vst.msk [vmem:[#allocation6 + $0xa0] sm:$0xff] %vm966_vm4, %v911_v9  ;;  %v4544_v38 = vpack.c.bf16 %v2162_v31, %v2161_v32  ;;  %v5541_v56 = vld [vmem:[#allocation2 + $0x7a] sm:$0xff] }
 0x12b   : > { %725 = vrot.lane.b32.xlu0 %v5355_v60, %s6723_s30 }
 0x12c   : > { %v881_v10 = vpop.permute.xlu1 %880  ;;  %4546 = vmatpush3.bf16.xpose.msk.msra.mxu0 %vm5369_vm12, %v4544_v38  ;;  %v5651_v38 = vld [vmem:[#allocation2 + $0x9a] sm:$0xff] }
 0x12d   : > { %972 = vst.msk [vmem:[#allocation6 + $0x28] sm:$0xff] %vm966_vm4, %v881_v10  ;;  %v879_v13 = vpop.permute.xlu0 %878 }
 0x12e   : > { %2043 = vrot.lane.b32.xlu1 %v5531_v37, %s6731_s22  ;;  %971 = vst.msk [vmem:[#allocation6 + $0x20] sm:$0xff] %vm966_vm4, %v879_v13 }
 0x12f   : > { %2041 = vrot.lane.b32.xlu0 %v5541_v56, %s6731_s22 }
 0x130   : > { %v1106_v14 = vpop.permute.xlu1 %1105 }
 0x131   : > { %1181 = vst.msk [vmem:[#allocation6 + $0xa8] sm:$0xff] %vm6740_vm5, %v1106_v14  ;;  %v1104_v60 = vpop.permute.xlu0 %1103 }
 0x132   : > { %695 = vrot.lane.b32.xlu1 %v5357_v62, %s6723_s30  ;;  %1180 = vst.msk [vmem:[#allocation6 + $0xa0] sm:$0xff] %vm6740_vm5, %v1104_v60 }
 0x133   : > { %693 = vrot.lane.b32.xlu0 %v5365_v2, %s6723_s30 }
 0x134   : > { %v1074_v16 = vpop.permute.xlu1 %1073 }
 0x135   : > { %1165 = vst.msk [vmem:[#allocation6 + $0x28] sm:$0xff] %vm6740_vm5, %v1074_v16  ;;  %v1072_v20 = vpop.permute.xlu0 %1071 }
 0x136   : > { %920 = vrot.lane.b32.xlu1 %v5373_v15, %s6753_s23  ;;  %1164 = vst.msk [vmem:[#allocation6 + $0x20] sm:$0xff] %vm6740_vm5, %v1072_v20 }
 0x137   : > { %918 = vrot.lane.b32.xlu0 %v5383_v19, %s6753_s23 }
 0x138   : > { %v1299_v22 = vpop.permute.xlu1 %1298 }
 0x139   : > { %1374 = vst.msk [vmem:[#allocation6 + $0xa8] sm:$0xff] %vm6739_vm6, %v1299_v22  ;;  %v1297_v62 = vpop.permute.xlu0 %1296 }
 0x13a   : > { %888 = vrot.lane.b32.xlu1 %v5391_v27, %s6753_s23  ;;  %1373 = vst.msk [vmem:[#allocation6 + $0xa0] sm:$0xff] %vm6739_vm6, %v1297_v62 }
 0x13b   : > { %886 = vrot.lane.b32.xlu0 %v5401_v6, %s6753_s23 }
 0x13c   : > { %v1267_v2 = vpop.permute.xlu1 %1266 }
 0x13d   : > { %1358 = vst.msk [vmem:[#allocation6 + $0x28] sm:$0xff] %vm6739_vm6, %v1267_v2  ;;  %v1265_v15 = vpop.permute.xlu0 %1264 }
 0x13e   : > { %1113 = vrot.lane.b32.xlu1 %v5194_v4, %s6721_s16  ;;  %1357 = vst.msk [vmem:[#allocation6 + $0x20] sm:$0xff] %vm6739_vm6, %v1265_v15 }
 0x13f   : > { %1111 = vrot.lane.b32.xlu0 %v5196_v5, %s6721_s16 }
 0x140   : > { %v1492_v19 = vpop.permute.xlu1 %1491 }
 0x141   : > { %1567 = vst.msk [vmem:[#allocation6 + $0xa8] sm:$0xff] %vm6738_vm7, %v1492_v19  ;;  %v1490_v27 = vpop.permute.xlu0 %1489 }
 0x142   : > { %1081 = vrot.lane.b32.xlu1 %v5208_v7, %s6721_s16  ;;  %1566 = vst.msk [vmem:[#allocation6 + $0xa0] sm:$0xff] %vm6738_vm7, %v1490_v27 }
 0x143   : > { %1079 = vrot.lane.b32.xlu0 %v5210_v8, %s6721_s16  ;;  %s6755_s16 = smov 20  }
 0x144   : > { %v1460_v6 = vpop.permute.xlu1 %1459 }
 0x145   : > { %1551 = vst.msk [vmem:[#allocation6 + $0x28] sm:$0xff] %vm6738_vm7, %v1460_v6  ;;  %v1458_v4 = vpop.permute.xlu0 %1457 }
 0x146   : > { %1306 = vrot.lane.b32.xlu1 %v5485_v48, %s6750_s15  ;;  %1550 = vst.msk [vmem:[#allocation6 + $0x20] sm:$0xff] %vm6738_vm7, %v1458_v4 }
 0x147   : > { %1304 = vrot.lane.b32.xlu0 %v5501_v63, %s6750_s15 }
 0x148   : > { %v1686_v5 = vpop.permute.xlu1 %1685 }
 0x149   : > { %1761 = vst.msk [vmem:[#allocation6 + $0xa8] sm:$0xff] %vm6737_vm8, %v1686_v5  ;;  %v1684_v7 = vpop.permute.xlu0 %1683  ;;  %v5729_v5 = vld [vmem:[#allocation2 + $0x171] sm:$0xff] }
 0x14a   : > { %1274 = vrot.lane.b32.xlu1 %v5503_v3, %s6750_s15  ;;  %1760 = vst.msk [vmem:[#allocation6 + $0xa0] sm:$0xff] %vm6737_vm8, %v1684_v7 }
 0x14b   : > { %1272 = vrot.lane.b32.xlu0 %v5511_v18, %s6750_s15 }
 0x14c   : > { %v1654_v8 = vpop.permute.xlu1 %1653 }
 0x14d   : > { %1745 = vst.msk [vmem:[#allocation6 + $0x28] sm:$0xff] %vm6737_vm8, %v1654_v8  ;;  %v1652_v51 = vpop.permute.xlu0 %1651  ;;  %v5737_v8 = vld [vmem:[#allocation2 + $0x169] sm:$0xff] }
 0x14e   : > { %1499 = vrot.lane.b32.xlu1 %v5513_v24, %s6755_s16  ;;  %1744 = vst.msk [vmem:[#allocation6 + $0x20] sm:$0xff] %vm6737_vm8, %v1652_v51 }
 0x14f   : > { %1497 = vrot.lane.b32.xlu0 %v5523_v28, %s6755_s16 }
 0x150   : > { %v1879_v52 = vpop.permute.xlu1 %1878 }
 0x151   : > { %1954 = vst.msk [vmem:[#allocation6 + $0xa8] sm:$0xff] %vm6736_vm9, %v1879_v52  ;;  %v1877_v33 = vpop.permute.xlu0 %1876  ;;  %v5739_v52 = vld [vmem:[#allocation2 + $0xb1] sm:$0xff] }
 0x152   : > { %1467 = vrot.lane.b32.xlu1 %v5531_v37, %s6755_s16  ;;  %1953 = vst.msk [vmem:[#allocation6 + $0xa0] sm:$0xff] %vm6736_vm9, %v1877_v33  ;;  %v5747_v33 = vld [vmem:[#allocation2 + $0xa9] sm:$0xff] }
 0x153   : > { %1465 = vrot.lane.b32.xlu0 %v5541_v56, %s6755_s16 }
 0x154   : > { %v1847_v34 = vpop.permute.xlu1 %1846 }
 0x155   : > { %1938 = vst.msk [vmem:[#allocation6 + $0x28] sm:$0xff] %vm6736_vm9, %v1847_v34  ;;  %v1845_v35 = vpop.permute.xlu0 %1844 }
 0x156   : > { %1693 = vrot.lane.b32.xlu1 %v5326_v49, %s6749_s20  ;;  %1937 = vst.msk [vmem:[#allocation6 + $0x20] sm:$0xff] %vm6736_vm9, %v1845_v35 }
 0x157   : > { %1691 = vrot.lane.b32.xlu0 %v5328_v50, %s6749_s20 }
 0x158   : > { %v2072_v36 = vpop.permute.xlu1 %2071 }
 0x159   : > { %2147 = vst.msk [vmem:[#allocation6 + $0xa8] sm:$0xff] %vm6735_vm10, %v2072_v36  ;;  %v2070_v39 = vpop.permute.xlu0 %2069  ;;  %v5749_v36 = vld [vmem:[#allocation2 + $0x172] sm:$0xff] }
 0x15a   : > { %1661 = vrot.lane.b32.xlu1 %v5342_v58, %s6749_s20  ;;  %2146 = vst.msk [vmem:[#allocation6 + $0xa0] sm:$0xff] %vm6735_vm10, %v2070_v39 }
 0x15b   : > { %1659 = vrot.lane.b32.xlu0 %v5344_v59, %s6749_s20 }
 0x15c   : > { %v724_v41 = vpop.permute.xlu1 %723 }
 0x15d   : > { %797 = vst.msk [vmem:[#allocation6 + $0xb8] sm:$0xff] %vm773_vm3, %v724_v41  ;;  %v722_v43 = vpop.permute.xlu0 %721 }
 0x15e   : > { %1886 = vrot.lane.b32.xlu1 %v5613_v40, %s6754_s21  ;;  %796 = vst.msk [vmem:[#allocation6 + $0xb0] sm:$0xff] %vm773_vm3, %v722_v43  ;;  %v5759_v43 = vld [vmem:[#allocation2 + $0x16a] sm:$0xff] }
 0x15f   : > { %1884 = vrot.lane.b32.xlu0 %v5621_v42, %s6754_s21 }
 0x160   : > { %v2040_v47 = vpop.permute.xlu1 %2039  ;;  %v2180_v53 = vld [vmem:[#allocation6 + $0xa8] sm:$0xff] }
 0x161   : > { %2131 = vst.msk [vmem:[#allocation6 + $0x28] sm:$0xff] %vm6735_vm10, %v2040_v47  ;;  %v2038_v11 = vpop.permute.xlu0 %2037  ;;  %v2179_v17 = vld [vmem:[#allocation6 + $0xa0] sm:$0xff] }
 0x162   : > { %1854 = vrot.lane.b32.xlu1 %v5623_v44, %s6754_s21  ;;  %2130 = vst.msk [vmem:[#allocation6 + $0x20] sm:$0xff] %vm6735_vm10, %v2038_v11  ;;  %v4547_v23 = vpack.c.bf16 %v2180_v53, %v2179_v17 }
 0x163   : > { %1852 = vrot.lane.b32.xlu0 %v5631_v1, %s6754_s21 }
 0x164   : > { %v692_v25 = vpop.permute.xlu1 %691  ;;  %4549 = vmatprep.subr.msk.bf16.mxu0 %vm5369_vm12, %v4547_v23 }
 0x165   : > { %781 = vst.msk [vmem:[#allocation6 + $0x38] sm:$0xff] %vm773_vm3, %v692_v25  ;;  %v690_v29 = vpop.permute.xlu0 %689  ;;  %v5767_v25 = vld [vmem:[#allocation2 + $0xb2] sm:$0xff] }
 0x166   : > { %2079 = vrot.lane.b32.xlu1 %v5633_v21, %s6731_s22  ;;  %780 = vst.msk [vmem:[#allocation6 + $0x30] sm:$0xff] %vm773_vm3, %v690_v29 }
 0x167   : > { %2077 = vrot.lane.b32.xlu0 %v5643_v26, %s6731_s22 }
 0x168   : > { %v917_v30 = vpop.permute.xlu1 %916  ;;  %v2164_v31 = vld [vmem:[#allocation6 + $0x28] sm:$0xff] }
 0x169   : > { %990 = vst.msk [vmem:[#allocation6 + $0xb8] sm:$0xff] %vm966_vm4, %v917_v30  ;;  %v915_v9 = vpop.permute.xlu0 %914  ;;  %v2163_v32 = vld [vmem:[#allocation6 + $0x20] sm:$0xff] }
 0x16a   : > { %731 = vrot.lane.b32.xlu1 %v5485_v48, %s6723_s30  ;;  %989 = vst.msk [vmem:[#allocation6 + $0xb0] sm:$0xff] %vm966_vm4, %v915_v9  ;;  %v4550_v10 = vpack.c.bf16 %v2164_v31, %v2163_v32  ;;  %v5661_v48 = vld [vmem:[#allocation2 + $0x92] sm:$0xff] }
 0x16b   : > { %729 = vrot.lane.b32.xlu0 %v5501_v63, %s6723_s30 }
 0x16c   : > { %v885_v13 = vpop.permute.xlu1 %884  ;;  %4552 = vmatpush3.bf16.xpose.msk.msra.mxu0 %vm5369_vm12, %v4550_v10 }
 0x16d   : > { %974 = vst.msk [vmem:[#allocation6 + $0x38] sm:$0xff] %vm966_vm4, %v885_v13  ;;  %v883_v14 = vpop.permute.xlu0 %882 }
 0x16e   : > { %2047 = vrot.lane.b32.xlu1 %v5651_v38, %s6731_s22  ;;  %973 = vst.msk [vmem:[#allocation6 + $0x30] sm:$0xff] %vm966_vm4, %v883_v14 }
 0x16f   : > { %2045 = vrot.lane.b32.xlu0 %v5661_v48, %s6731_s22 }
 0x170   : > { %v1110_v60 = vpop.permute.xlu1 %1109 }
 0x171   : > { %1183 = vst.msk [vmem:[#allocation6 + $0xb8] sm:$0xff] %vm6740_vm5, %v1110_v60  ;;  %v1108_v63 = vpop.permute.xlu0 %1107 }
 0x172   : > { %699 = vrot.lane.b32.xlu1 %v5503_v3, %s6723_s30  ;;  %1182 = vst.msk [vmem:[#allocation6 + $0xb0] sm:$0xff] %vm6740_vm5, %v1108_v63 }
 0x173   : > { %697 = vrot.lane.b32.xlu0 %v5511_v18, %s6723_s30 }
 0x174   : > { %v1078_v16 = vpop.permute.xlu1 %1077 }
 0x175   : > { %1167 = vst.msk [vmem:[#allocation6 + $0x38] sm:$0xff] %vm6740_vm5, %v1078_v16  ;;  %v1076_v20 = vpop.permute.xlu0 %1075  ;;  %v5833_v16 = vld [vmem:[#allocation2 + $0x188] sm:$0xff] }
 0x176   : > { %924 = vrot.lane.b32.xlu1 %v5513_v24, %s6753_s23  ;;  %1166 = vst.msk [vmem:[#allocation6 + $0x30] sm:$0xff] %vm6740_vm5, %v1076_v20 }
 0x177   : > { %922 = vrot.lane.b32.xlu0 %v5523_v28, %s6753_s23 }
 0x178   : > { %v1303_v22 = vpop.permute.xlu1 %1302 }
 0x179   : > { %1376 = vst.msk [vmem:[#allocation6 + $0xb8] sm:$0xff] %vm6739_vm6, %v1303_v22  ;;  %v1301_v3 = vpop.permute.xlu0 %1300  ;;  %v5841_v22 = vld [vmem:[#allocation2 + $0x180] sm:$0xff] }
 0x17a   : > { %892 = vrot.lane.b32.xlu1 %v5531_v37, %s6753_s23  ;;  %1375 = vst.msk [vmem:[#allocation6 + $0xb0] sm:$0xff] %vm6739_vm6, %v1301_v3 }
 0x17b   : > { %890 = vrot.lane.b32.xlu0 %v5541_v56, %s6753_s23 }
 0x17c   : > { %v1271_v18 = vpop.permute.xlu1 %1270 }
 0x17d   : > { %1360 = vst.msk [vmem:[#allocation6 + $0x38] sm:$0xff] %vm6739_vm6, %v1271_v18  ;;  %v1269_v24 = vpop.permute.xlu0 %1268  ;;  %v5843_v18 = vld [vmem:[#allocation2 + $0xc8] sm:$0xff] }
 0x17e   : > { %1117 = vrot.lane.b32.xlu1 %v5326_v49, %s6756_s24  ;;  %1359 = vst.msk [vmem:[#allocation6 + $0x30] sm:$0xff] %vm6739_vm6, %v1269_v24 }
 0x17f   : > { %1115 = vrot.lane.b32.xlu0 %v5328_v50, %s6756_s24 }
 0x180   : > { %v1496_v28 = vpop.permute.xlu1 %1495 }
 0x181   : > { %1569 = vst.msk [vmem:[#allocation6 + $0xb8] sm:$0xff] %vm6738_vm7, %v1496_v28  ;;  %v1494_v37 = vpop.permute.xlu0 %1493  ;;  %v5851_v28 = vld [vmem:[#allocation2 + $0xc0] sm:$0xff] }
 0x182   : > { %1085 = vrot.lane.b32.xlu1 %v5342_v58, %s6756_s24  ;;  %1568 = vst.msk [vmem:[#allocation6 + $0xb0] sm:$0xff] %vm6738_vm7, %v1494_v37 }
 0x183   : > { %1083 = vrot.lane.b32.xlu0 %v5344_v59, %s6756_s24 }
 0x184   : > { %v1464_v56 = vpop.permute.xlu1 %1463 }
 0x185   : > { %1553 = vst.msk [vmem:[#allocation6 + $0x38] sm:$0xff] %vm6738_vm7, %v1464_v56  ;;  %v1462_v49 = vpop.permute.xlu0 %1461  ;;  %v5853_v56 = vld [vmem:[#allocation2 + $0x189] sm:$0xff] }
 0x186   : > { %1310 = vrot.lane.b32.xlu1 %v5613_v40, %s6750_s15  ;;  %1552 = vst.msk [vmem:[#allocation6 + $0x30] sm:$0xff] %vm6738_vm7, %v1462_v49 }
 0x187   : > { %1308 = vrot.lane.b32.xlu0 %v5621_v42, %s6750_s15 }
 0x188   : > { %v1690_v50 = vpop.permute.xlu1 %1689 }
 0x189   : > { %1763 = vst.msk [vmem:[#allocation6 + $0xb8] sm:$0xff] %vm6737_vm8, %v1690_v50  ;;  %v1688_v58 = vpop.permute.xlu0 %1687  ;;  %v5861_v50 = vld [vmem:[#allocation2 + $0x181] sm:$0xff] }
 0x18a   : > { %1278 = vrot.lane.b32.xlu1 %v5623_v44, %s6750_s15  ;;  %1762 = vst.msk [vmem:[#allocation6 + $0xb0] sm:$0xff] %vm6737_vm8, %v1688_v58 }
 0x18b   : > { %1276 = vrot.lane.b32.xlu0 %v5631_v1, %s6750_s15 }
 0x18c   : > { %v1658_v59 = vpop.permute.xlu1 %1657 }
 0x18d   : > { %1747 = vst.msk [vmem:[#allocation6 + $0x38] sm:$0xff] %vm6737_vm8, %v1658_v59  ;;  %v1656_v62 = vpop.permute.xlu0 %1655  ;;  %v5863_v59 = vld [vmem:[#allocation2 + $0xc9] sm:$0xff] }
 0x18e   : > { %1503 = vrot.lane.b32.xlu1 %v5633_v21, %s6755_s16  ;;  %1746 = vst.msk [vmem:[#allocation6 + $0x30] sm:$0xff] %vm6737_vm8, %v1656_v62 }
 0x18f   : > { %1501 = vrot.lane.b32.xlu0 %v5643_v26, %s6755_s16 }
 0x190   : > { %v1883_v2 = vpop.permute.xlu1 %1882 }
 0x191   : > { %1956 = vst.msk [vmem:[#allocation6 + $0xb8] sm:$0xff] %vm6736_vm9, %v1883_v2  ;;  %v1881_v15 = vpop.permute.xlu0 %1880 }
 0x192   : > { %1471 = vrot.lane.b32.xlu1 %v5651_v38, %s6755_s16  ;;  %1955 = vst.msk [vmem:[#allocation6 + $0xb0] sm:$0xff] %vm6736_vm9, %v1881_v15  ;;  %v5871_v15 = vld [vmem:[#allocation2 + $0xc1] sm:$0xff] }
 0x193   : > { %1469 = vrot.lane.b32.xlu0 %v5661_v48, %s6755_s16 }
 0x194   : > { %v1851_v19 = vpop.permute.xlu1 %1850 }
 0x195   : > { %1940 = vst.msk [vmem:[#allocation6 + $0x38] sm:$0xff] %vm6736_vm9, %v1851_v19  ;;  %v1849_v27 = vpop.permute.xlu0 %1848 }
 0x196   : > { %1697 = vrot.lane.b32.xlu1 %v5472_v45, %s6749_s20  ;;  %1939 = vst.msk [vmem:[#allocation6 + $0x30] sm:$0xff] %vm6736_vm9, %v1849_v27 }
 0x197   : > { %1695 = vrot.lane.b32.xlu0 %v5474_v46, %s6749_s20 }
 0x198   : > { %v2076_v6 = vpop.permute.xlu1 %2075 }
 0x199   : > { %2149 = vst.msk [vmem:[#allocation6 + $0xb8] sm:$0xff] %vm6735_vm10, %v2076_v6  ;;  %v2074_v4 = vpop.permute.xlu0 %2073  ;;  %v5873_v6 = vld [vmem:[#allocation2 + $0x18a] sm:$0xff] }
 0x19a   : > { %1665 = vrot.lane.b32.xlu1 %v5488_v57, %s6749_s20  ;;  %2148 = vst.msk [vmem:[#allocation6 + $0xb0] sm:$0xff] %vm6735_vm10, %v2074_v4 }
 0x19b   : > { %1663 = vrot.lane.b32.xlu0 %v5490_v61, %s6749_s20 }
 0x19c   : > { %v728_v7 = vpop.permute.xlu1 %727 }
 0x19d   : > { %799 = vst.msk [vmem:[#allocation6 + $0xc8] sm:$0xff] %vm773_vm3, %v728_v7  ;;  %v726_v51 = vpop.permute.xlu0 %725 }
 0x19e   : > { %1890 = vrot.lane.b32.xlu1 %v5729_v5, %s6754_s21  ;;  %798 = vst.msk [vmem:[#allocation6 + $0xc0] sm:$0xff] %vm773_vm3, %v726_v51  ;;  %v5883_v51 = vld [vmem:[#allocation2 + $0x182] sm:$0xff] }
 0x19f   : > { %1888 = vrot.lane.b32.xlu0 %v5737_v8, %s6754_s21 }
 0x1a0   : > { %v2044_v54 = vpop.permute.xlu1 %2043  ;;  %v2182_v55 = vld [vmem:[#allocation6 + $0xb8] sm:$0xff] }
 0x1a1   : > { %2133 = vst.msk [vmem:[#allocation6 + $0x38] sm:$0xff] %vm6735_vm10, %v2044_v54  ;;  %v2042_v34 = vpop.permute.xlu0 %2041  ;;  %v2181_v35 = vld [vmem:[#allocation6 + $0xb0] sm:$0xff] }
 0x1a2   : > { %1858 = vrot.lane.b32.xlu1 %v5739_v52, %s6754_s21  ;;  %2132 = vst.msk [vmem:[#allocation6 + $0x30] sm:$0xff] %vm6735_vm10, %v2042_v34  ;;  %v4553_v39 = vpack.c.bf16 %v2182_v55, %v2181_v35 }
 0x1a3   : > { %1856 = vrot.lane.b32.xlu0 %v5747_v33, %s6754_s21 }
 0x1a4   : > { %v696_v41 = vpop.permute.xlu1 %695  ;;  %4555 = vmatprep.subr.msk.bf16.mxu0 %vm5369_vm12, %v4553_v39 }
 0x1a5   : > { %783 = vst.msk [vmem:[#allocation6 + $0x48] sm:$0xff] %vm773_vm3, %v696_v41  ;;  %v694_v47 = vpop.permute.xlu0 %693  ;;  %v1978_v41 = vld [vmem:[#allocation2 + $0xca] sm:$0xff] }
 0x1a6   : > { %2083 = vrot.lane.b32.xlu1 %v5749_v36, %s6731_s22  ;;  %782 = vst.msk [vmem:[#allocation6 + $0x40] sm:$0xff] %vm773_vm3, %v694_v47 }
 0x1a7   : > { %2081 = vrot.lane.b32.xlu0 %v5759_v43, %s6731_s22 }
 0x1a8   : > { %v921_v53 = vpop.permute.xlu1 %920  ;;  %v2166_v11 = vld [vmem:[#allocation6 + $0x38] sm:$0xff] }
 0x1a9   : > { %992 = vst.msk [vmem:[#allocation6 + $0xc8] sm:$0xff] %vm966_vm4, %v921_v53  ;;  %v919_v17 = vpop.permute.xlu0 %918  ;;  %v2165_v23 = vld [vmem:[#allocation6 + $0x30] sm:$0xff] }
 0x1aa   : > { %735 = vrot.lane.b32.xlu1 %v5613_v40, %s6723_s30  ;;  %991 = vst.msk [vmem:[#allocation6 + $0xc0] sm:$0xff] %vm966_vm4, %v919_v17  ;;  %v4556_v29 = vpack.c.bf16 %v2166_v11, %v2165_v23  ;;  %v5777_v40 = vld [vmem:[#allocation2 + $0xaa] sm:$0xff]  ;;  %v1977_v11 = vld [vmem:[#allocation2 + $0xc2] sm:$0xff] }
 0x1ab   : > { %733 = vrot.lane.b32.xlu0 %v5621_v42, %s6723_s30 }
 0x1ac   : > { %v889_v30 = vpop.permute.xlu1 %888  ;;  %4558 = vmatpush3.bf16.xpose.msk.msra.mxu0 %vm5369_vm12, %v4556_v29 }
 0x1ad   : > { %976 = vst.msk [vmem:[#allocation6 + $0x48] sm:$0xff] %vm966_vm4, %v889_v30  ;;  %v887_v31 = vpop.permute.xlu0 %886 }
 0x1ae   : > { %2051 = vrot.lane.b32.xlu1 %v5767_v25, %s6731_s22  ;;  %975 = vst.msk [vmem:[#allocation6 + $0x40] sm:$0xff] %vm966_vm4, %v887_v31 }
 0x1af   : > { %2049 = vrot.lane.b32.xlu0 %v5777_v40, %s6731_s22 }
 0x1b0   : > { %v1114_v9 = vpop.permute.xlu1 %1113 }
 0x1b1   : > { %1185 = vst.msk [vmem:[#allocation6 + $0xc8] sm:$0xff] %vm6740_vm5, %v1114_v9  ;;  %v1112_v42 = vpop.permute.xlu0 %1111 }
 0x1b2   : > { %703 = vrot.lane.b32.xlu1 %v5623_v44, %s6723_s30  ;;  %1184 = vst.msk [vmem:[#allocation6 + $0xc0] sm:$0xff] %vm6740_vm5, %v1112_v42 }
 0x1b3   : > { %701 = vrot.lane.b32.xlu0 %v5631_v1, %s6723_s30 }
 0x1b4   : > { %v1082_v32 = vpop.permute.xlu1 %1081 }
 0x1b5   : > { %1169 = vst.msk [vmem:[#allocation6 + $0x48] sm:$0xff] %vm6740_vm5, %v1082_v32  ;;  %v1080_v10 = vpop.permute.xlu0 %1079 }
 0x1b6   : > { %928 = vrot.lane.b32.xlu1 %v5633_v21, %s6753_s23  ;;  %1168 = vst.msk [vmem:[#allocation6 + $0x40] sm:$0xff] %vm6740_vm5, %v1080_v10 }
 0x1b7   : > { %926 = vrot.lane.b32.xlu0 %v5643_v26, %s6753_s23 }
 0x1b8   : > { %v1307_v13 = vpop.permute.xlu1 %1306 }
 0x1b9   : > { %1378 = vst.msk [vmem:[#allocation6 + $0xc8] sm:$0xff] %vm6739_vm6, %v1307_v13  ;;  %v1305_v44 = vpop.permute.xlu0 %1304 }
 0x1ba   : > { %896 = vrot.lane.b32.xlu1 %v5651_v38, %s6753_s23  ;;  %1377 = vst.msk [vmem:[#allocation6 + $0xc0] sm:$0xff] %vm6739_vm6, %v1305_v44 }
 0x1bb   : > { %894 = vrot.lane.b32.xlu0 %v5661_v48, %s6753_s23 }
 0x1bc   : > { %v1275_v1 = vpop.permute.xlu1 %1274 }
 0x1bd   : > { %1362 = vst.msk [vmem:[#allocation6 + $0x48] sm:$0xff] %vm6739_vm6, %v1275_v1  ;;  %v1273_v21 = vpop.permute.xlu0 %1272  ;;  %v1610_v1 = vld [vmem:[#allocation2 + $0x1a0] sm:$0xff] }
 0x1be   : > { %1121 = vrot.lane.b32.xlu1 %v5472_v45, %s6756_s24  ;;  %1361 = vst.msk [vmem:[#allocation6 + $0x40] sm:$0xff] %vm6739_vm6, %v1273_v21 }
 0x1bf   : > { %1119 = vrot.lane.b32.xlu0 %v5474_v46, %s6756_s24 }
 0x1c0   : > { %v1500_v26 = vpop.permute.xlu1 %1499 }
 0x1c1   : > { %1571 = vst.msk [vmem:[#allocation6 + $0xc8] sm:$0xff] %vm6738_vm7, %v1500_v26  ;;  %v1498_v38 = vpop.permute.xlu0 %1497  ;;  %v1609_v26 = vld [vmem:[#allocation2 + $0x198] sm:$0xff] }
 0x1c2   : > { %1089 = vrot.lane.b32.xlu1 %v5488_v57, %s6756_s24  ;;  %1570 = vst.msk [vmem:[#allocation6 + $0xc0] sm:$0xff] %vm6738_vm7, %v1498_v38 }
 0x1c3   : > { %1087 = vrot.lane.b32.xlu0 %v5490_v61, %s6756_s24 }
 0x1c4   : > { %v1468_v48 = vpop.permute.xlu1 %1467 }
 0x1c5   : > { %1555 = vst.msk [vmem:[#allocation6 + $0x48] sm:$0xff] %vm6738_vm7, %v1468_v48  ;;  %v1466_v45 = vpop.permute.xlu0 %1465  ;;  %v1594_v48 = vld [vmem:[#allocation2 + $0xe0] sm:$0xff] }
 0x1c6   : > { %1314 = vrot.lane.b32.xlu1 %v5729_v5, %s6750_s15  ;;  %1554 = vst.msk [vmem:[#allocation6 + $0x40] sm:$0xff] %vm6738_vm7, %v1466_v45 }
 0x1c7   : > { %1312 = vrot.lane.b32.xlu0 %v5737_v8, %s6750_s15 }
 0x1c8   : > { %v1694_v46 = vpop.permute.xlu1 %1693 }
 0x1c9   : > { %1765 = vst.msk [vmem:[#allocation6 + $0xc8] sm:$0xff] %vm6737_vm8, %v1694_v46  ;;  %v1692_v57 = vpop.permute.xlu0 %1691  ;;  %v1593_v46 = vld [vmem:[#allocation2 + $0xd8] sm:$0xff] }
 0x1ca   : > { %1282 = vrot.lane.b32.xlu1 %v5739_v52, %s6750_s15  ;;  %1764 = vst.msk [vmem:[#allocation6 + $0xc0] sm:$0xff] %vm6737_vm8, %v1692_v57 }
 0x1cb   : > { %1280 = vrot.lane.b32.xlu0 %v5747_v33, %s6750_s15 }
 0x1cc   : > { %v1662_v61 = vpop.permute.xlu1 %1661 }
 0x1cd   : > { %1749 = vst.msk [vmem:[#allocation6 + $0x48] sm:$0xff] %vm6737_vm8, %v1662_v61  ;;  %v1660_v14 = vpop.permute.xlu0 %1659  ;;  %v1803_v61 = vld [vmem:[#allocation2 + $0x1a1] sm:$0xff] }
 0x1ce   : > { %1507 = vrot.lane.b32.xlu1 %v5749_v36, %s6755_s16  ;;  %1748 = vst.msk [vmem:[#allocation6 + $0x40] sm:$0xff] %vm6737_vm8, %v1660_v14 }
 0x1cf   : > { %1505 = vrot.lane.b32.xlu0 %v5759_v43, %s6755_s16 }
 0x1d0   : > { %v1887_v60 = vpop.permute.xlu1 %1886 }
 0x1d1   : > { %1958 = vst.msk [vmem:[#allocation6 + $0xc8] sm:$0xff] %vm6736_vm9, %v1887_v60  ;;  %v1885_v63 = vpop.permute.xlu0 %1884  ;;  %v1802_v60 = vld [vmem:[#allocation2 + $0x199] sm:$0xff] }
 0x1d2   : > { %1475 = vrot.lane.b32.xlu1 %v5767_v25, %s6755_s16  ;;  %1957 = vst.msk [vmem:[#allocation6 + $0xc0] sm:$0xff] %vm6736_vm9, %v1885_v63 }
 0x1d3   : > { %1473 = vrot.lane.b32.xlu0 %v5777_v40, %s6755_s16 }
 0x1d4   : > { %v1855_v20 = vpop.permute.xlu1 %1854 }
 0x1d5   : > { %1942 = vst.msk [vmem:[#allocation6 + $0x48] sm:$0xff] %vm6736_vm9, %v1855_v20  ;;  %v1853_v3 = vpop.permute.xlu0 %1852 }
 0x1d6   : > { %1701 = vrot.lane.b32.xlu1 %v5833_v16, %s6749_s20  ;;  %1941 = vst.msk [vmem:[#allocation6 + $0x40] sm:$0xff] %vm6736_vm9, %v1853_v3  ;;  %v1786_v3 = vld [vmem:[#allocation2 + $0xd9] sm:$0xff] }
 0x1d7   : > { %1699 = vrot.lane.b32.xlu0 %v5841_v22, %s6749_s20 }
 0x1d8   : > { %v2080_v24 = vpop.permute.xlu1 %2079 }
 0x1d9   : > { %2151 = vst.msk [vmem:[#allocation6 + $0xc8] sm:$0xff] %vm6735_vm10, %v2080_v24  ;;  %v2078_v37 = vpop.permute.xlu0 %2077 }
 0x1da   : > { %1669 = vrot.lane.b32.xlu1 %v5843_v18, %s6749_s20  ;;  %2150 = vst.msk [vmem:[#allocation6 + $0xc0] sm:$0xff] %vm6735_vm10, %v2078_v37 }
 0x1db   : > { %1667 = vrot.lane.b32.xlu0 %v5851_v28, %s6749_s20 }
 0x1dc   : > { %v732_v49 = vpop.permute.xlu1 %731 }
 0x1dd   : > { %801 = vst.msk [vmem:[#allocation6 + $0xd8] sm:$0xff] %vm773_vm3, %v732_v49  ;;  %v730_v58 = vpop.permute.xlu0 %729  ;;  %v1995_v49 = vld [vmem:[#allocation2 + $0x19a] sm:$0xff] }
 0x1de   : > { %1894 = vrot.lane.b32.xlu1 %v5853_v56, %s6754_s21  ;;  %800 = vst.msk [vmem:[#allocation6 + $0xd0] sm:$0xff] %vm773_vm3, %v730_v58  ;;  %v1980_v58 = vld [vmem:[#allocation2 + $0xe2] sm:$0xff] }
 0x1df   : > { %1892 = vrot.lane.b32.xlu0 %v5861_v50, %s6754_s21 }
 0x1e0   : > { %v2048_v62 = vpop.permute.xlu1 %2047  ;;  %v2184_v2 = vld [vmem:[#allocation6 + $0xc8] sm:$0xff] }
 0x1e1   : > { %2135 = vst.msk [vmem:[#allocation6 + $0x48] sm:$0xff] %vm6735_vm10, %v2048_v62  ;;  %v2046_v19 = vpop.permute.xlu0 %2045  ;;  %v2183_v27 = vld [vmem:[#allocation6 + $0xc0] sm:$0xff] }
 0x1e2   : > { %1862 = vrot.lane.b32.xlu1 %v5863_v59, %s6754_s21  ;;  %2134 = vst.msk [vmem:[#allocation6 + $0x40] sm:$0xff] %vm6735_vm10, %v2046_v19  ;;  %v4559_v4 = vpack.c.bf16 %v2184_v2, %v2183_v27  ;;  %v1979_v2 = vld [vmem:[#allocation2 + $0xda] sm:$0xff] }
 0x1e3   : > { %1860 = vrot.lane.b32.xlu0 %v5871_v15, %s6754_s21 }
 0x1e4   : > { %v700_v7 = vpop.permute.xlu1 %699  ;;  %4561 = vmatprep.subr.msk.bf16.mxu0 %vm5369_vm12, %v4559_v4 }
 0x1e5   : > { %785 = vst.msk [vmem:[#allocation6 + $0x58] sm:$0xff] %vm773_vm3, %v700_v7  ;;  %v698_v54 = vpop.permute.xlu0 %697 }
 0x1e6   : > { %2087 = vrot.lane.b32.xlu1 %v5873_v6, %s6731_s22  ;;  %784 = vst.msk [vmem:[#allocation6 + $0x50] sm:$0xff] %vm773_vm3, %v698_v54  ;;  %v2191_v54 = vld [vmem:[%s6758_s2] sm:$0xff]  ;;  %s6762_s2 = smov 64  }
 0x1e7   : > { %2085 = vrot.lane.b32.xlu0 %v5883_v51, %s6731_s22 }
 0x1e8   : > { %v925_v55 = vpop.permute.xlu1 %924  ;;  %v2168_v34 = vld [vmem:[#allocation6 + $0x48] sm:$0xff] }
 0x1e9   : > { %994 = vst.msk [vmem:[#allocation6 + $0xd8] sm:$0xff] %vm966_vm4, %v925_v55  ;;  %v923_v35 = vpop.permute.xlu0 %922  ;;  %v2167_v39 = vld [vmem:[#allocation6 + $0x40] sm:$0xff]  ;;  %v4761_v55 = vmov 0  }
 0x1ea   : > { %739 = vrot.lane.b32.xlu1 %v5729_v5, %s6723_s30  ;;  %993 = vst.msk [vmem:[#allocation6 + $0xd0] sm:$0xff] %vm966_vm4, %v923_v35  ;;  %v4562_v47 = vpack.c.bf16 %v2168_v34, %v2167_v39  ;;  %4683 = vset.pattern.permute.xlu0 %v4761_v55 }
 0x1eb   : > { %737 = vrot.lane.b32.xlu0 %v5737_v8, %s6723_s30 }
 0x1ec   : > { %v893_v53 = vpop.permute.xlu1 %892  ;;  %4564 = vmatpush3.bf16.xpose.msk.msra.mxu0 %vm5369_vm12, %v4562_v47 }
 0x1ed   : > { %978 = vst.msk [vmem:[#allocation6 + $0x58] sm:$0xff] %vm966_vm4, %v893_v53  ;;  %v891_v17 = vpop.permute.xlu0 %890 }
 0x1ee   : > { %2055 = vrot.lane.b32.xlu1 %v1978_v41, %s6731_s22  ;;  %977 = vst.msk [vmem:[#allocation6 + $0x50] sm:$0xff] %vm966_vm4, %v891_v17 }
 0x1ef   : > { %2053 = vrot.lane.b32.xlu0 %v1977_v11, %s6731_s22 }
 0x1f0   : > { %v1118_v5 = vpop.permute.xlu1 %1117 }
 0x1f1   : > { %1187 = vst.msk [vmem:[#allocation6 + $0xd8] sm:$0xff] %vm6740_vm5, %v1118_v5  ;;  %v1116_v8 = vpop.permute.xlu0 %1115 }
 0x1f2   : > { %707 = vrot.lane.b32.xlu1 %v5739_v52, %s6723_s30  ;;  %1186 = vst.msk [vmem:[#allocation6 + $0xd0] sm:$0xff] %vm6740_vm5, %v1116_v8 }
 0x1f3   : > { %705 = vrot.lane.b32.xlu0 %v5747_v33, %s6723_s30  ;;  %s6727_s30 = smov 48  }
 0x1f4   : > { %v1086_v23 = vpop.permute.xlu1 %1085 }
 0x1f5   : > { %1171 = vst.msk [vmem:[#allocation6 + $0x58] sm:$0xff] %vm6740_vm5, %v1086_v23  ;;  %v1084_v29 = vpop.permute.xlu0 %1083 }
 0x1f6   : > { %932 = vrot.lane.b32.xlu1 %v5749_v36, %s6753_s23  ;;  %1170 = vst.msk [vmem:[#allocation6 + $0x50] sm:$0xff] %vm6740_vm5, %v1084_v29 }
 0x1f7   : > { %930 = vrot.lane.b32.xlu0 %v5759_v43, %s6753_s23 }
 0x1f8   : > { %v1311_v30 = vpop.permute.xlu1 %1310 }
 0x1f9   : > { %1380 = vst.msk [vmem:[#allocation6 + $0xd8] sm:$0xff] %vm6739_vm6, %v1311_v30  ;;  %v1309_v52 = vpop.permute.xlu0 %1308 }
 0x1fa   : > { %900 = vrot.lane.b32.xlu1 %v5767_v25, %s6753_s23  ;;  %1379 = vst.msk [vmem:[#allocation6 + $0xd0] sm:$0xff] %vm6739_vm6, %v1309_v52 }
 0x1fb   : > { %898 = vrot.lane.b32.xlu0 %v5777_v40, %s6753_s23 }
 0x1fc   : > { %v1279_v33 = vpop.permute.xlu1 %1278 }
 0x1fd   : > { %1364 = vst.msk [vmem:[#allocation6 + $0x58] sm:$0xff] %vm6739_vm6, %v1279_v33  ;;  %v1277_v36 = vpop.permute.xlu0 %1276 }
 0x1fe   : > { %1125 = vrot.lane.b32.xlu1 %v5833_v16, %s6756_s24  ;;  %1363 = vst.msk [vmem:[#allocation6 + $0x50] sm:$0xff] %vm6739_vm6, %v1277_v36  ;;  %v1787_v16 = vld [vmem:[#allocation2 + $0xe1] sm:$0xff] }
 0x1ff   : > { %1123 = vrot.lane.b32.xlu0 %v5841_v22, %s6756_s24 }
 0x200   : > { %v1504_v43 = vpop.permute.xlu1 %1503 }
 0x201   : > { %1573 = vst.msk [vmem:[#allocation6 + $0xd8] sm:$0xff] %vm6738_vm7, %v1504_v43  ;;  %v1502_v25 = vpop.permute.xlu0 %1501 }
 0x202   : > { %1093 = vrot.lane.b32.xlu1 %v5843_v18, %s6756_s24  ;;  %1572 = vst.msk [vmem:[#allocation6 + $0xd0] sm:$0xff] %vm6738_vm7, %v1502_v25 }
 0x203   : > { %1091 = vrot.lane.b32.xlu0 %v5851_v28, %s6756_s24  ;;  %v1996_v28 = vld [vmem:[#allocation2 + $0x1a2] sm:$0xff] }
 0x204   : > { %v1472_v40 = vpop.permute.xlu1 %1471 }
 0x205   : > { %1557 = vst.msk [vmem:[#allocation6 + $0x58] sm:$0xff] %vm6738_vm7, %v1472_v40  ;;  %v1470_v31 = vpop.permute.xlu0 %1469 }
 0x206   : > { %1318 = vrot.lane.b32.xlu1 %v5853_v56, %s6750_s15  ;;  %1556 = vst.msk [vmem:[#allocation6 + $0x50] sm:$0xff] %vm6738_vm7, %v1470_v31 }
 0x207   : > { %1316 = vrot.lane.b32.xlu0 %v5861_v50, %s6750_s15 }
 0x208   : > { %v1698_v9 = vpop.permute.xlu1 %1697 }
 0x209   : > { %1767 = vst.msk [vmem:[#allocation6 + $0xd8] sm:$0xff] %vm6737_vm8, %v1698_v9  ;;  %v1696_v42 = vpop.permute.xlu0 %1695 }
 0x20a   : > { %1286 = vrot.lane.b32.xlu1 %v5863_v59, %s6750_s15  ;;  %1766 = vst.msk [vmem:[#allocation6 + $0xd0] sm:$0xff] %vm6737_vm8, %v1696_v42 }
 0x20b   : > { %1284 = vrot.lane.b32.xlu0 %v5871_v15, %s6750_s15  ;;  %v5979_v15 = vld [vmem:[%s6757_s1] sm:$0xff]  ;;  %s6761_s1 = smov 32  }
 0x20c   : > { %v1666_v32 = vpop.permute.xlu1 %1665  ;;  %4441 = vmatprep.mubr.msk.f32.mxu0 %vm6734_vm11, %v5979_v15 }
 0x20d   : > { %1751 = vst.msk [vmem:[#allocation6 + $0x58] sm:$0xff] %vm6737_vm8, %v1666_v32  ;;  %v1664_v10 = vpop.permute.xlu0 %1663 }
 0x20e   : > { %1511 = vrot.lane.b32.xlu1 %v5873_v6, %s6755_s16  ;;  %1750 = vst.msk [vmem:[#allocation6 + $0x50] sm:$0xff] %vm6737_vm8, %v1664_v10 }
 0x20f   : > { %1509 = vrot.lane.b32.xlu0 %v5883_v51, %s6755_s16 }
 0x210   : > { %v1891_v13 = vpop.permute.xlu1 %1890 }
 0x211   : > { %1960 = vst.msk [vmem:[#allocation6 + $0xd8] sm:$0xff] %vm6736_vm9, %v1891_v13  ;;  %v1889_v44 = vpop.permute.xlu0 %1888 }
 0x212   : > { %1479 = vrot.lane.b32.xlu1 %v1978_v41, %s6755_s16  ;;  %1959 = vst.msk [vmem:[#allocation6 + $0xd0] sm:$0xff] %vm6736_vm9, %v1889_v44 }
 0x213   : > { %1477 = vrot.lane.b32.xlu0 %v1977_v11, %s6755_s16 }
 0x214   : > { %v1859_v21 = vpop.permute.xlu1 %1858 }
 0x215   : > { %1944 = vst.msk [vmem:[#allocation6 + $0x58] sm:$0xff] %vm6736_vm9, %v1859_v21  ;;  %v1857_v38 = vpop.permute.xlu0 %1856 }
 0x216   : > { %1705 = vrot.lane.b32.xlu1 %v1610_v1, %s6749_s20  ;;  %1943 = vst.msk [vmem:[#allocation6 + $0x50] sm:$0xff] %vm6736_vm9, %v1857_v38 }
 0x217   : > { %1703 = vrot.lane.b32.xlu0 %v1609_v26, %s6749_s20 }
 0x218   : > { %v2084_v45 = vpop.permute.xlu1 %2083 }
 0x219   : > { %2153 = vst.msk [vmem:[#allocation6 + $0xd8] sm:$0xff] %vm6735_vm10, %v2084_v45  ;;  %v2082_v57 = vpop.permute.xlu0 %2081 }
 0x21a   : > { %1673 = vrot.lane.b32.xlu1 %v1594_v48, %s6749_s20  ;;  %2152 = vst.msk [vmem:[#allocation6 + $0xd0] sm:$0xff] %vm6735_vm10, %v2082_v57 }
 0x21b   : > { %1671 = vrot.lane.b32.xlu0 %v1593_v46, %s6749_s20 }
 0x21c   : > { %v736_v14 = vpop.permute.xlu1 %735 }
 0x21d   : > { %803 = vst.msk [vmem:[#allocation6 + $0xe8] sm:$0xff] %vm773_vm3, %v736_v14  ;;  %v734_v63 = vpop.permute.xlu0 %733 }
 0x21e   : > { %1898 = vrot.lane.b32.xlu1 %v1803_v61, %s6754_s21  ;;  %802 = vst.msk [vmem:[#allocation6 + $0xe0] sm:$0xff] %vm773_vm3, %v734_v63 }
 0x21f   : > { %1896 = vrot.lane.b32.xlu0 %v1802_v60, %s6754_s21 }
 0x220   : > { %v2052_v20 = vpop.permute.xlu1 %2051  ;;  %v2186_v22 = vld [vmem:[#allocation6 + $0xd8] sm:$0xff] }
 0x221   : > { %2137 = vst.msk [vmem:[#allocation6 + $0x58] sm:$0xff] %vm6735_vm10, %v2052_v20  ;;  %v2050_v18 = vpop.permute.xlu0 %2049  ;;  %v2185_v24 = vld [vmem:[#allocation6 + $0xd0] sm:$0xff] }
 0x222   : > { %1866 = vrot.lane.b32.xlu1 %v1787_v16, %s6754_s21  ;;  %2136 = vst.msk [vmem:[#allocation6 + $0x50] sm:$0xff] %vm6735_vm10, %v2050_v18  ;;  %v4565_v37 = vpack.c.bf16 %v2186_v22, %v2185_v24 }
 0x223   : > { %1864 = vrot.lane.b32.xlu0 %v1786_v3, %s6754_s21 }
 0x224   : > { %v704_v56 = vpop.permute.xlu1 %703  ;;  %4567 = vmatprep.subr.msk.bf16.mxu0 %vm5369_vm12, %v4565_v37 }
 0x225   : > { %787 = vst.msk [vmem:[#allocation6 + $0x68] sm:$0xff] %vm773_vm3, %v704_v56  ;;  %v702_v50 = vpop.permute.xlu0 %701 }
 0x226   : > { %2091 = vrot.lane.b32.xlu1 %v1996_v28, %s6731_s22  ;;  %786 = vst.msk [vmem:[#allocation6 + $0x60] sm:$0xff] %vm773_vm3, %v702_v50 }
 0x227   : > { %2089 = vrot.lane.b32.xlu0 %v1995_v49, %s6731_s22 }
 0x228   : > { %v929_v59 = vpop.permute.xlu1 %928  ;;  %v2170_v62 = vld [vmem:[#allocation6 + $0x58] sm:$0xff] }
 0x229   : > { %996 = vst.msk [vmem:[#allocation6 + $0xe8] sm:$0xff] %vm966_vm4, %v929_v59  ;;  %v927_v19 = vpop.permute.xlu0 %926  ;;  %v2169_v27 = vld [vmem:[#allocation6 + $0x50] sm:$0xff] }
 0x22a   : > { %2059 = vrot.lane.b32.xlu1 %v1980_v58, %s6731_s22  ;;  %995 = vst.msk [vmem:[#allocation6 + $0xe0] sm:$0xff] %vm966_vm4, %v927_v19  ;;  %v4568_v6 = vpack.c.bf16 %v2170_v62, %v2169_v27 }
 0x22b   : > { %2057 = vrot.lane.b32.xlu0 %v1979_v2, %s6731_s22 }
 0x22c   : > { %v897_v4 = vpop.permute.xlu1 %896  ;;  %4570 = vmatpush3.bf16.xpose.msk.msra.mxu0 %vm5369_vm12, %v4568_v6 }
 0x22d   : > { %980 = vst.msk [vmem:[#allocation6 + $0x68] sm:$0xff] %vm966_vm4, %v897_v4  ;;  %v895_v7 = vpop.permute.xlu0 %894 }
 0x22e   : > { %979 = vst.msk [vmem:[#allocation6 + $0x60] sm:$0xff] %vm966_vm4, %v895_v7 }
 0x22f   : > { %2194 = vperm.xlu0 %4683, %v2191_v54  }
 0x230   : > { %v1122_v51 = vpop.permute.xlu1 %1121 }
 0x231   : > { %1189 = vst.msk [vmem:[#allocation6 + $0xe8] sm:$0xff] %vm6740_vm5, %v1122_v51  ;;  %v1120_v34 = vpop.permute.xlu0 %1119 }
 0x232   : > { %1188 = vst.msk [vmem:[#allocation6 + $0xe0] sm:$0xff] %vm6740_vm5, %v1120_v34 }
 0x234   : > { %v1090_v35 = vpop.permute.xlu1 %1089 }
 0x235   : > { %1173 = vst.msk [vmem:[#allocation6 + $0x68] sm:$0xff] %vm6740_vm5, %v1090_v35  ;;  %v1088_v39 = vpop.permute.xlu0 %1087 }
 0x236   : > { %1172 = vst.msk [vmem:[#allocation6 + $0x60] sm:$0xff] %vm6740_vm5, %v1088_v39 }
 0x238   : > { %v1315_v41 = vpop.permute.xlu1 %1314 }
 0x239   : > { %1382 = vst.msk [vmem:[#allocation6 + $0xe8] sm:$0xff] %vm6739_vm6, %v1315_v41  ;;  %v1313_v47 = vpop.permute.xlu0 %1312 }
 0x23a   : > { %1381 = vst.msk [vmem:[#allocation6 + $0xe0] sm:$0xff] %vm6739_vm6, %v1313_v47 }
 0x23c   : > { %v1283_v53 = vpop.permute.xlu1 %1282 }
 0x23d   : > { %1366 = vst.msk [vmem:[#allocation6 + $0x68] sm:$0xff] %vm6739_vm6, %v1283_v53  ;;  %v1281_v11 = vpop.permute.xlu0 %1280 }
 0x23e   : > { %1365 = vst.msk [vmem:[#allocation6 + $0x60] sm:$0xff] %vm6739_vm6, %v1281_v11 }
 0x240   : > { %v1508_v17 = vpop.permute.xlu1 %1507 }
 0x241   : > { %1575 = vst.msk [vmem:[#allocation6 + $0xe8] sm:$0xff] %vm6738_vm7, %v1508_v17  ;;  %v1506_v5 = vpop.permute.xlu0 %1505 }
 0x242   : > { %1574 = vst.msk [vmem:[#allocation6 + $0xe0] sm:$0xff] %vm6738_vm7, %v1506_v5 }
 0x244   : > { %v1476_v8 = vpop.permute.xlu1 %1475 }
 0x245   : > { %1559 = vst.msk [vmem:[#allocation6 + $0x68] sm:$0xff] %vm6738_vm7, %v1476_v8  ;;  %v1474_v23 = vpop.permute.xlu0 %1473 }
 0x246   : > { %1558 = vst.msk [vmem:[#allocation6 + $0x60] sm:$0xff] %vm6738_vm7, %v1474_v23 }
 0x248   : > { %v1702_v29 = vpop.permute.xlu1 %1701 }
 0x249   : > { %1769 = vst.msk [vmem:[#allocation6 + $0xe8] sm:$0xff] %vm6737_vm8, %v1702_v29  ;;  %v1700_v30 = vpop.permute.xlu0 %1699 }
 0x24a   : > { %1768 = vst.msk [vmem:[#allocation6 + $0xe0] sm:$0xff] %vm6737_vm8, %v1700_v30  ;;  %v2537_v30 = vld [vmem:[#allocation3 + $0x1] ss:$2 sm:$0xff] }
 0x24c   : > { %v1670_v52 = vpop.permute.xlu1 %1669 }
 0x24d   : > { %1753 = vst.msk [vmem:[#allocation6 + $0x68] sm:$0xff] %vm6737_vm8, %v1670_v52  ;;  %v1668_v33 = vpop.permute.xlu0 %1667  ;;  %v2513_v52 = vld [vmem:[#allocation3] ss:$2 sm:$0xff] }
 0x24e   : > { %1752 = vst.msk [vmem:[#allocation6 + $0x60] sm:$0xff] %vm6737_vm8, %v1668_v33 }
 0x24f   : > { %2528 = vst.msk [vmem:[#allocation7] sm:$0xff] %vm2370_vm13, %v2513_v52 }
 0x250   : > { %v1895_v36 = vpop.permute.xlu1 %1894 }
 0x251   : > { %1962 = vst.msk [vmem:[#allocation6 + $0xe8] sm:$0xff] %vm6736_vm9, %v1895_v36  ;;  %v1893_v43 = vpop.permute.xlu0 %1892 }
 0x252   : > { %1961 = vst.msk [vmem:[#allocation6 + $0xe0] sm:$0xff] %vm6736_vm9, %v1893_v43 }
 0x254   : > { %v1863_v25 = vpop.permute.xlu1 %1862 }
 0x255   : > { %1946 = vst.msk [vmem:[#allocation6 + $0x68] sm:$0xff] %vm6736_vm9, %v1863_v25  ;;  %v1861_v40 = vpop.permute.xlu0 %1860 }
 0x256   : > { %1945 = vst.msk [vmem:[#allocation6 + $0x60] sm:$0xff] %vm6736_vm9, %v1861_v40 }
 0x258   : > { %v2088_v31 = vpop.permute.xlu1 %2087 }
 0x259   : > { %2155 = vst.msk [vmem:[#allocation6 + $0xe8] sm:$0xff] %vm6735_vm10, %v2088_v31  ;;  %v2086_v9 = vpop.permute.xlu0 %2085 }
 0x25a   : > { %2154 = vst.msk [vmem:[#allocation6 + $0xe0] sm:$0xff] %vm6735_vm10, %v2086_v9 }
 0x25c   : > { %v740_v42 = vpop.permute.xlu1 %739 }
 0x25d   : > { %805 = vst.msk [vmem:[#allocation6 + $0xf8] sm:$0xff] %vm773_vm3, %v740_v42  ;;  %v738_v32 = vpop.permute.xlu0 %737 }
 0x25e   : > { %804 = vst.msk [vmem:[#allocation6 + $0xf0] sm:$0xff] %vm773_vm3, %v738_v32 }
 0x260   : > { %v2056_v10 = vpop.permute.xlu1 %2055  ;;  %v2188_v13 = vld [vmem:[#allocation6 + $0xe8] sm:$0xff] }
 0x261   : > { %2139 = vst.msk [vmem:[#allocation6 + $0x68] sm:$0xff] %vm6735_vm10, %v2056_v10  ;;  %v2054_v44 = vpop.permute.xlu0 %2053  ;;  %v2187_v1 = vld [vmem:[#allocation6 + $0xe0] sm:$0xff] }
 0x262   : > { %2138 = vst.msk [vmem:[#allocation6 + $0x60] sm:$0xff] %vm6735_vm10, %v2054_v44  ;;  %v4571_v21 = vpack.c.bf16 %v2188_v13, %v2187_v1 }
 0x264   : > { %v708_v26 = vpop.permute.xlu1 %707  ;;  %4573 = vmatprep.subr.msk.bf16.mxu0 %vm5369_vm12, %v4571_v21 }
 0x265   : > { %789 = vst.msk [vmem:[#allocation6 + $0x78] sm:$0xff] %vm773_vm3, %v708_v26  ;;  %v706_v38 = vpop.permute.xlu0 %705 }
 0x266   : > { %788 = vst.msk [vmem:[#allocation6 + $0x70] sm:$0xff] %vm773_vm3, %v706_v38 }
 0x268   : > { %v933_v48 = vpop.permute.xlu1 %932  ;;  %v2172_v45 = vld [vmem:[#allocation6 + $0x68] sm:$0xff] }
 0x269   : > { %998 = vst.msk [vmem:[#allocation6 + $0xf8] sm:$0xff] %vm966_vm4, %v933_v48  ;;  %v931_v46 = vpop.permute.xlu0 %930  ;;  %v2171_v57 = vld [vmem:[#allocation6 + $0x60] sm:$0xff] }
 0x26a   : > { %997 = vst.msk [vmem:[#allocation6 + $0xf0] sm:$0xff] %vm966_vm4, %v931_v46  ;;  %v4574_v61 = vpack.c.bf16 %v2172_v45, %v2171_v57  ;;  %v2594_v48 = vld [vmem:[#allocation3 + $0x2] ss:$2 sm:$0xff] }
 0x26c   : > { %v901_v14 = vpop.permute.xlu1 %900  ;;  %4576 = vmatpush3.bf16.xpose.msk.msra.mxu0 %vm5369_vm12, %v4574_v61 }
 0x26d   : > { %982 = vst.msk [vmem:[#allocation6 + $0x78] sm:$0xff] %vm966_vm4, %v901_v14  ;;  %v899_v60 = vpop.permute.xlu0 %898 }
 0x26e   : > { %981 = vst.msk [vmem:[#allocation6 + $0x70] sm:$0xff] %vm966_vm4, %v899_v60 }
 0x270   : > { %v1126_v63 = vpop.permute.xlu1 %1125 }
 0x271   : > { %1191 = vst.msk [vmem:[#allocation6 + $0xf8] sm:$0xff] %vm6740_vm5, %v1126_v63  ;;  %v1124_v16 = vpop.permute.xlu0 %1123 }
 0x272   : > { %1190 = vst.msk [vmem:[#allocation6 + $0xf0] sm:$0xff] %vm6740_vm5, %v1124_v16 }
 0x274   : > { %v1094_v20 = vpop.permute.xlu1 %1093 }
 0x275   : > { %1175 = vst.msk [vmem:[#allocation6 + $0x78] sm:$0xff] %vm6740_vm5, %v1094_v20  ;;  %v1092_v22 = vpop.permute.xlu0 %1091 }
 0x276   : > { %1174 = vst.msk [vmem:[#allocation6 + $0x70] sm:$0xff] %vm6740_vm5, %v1092_v22 }
 0x278   : > { %v1319_v3 = vpop.permute.xlu1 %1318 }
 0x279   : > { %1384 = vst.msk [vmem:[#allocation6 + $0xf8] sm:$0xff] %vm6739_vm6, %v1319_v3  ;;  %v1317_v18 = vpop.permute.xlu0 %1316 }
 0x27a   : > { %1383 = vst.msk [vmem:[#allocation6 + $0xf0] sm:$0xff] %vm6739_vm6, %v1317_v18 }
 0x27c   : > { %v1287_v24 = vpop.permute.xlu1 %1286 }
 0x27d   : > { %1368 = vst.msk [vmem:[#allocation6 + $0x78] sm:$0xff] %vm6739_vm6, %v1287_v24  ;;  %v1285_v28 = vpop.permute.xlu0 %1284 }
 0x27e   : > { %1367 = vst.msk [vmem:[#allocation6 + $0x70] sm:$0xff] %vm6739_vm6, %v1285_v28  ;;  %vm3006_vm6 = vcmask 588800  }
 0x27f   : > { %vm6283_vm5 = vmpackc.low %vm3006_vm6, %vm3006_vm6 }
 0x280   : > { %v1512_v37 = vpop.permute.xlu1 %1511 }
 0x281   : > { %1577 = vst.msk [vmem:[#allocation6 + $0xf8] sm:$0xff] %vm6738_vm7, %v1512_v37  ;;  %v1510_v56 = vpop.permute.xlu0 %1509 }
 0x282   : > { %1576 = vst.msk [vmem:[#allocation6 + $0xf0] sm:$0xff] %vm6738_vm7, %v1510_v56 }
 0x284   : > { %v1480_v49 = vpop.permute.xlu1 %1479 }
 0x285   : > { %1561 = vst.msk [vmem:[#allocation6 + $0x78] sm:$0xff] %vm6738_vm7, %v1480_v49  ;;  %v1478_v50 = vpop.permute.xlu0 %1477 }
 0x286   : > { %1560 = vst.msk [vmem:[#allocation6 + $0x70] sm:$0xff] %vm6738_vm7, %v1478_v50  ;;  %vm4767_vm7 = vmmov 0  }
 0x287   : > { %4488 = vmatprep.mubr.msk.f32.mxu1 %vm4767_vm7, %v4752_v0 }
 0x288   : > { %v1706_v58 = vpop.permute.xlu1 %1705 }
 0x289   : > { %1771 = vst.msk [vmem:[#allocation6 + $0xf8] sm:$0xff] %vm6737_vm8, %v1706_v58  ;;  %v1704_v59 = vpop.permute.xlu0 %1703 }
 0x28a   : > { %1770 = vst.msk [vmem:[#allocation6 + $0xf0] sm:$0xff] %vm6737_vm8, %v1704_v59 }
 0x28c   : > { %v1674_v62 = vpop.permute.xlu1 %1673 }
 0x28d   : > { %1755 = vst.msk [vmem:[#allocation6 + $0x78] sm:$0xff] %vm6737_vm8, %v1674_v62  ;;  %v1672_v2 = vpop.permute.xlu0 %1671 }
 0x28e   : > { %1754 = vst.msk [vmem:[#allocation6 + $0x70] sm:$0xff] %vm6737_vm8, %v1672_v2  ;;  %vm2982_vm8 = vcmask 589312  }
 0x290   : > { %v1899_v19 = vpop.permute.xlu1 %1898 }
 0x291   : > { %1964 = vst.msk [vmem:[#allocation6 + $0xf8] sm:$0xff] %vm6736_vm9, %v1899_v19  ;;  %v1897_v27 = vpop.permute.xlu0 %1896 }
 0x292   : > { %1963 = vst.msk [vmem:[#allocation6 + $0xf0] sm:$0xff] %vm6736_vm9, %v1897_v27 }
 0x294   : > { %v1867_v6 = vpop.permute.xlu1 %1866 }
 0x295   : > { %1948 = vst.msk [vmem:[#allocation6 + $0x78] sm:$0xff] %vm6736_vm9, %v1867_v6  ;;  %v1865_v4 = vpop.permute.xlu0 %1864 }
 0x296   : > { %1947 = vst.msk [vmem:[#allocation6 + $0x70] sm:$0xff] %vm6736_vm9, %v1865_v4  ;;  %vm2925_vm9 = vcmask 523712  }
 0x298   : > { %v2092_v7 = vpop.permute.xlu1 %2091 }
 0x299   : > { %2157 = vst.msk [vmem:[#allocation6 + $0xf8] sm:$0xff] %vm6735_vm10, %v2092_v7  ;;  %v2090_v51 = vpop.permute.xlu0 %2089 }
 0x29a   : > { %2156 = vst.msk [vmem:[#allocation6 + $0xf0] sm:$0xff] %vm6735_vm10, %v2090_v51 }
 0x29c   : > { %v2060_v54 = vpop.permute.xlu1 %2059 }
 0x29d   : > { %2141 = vst.msk [vmem:[#allocation6 + $0x78] sm:$0xff] %vm6735_vm10, %v2060_v54  ;;  %v2058_v55 = vpop.permute.xlu0 %2057 }
 0x29e   : > { %2140 = vst.msk [vmem:[#allocation6 + $0x70] sm:$0xff] %vm6735_vm10, %v2058_v55  ;;  %vm2868_vm10 = vcmask 458112  }
 0x2a0   : > { %v2190_v34 = vld [vmem:[#allocation6 + $0xf8] sm:$0xff] }
 0x2a1   : > { %v2189_v35 = vld [vmem:[#allocation6 + $0xf0] sm:$0xff] }
 0x2a2   : > { %v4577_v39 = vpack.c.bf16 %v2190_v34, %v2189_v35  ;;  %v4766_v35 = vmov 0.0|0.0  }
 0x2a3   : > { %4583 = vmatprep.subr.bf16.mxu1 %v4766_v35 }
 0x2a4   : > { %v2174_v41 = vld [vmem:[#allocation6 + $0x78] sm:$0xff]  ;;  %4579 = vmatprep.subr.msk.bf16.mxu0 %vm5369_vm12, %v4577_v39 }
 0x2a5   : > { %v2173_v47 = vld [vmem:[#allocation6 + $0x70] sm:$0xff] }
 0x2a6   : > { %v4580_v53 = vpack.c.bf16 %v2174_v41, %v2173_v47 }
 0x2a8   : > { %4582 = vmatpush3.bf16.xpose.msk.msra.mxu0 %vm5369_vm12, %v4580_v53 }
 0x2a9   : > { %4615 = vmatprep.subr.bf16.mxu0 %v4766_v35 }
 0x2ae   : > { %v2195_v11 = vpop.permute.xlu0 %2194 }
 0x2af   : > { %4442 = vmatmul.mubr.msk.f32.vlgmr.msra.gmra.mrb[0].mxu0 %vm6734_vm11, %v5979_v15  ;;  %vm2811_vm11 = vcmask 392512  }
 0x2b0   : > { %4514 = vmatprep.mubr.msk.f32.mxu0 %vm4767_vm7, %v4752_v0 }
 0x382   : > { %v2363_v17 = vpop.f32.mrb[0].mxu0 }
 0x383   : > { %v2364_v5 = vadd.f32 %v2363_v17, %v2195_v11  ;;  %v2365_v8 = vpop.f32.mrb[1].mxu0 }
 0x384   : > { %v2366_v23 = vadd.f32 %v2365_v8, %v2195_v11 }
 0x385   : > { %v2368_v29 = vmax.f32 %v2364_v5, 0.0 }
 0x386   : > { %v2369_v15 = vmax.f32 %v2366_v23, 0.0 }
 0x387   : > { %2416 = vxpose.xlu1.b32.start.end [1/1] (short) %v2368_v29, 128 }
 0x388   : > { %2448 = vxpose.xlu0.b32.start.end [1/1] (short) %v2369_v15, 128 }
 0x3ed   : > { %2560 = vrot.lane.b32.xlu0 %v2537_v30, %s6753_s23 }
 0x407   : > { %v2432_v33 = vpop.trf.xlu1 }
 0x408   : > { %2481 = vst.msk [vmem:[#allocation3 + $0x19] sm:$0xff] %vm2370_vm13, %v2432_v33  ;;  %v2464_v36 = vpop.trf.xlu0 }
 0x409   : > { %2497 = vst.msk [vmem:[#allocation3 + $0xd9] sm:$0xff] %vm2370_vm13, %v2464_v36 }
 0x40b   : > { %v2433_v43 = vpop.trf.xlu1 }
 0x40c   : > { %2482 = vst.msk [vmem:[#allocation3 + $0x21] sm:$0xff] %vm2370_vm13, %v2433_v43  ;;  %v2465_v25 = vpop.trf.xlu0 }
 0x40d   : > { %2498 = vst.msk [vmem:[#allocation3 + $0xe1] sm:$0xff] %vm2370_vm13, %v2465_v25 }
 0x40f   : > { %v2434_v40 = vpop.trf.xlu1 }
 0x410   : > { %2483 = vst.msk [vmem:[#allocation3 + $0x31] sm:$0xff] %vm2370_vm13, %v2434_v40  ;;  %v2466_v31 = vpop.trf.xlu0 }
 0x411   : > { %2499 = vst.msk [vmem:[#allocation3 + $0xf1] sm:$0xff] %vm2370_vm13, %v2466_v31 }
 0x413   : > { %v2435_v9 = vpop.trf.xlu1  ;;  %v2650_v42 = vld [vmem:[#allocation3 + $0x18] ss:$2 sm:$0xff]  ;;  %v2707_v13 = vld [vmem:[#allocation3 + $0x19] ss:$2 sm:$0xff] }
 0x414   : > { %2484 = vst.msk [vmem:[#allocation3 + $0x39] sm:$0xff] %vm2370_vm13, %v2435_v9  ;;  %2673 = vrot.lane.b32.xlu0 %v2650_v42, %s6749_s20  ;;  %v2467_v32 = vpop.trf.xlu0  ;;  %v2764_v21 = vld [vmem:[#allocation3 + $0x1a] ss:$2 sm:$0xff] }
 0x415   : > { %2500 = vst.msk [vmem:[#allocation3 + $0xf9] sm:$0xff] %vm2370_vm13, %v2467_v32  ;;  %v2658_v32 = vld [vmem:[#allocation3 + $0xd8] ss:$2 sm:$0xff] }
 0x417   : > { %v2436_v10 = vpop.trf.xlu1 }
 0x418   : > { %2485 = vst.msk [vmem:[#allocation3 + $0x49] sm:$0xff] %vm2370_vm13, %v2436_v10  ;;  %2730 = vrot.lane.b32.xlu0 %v2707_v13, %s6731_s22  ;;  %v2468_v44 = vpop.trf.xlu0 }
 0x419   : > { %2501 = vst.msk [vmem:[#allocation3 + $0x109] sm:$0xff] %vm2370_vm13, %v2468_v44  ;;  %v2715_v44 = vld [vmem:[#allocation3 + $0xd9] ss:$2 sm:$0xff] }
 0x41b   : > { %v2437_v1 = vpop.trf.xlu1  ;;  %v2539_v26 = vld [vmem:[#allocation3 + $0x31] ss:$2 sm:$0xff]  ;;  %v2515_v45 = vld [vmem:[#allocation3 + $0x30] ss:$2 sm:$0xff] }
 0x41c   : > { %2486 = vst.msk [vmem:[#allocation3 + $0x51] sm:$0xff] %vm2370_vm13, %v2437_v1  ;;  %2787 = vrot.lane.b32.xlu0 %v2764_v21, %s6725_s0  ;;  %2562 = vrot.lane.b32.xlu1 %v2539_v26, %s6753_s23  ;;  %v2469_v38 = vpop.trf.xlu0  ;;  %v2523_v46 = vld [vmem:[#allocation3 + $0xf0] ss:$2 sm:$0xff]  ;;  %2529 = vst.msk [vmem:[#allocation7 + $0x8] sm:$0xff] %vm2370_vm13, %v2515_v45  ;;  %v2878_v63 = vld [vmem:[#allocation3 + $0x31] ss:$2 sm:$0xff] }
 0x41d   : > { %2502 = vst.msk [vmem:[#allocation3 + $0x111] sm:$0xff] %vm2370_vm13, %v2469_v38  ;;  %v2821_v61 = vld [vmem:[#allocation3 + $0x30] ss:$2 sm:$0xff]  ;;  %2533 = vst.msk [vmem:[#allocation7 + $0x28] sm:$0xff] %vm2370_vm13, %v2523_v46  ;;  %s4764_s0 = smov 56  }
 0x41e   : > { %v2596_v16 = vld [vmem:[#allocation3 + $0x32] ss:$2 sm:$0xff]  ;;  %v2547_v26 = vld [vmem:[#allocation3 + $0xf1] ss:$2 sm:$0xff] }
 0x41f   : > { %v2438_v57 = vpop.trf.xlu1  ;;  %v2935_v3 = vld [vmem:[#allocation3 + $0x32] ss:$2 sm:$0xff]  ;;  %v2886_v46 = vld [vmem:[#allocation3 + $0xf1] ss:$2 sm:$0xff] }
 0x420   : > { %2487 = vst.msk [vmem:[#allocation3 + $0x61] sm:$0xff] %vm2370_vm13, %v2438_v57  ;;  %2844 = vrot.lane.b32.xlu0 %v2821_v61, %s6727_s30  ;;  %2617 = vrot.lane.b32.xlu1 %v2594_v48, %s6750_s15  ;;  %v2470_v14 = vpop.trf.xlu0  ;;  %s6729_s30 = smov 64   ;;  %v2772_v21 = vld [vmem:[#allocation3 + $0xda] ss:$2 sm:$0xff] }
 0x421   : > { %2503 = vst.msk [vmem:[#allocation3 + $0x121] sm:$0xff] %vm2370_vm13, %v2470_v14  ;;  %v2829_v38 = vld [vmem:[#allocation3 + $0xf0] ss:$2 sm:$0xff] }
 0x422   : > { %v2604_v45 = vld [vmem:[#allocation3 + $0xf2] ss:$2 sm:$0xff] }
 0x423   : > { %v2439_v60 = vpop.trf.xlu1  ;;  %v2652_v18 = vld [vmem:[#allocation3 + $0x48] ss:$2 sm:$0xff]  ;;  %v2709_v37 = vld [vmem:[#allocation3 + $0x49] ss:$2 sm:$0xff] }
 0x424   : > { %2488 = vst.msk [vmem:[#allocation3 + $0x69] sm:$0xff] %vm2370_vm13, %v2439_v60  ;;  %2901 = vrot.lane.b32.xlu0 %v2878_v63, %s4764_s0  ;;  %2619 = vrot.lane.b32.xlu1 %v2596_v16, %s6750_s15  ;;  %v2471_v20 = vpop.trf.xlu0  ;;  %v2766_v62 = vld [vmem:[#allocation3 + $0x4a] ss:$2 sm:$0xff]  ;;  %v2717_v60 = vld [vmem:[#allocation3 + $0x109] ss:$2 sm:$0xff] }
 0x425   : > { %2504 = vst.msk [vmem:[#allocation3 + $0x129] sm:$0xff] %vm2370_vm13, %v2471_v20  ;;  %v2660_v57 = vld [vmem:[#allocation3 + $0x108] ss:$2 sm:$0xff] }
 0x426   : > { %v2943_v61 = vld [vmem:[#allocation3 + $0xf2] ss:$2 sm:$0xff] }
 0x427   : > { %v2440_v22 = vpop.trf.xlu1  ;;  %v2774_v63 = vld [vmem:[#allocation3 + $0x10a] ss:$2 sm:$0xff] }
 0x428   : > { %2489 = vst.msk [vmem:[#allocation3 + $0x79] sm:$0xff] %vm2370_vm13, %v2440_v22  ;;  %2958 = vrot.lane.b32.xlu0 %v2935_v3, %s6729_s30  ;;  %2675 = vrot.lane.b32.xlu1 %v2652_v18, %s6749_s20  ;;  %v2472_v24 = vpop.trf.xlu0  ;;  %s6759_s30 = smov 40  }
 0x429   : > { %2505 = vst.msk [vmem:[#allocation3 + $0x139] sm:$0xff] %vm2370_vm13, %v2472_v24 }
 0x42b   : > { %v2441_v28 = vpop.trf.xlu1  ;;  %v2541_v56 = vld [vmem:[#allocation3 + $0x61] ss:$2 sm:$0xff]  ;;  %v2517_v50 = vld [vmem:[#allocation3 + $0x60] ss:$2 sm:$0xff] }
 0x42c   : > { %2490 = vst.msk [vmem:[#allocation3 + $0x81] sm:$0xff] %vm2370_vm13, %v2441_v28  ;;  %2732 = vrot.lane.b32.xlu1 %v2709_v37, %s6731_s22  ;;  %2564 = vrot.lane.b32.xlu0 %v2541_v56, %s6753_s23  ;;  %v2473_v49 = vpop.trf.xlu0  ;;  %v2525_v58 = vld [vmem:[#allocation3 + $0x120] ss:$2 sm:$0xff]  ;;  %2530 = vst.msk [vmem:[#allocation7 + $0x10] sm:$0xff] %vm2370_vm13, %v2517_v50  ;;  %s6760_s22 = smov 48  }
 0x42d   : > { %2506 = vst.msk [vmem:[#allocation3 + $0x141] sm:$0xff] %vm2370_vm13, %v2473_v49  ;;  %v2598_v2 = vld [vmem:[#allocation3 + $0x62] ss:$2 sm:$0xff]  ;;  %2534 = vst.msk [vmem:[#allocation7 + $0x30] sm:$0xff] %vm2370_vm13, %v2525_v58  ;;  %v2880_v54 = vld [vmem:[#allocation3 + $0x61] ss:$2 sm:$0xff] }
 0x42e   : > { %v2823_v6 = vld [vmem:[#allocation3 + $0x60] ss:$2 sm:$0xff]  ;;  %v2549_v14 = vld [vmem:[#allocation3 + $0x121] ss:$2 sm:$0xff] }
 0x42f   : > { %v2442_v59 = vpop.trf.xlu1  ;;  %v2937_v41 = vld [vmem:[#allocation3 + $0x62] ss:$2 sm:$0xff]  ;;  %v2888_v3 = vld [vmem:[#allocation3 + $0x121] ss:$2 sm:$0xff] }
 0x430   : > { %2491 = vst.msk [vmem:[#allocation3 + $0x91] sm:$0xff] %vm2370_vm13, %v2442_v59  ;;  %2789 = vrot.lane.b32.xlu1 %v2766_v62, %s6759_s30  ;;  %2621 = vrot.lane.b32.xlu0 %v2598_v2, %s6750_s15  ;;  %v2474_v19 = vpop.trf.xlu0  ;;  %v2606_v16 = vld [vmem:[#allocation3 + $0x122] ss:$2 sm:$0xff] }
 0x431   : > { %2507 = vst.msk [vmem:[#allocation3 + $0x151] sm:$0xff] %vm2370_vm13, %v2474_v19  ;;  %v2831_v22 = vld [vmem:[#allocation3 + $0x120] ss:$2 sm:$0xff]  ;;  %v3000_v2 = vld [vmem:[%s6701_s4] sm:$0xff] }
 0x432   : > { %v2945_v24 = vld [vmem:[#allocation3 + $0x122] ss:$2 sm:$0xff] }
 0x433   : > { %v2443_v27 = vpop.trf.xlu1  ;;  %v2654_v4 = vld [vmem:[#allocation3 + $0x78] ss:$2 sm:$0xff]  ;;  %v2711_v55 = vld [vmem:[#allocation3 + $0x79] ss:$2 sm:$0xff] }
 0x434   : > { %2492 = vst.msk [vmem:[#allocation3 + $0x99] sm:$0xff] %vm2370_vm13, %v2443_v27  ;;  %2846 = vrot.lane.b32.xlu1 %v2823_v6, %s6760_s22  ;;  %2677 = vrot.lane.b32.xlu0 %v2654_v4, %s6749_s20  ;;  %v2475_v7 = vpop.trf.xlu0  ;;  %v2768_v47 = vld [vmem:[#allocation3 + $0x7a] ss:$2 sm:$0xff]  ;;  %v2719_v18 = vld [vmem:[#allocation3 + $0x139] ss:$2 sm:$0xff] }
 0x435   : > { %2508 = vst.msk [vmem:[#allocation3 + $0x159] sm:$0xff] %vm2370_vm13, %v2475_v7  ;;  %v2662_v20 = vld [vmem:[#allocation3 + $0x138] ss:$2 sm:$0xff] }
 0x436   : > { %v2776_v28 = vld [vmem:[#allocation3 + $0x13a] ss:$2 sm:$0xff] }
 0x437   : > { %v2444_v51 = vpop.trf.xlu1 }
 0x438   : > { %2493 = vst.msk [vmem:[#allocation3 + $0xa9] sm:$0xff] %vm2370_vm13, %v2444_v51  ;;  %2903 = vrot.lane.b32.xlu1 %v2880_v54, %s4764_s0  ;;  %2734 = vrot.lane.b32.xlu0 %v2711_v55, %s6761_s1  ;;  %v2476_v34 = vpop.trf.xlu0 }
 0x439   : > { %2509 = vst.msk [vmem:[#allocation3 + $0x169] sm:$0xff] %vm2370_vm13, %v2476_v34 }
 0x43b   : > { %v2445_v39 = vpop.trf.xlu1  ;;  %v2519_v11 = vld [vmem:[#allocation3 + $0x90] ss:$2 sm:$0xff]  ;;  %v2543_v23 = vld [vmem:[#allocation3 + $0x91] ss:$2 sm:$0xff] }
 0x43c   : > { %2494 = vst.msk [vmem:[#allocation3 + $0xb1] sm:$0xff] %vm2370_vm13, %v2445_v39  ;;  %2960 = vrot.lane.b32.xlu1 %v2937_v41, %s6762_s2  ;;  %2791 = vrot.lane.b32.xlu0 %v2768_v47, %s6759_s30  ;;  %v2477_v53 = vpop.trf.xlu0  ;;  %v2527_v17 = vld [vmem:[#allocation3 + $0x150] ss:$2 sm:$0xff]  ;;  %2531 = vst.msk [vmem:[#allocation7 + $0x18] sm:$0xff] %vm2370_vm13, %v2519_v11  ;;  %v2882_v30 = vld [vmem:[#allocation3 + $0x91] ss:$2 sm:$0xff] }
 0x43d   : > { %2510 = vst.msk [vmem:[#allocation3 + $0x171] sm:$0xff] %vm2370_vm13, %v2477_v53  ;;  %v2825_v8 = vld [vmem:[#allocation3 + $0x90] ss:$2 sm:$0xff]  ;;  %2535 = vst.msk [vmem:[#allocation7 + $0x38] sm:$0xff] %vm2370_vm13, %v2527_v17  ;;  %v2551_v37 = vld [vmem:[#allocation3 + $0x151] ss:$2 sm:$0xff] }
 0x43e   : > { %v2600_v52 = vld [vmem:[#allocation3 + $0x92] ss:$2 sm:$0xff]  ;;  %v2890_v50 = vld [vmem:[#allocation3 + $0x151] ss:$2 sm:$0xff] }
 0x43f   : > { %v2446_v5 = vpop.trf.xlu1  ;;  %v2939_v36 = vld [vmem:[#allocation3 + $0x92] ss:$2 sm:$0xff] }
 0x440   : > { %2495 = vst.msk [vmem:[#allocation3 + $0xc1] sm:$0xff] %vm2370_vm13, %v2446_v5  ;;  %2848 = vrot.lane.b32.xlu0 %v2825_v8, %s6760_s22  ;;  %2566 = vrot.lane.b32.xlu1 %v2543_v23, %s6753_s23  ;;  %v2478_v29 = vpop.trf.xlu0  ;;  %v2833_v56 = vld [vmem:[#allocation3 + $0x150] ss:$2 sm:$0xff]  ;;  %v3435_v8 = vld [vmem:[#allocation4 + $0x90] sm:$0xff] }
 0x441   : > { %2511 = vst.msk [vmem:[#allocation3 + $0x181] sm:$0xff] %vm2370_vm13, %v2478_v29  ;;  %v2608_v49 = vld [vmem:[#allocation3 + $0x152] ss:$2 sm:$0xff] }
 0x442   : > { %v2947_v62 = vld [vmem:[#allocation3 + $0x152] ss:$2 sm:$0xff] }
 0x443   : > { %v2447_v15 = vpop.trf.xlu1  ;;  %v2656_v43 = vld [vmem:[#allocation3 + $0xa8] ss:$2 sm:$0xff]  ;;  %v2713_v25 = vld [vmem:[#allocation3 + $0xa9] ss:$2 sm:$0xff] }
 0x444   : > { %2496 = vst.msk [vmem:[#allocation3 + $0xc9] sm:$0xff] %vm2370_vm13, %v2447_v15  ;;  %2905 = vrot.lane.b32.xlu0 %v2882_v30, %s4764_s0  ;;  %2623 = vrot.lane.b32.xlu1 %v2600_v52, %s6750_s15  ;;  %v2479_v33 = vpop.trf.xlu0  ;;  %v2770_v42 = vld [vmem:[#allocation3 + $0xaa] ss:$2 sm:$0xff]  ;;  %v2721_v27 = vld [vmem:[#allocation3 + $0x169] ss:$2 sm:$0xff]  ;;  %v3483_v15 = vld [vmem:[#allocation4 + $0x91] sm:$0xff] }
 0x445   : > { %2512 = vst.msk [vmem:[#allocation3 + $0x189] sm:$0xff] %vm2370_vm13, %v2479_v33  ;;  %v2664_v59 = vld [vmem:[#allocation3 + $0x168] ss:$2 sm:$0xff] }
 0x446   : > { %v2778_v7 = vld [vmem:[#allocation3 + $0x16a] ss:$2 sm:$0xff] }
 0x448   : > { %2962 = vrot.lane.b32.xlu0 %v2939_v36, %s6762_s2  ;;  %2679 = vrot.lane.b32.xlu1 %v2656_v43, %s6749_s20 }
 0x44b   : > { %v2545_v40 = vld [vmem:[#allocation3 + $0xc1] ss:$2 sm:$0xff]  ;;  %v2602_v31 = vld [vmem:[#allocation3 + $0xc2] ss:$2 sm:$0xff] }
 0x44c   : > { %2736 = vrot.lane.b32.xlu1 %v2713_v25, %s6761_s1  ;;  %2568 = vrot.lane.b32.xlu0 %v2545_v40, %s6753_s23  ;;  %v2521_v9 = vld [vmem:[#allocation3 + $0xc0] ss:$2 sm:$0xff]  ;;  %v2884_v13 = vld [vmem:[#allocation3 + $0xc1] ss:$2 sm:$0xff] }
 0x44d   : > { %2532 = vst.msk [vmem:[#allocation7 + $0x20] sm:$0xff] %vm2370_vm13, %v2521_v9  ;;  %v2827_v10 = vld [vmem:[#allocation3 + $0xc0] ss:$2 sm:$0xff]  ;;  %v2892_v41 = vld [vmem:[#allocation3 + $0x181] ss:$2 sm:$0xff] }
 0x44e   : > { %v2941_v1 = vld [vmem:[#allocation3 + $0xc2] ss:$2 sm:$0xff] }
 0x44f   : > { %v2835_v55 = vld [vmem:[#allocation3 + $0x180] ss:$2 sm:$0xff] }
 0x450   : > { %2793 = vrot.lane.b32.xlu1 %v2770_v42, %s6759_s30  ;;  %2625 = vrot.lane.b32.xlu0 %v2602_v31, %s6750_s15  ;;  %v2949_v11 = vld [vmem:[#allocation3 + $0x182] ss:$2 sm:$0xff] }
 0x454   : > { %2850 = vrot.lane.b32.xlu1 %v2827_v10, %s6760_s22  ;;  %2681 = vrot.lane.b32.xlu0 %v2658_v32, %s6749_s20 }
 0x458   : > { %2907 = vrot.lane.b32.xlu1 %v2884_v13, %s4764_s0  ;;  %2738 = vrot.lane.b32.xlu0 %v2715_v44, %s6761_s1 }
 0x45c   : > { %2964 = vrot.lane.b32.xlu1 %v2941_v1, %s6762_s2  ;;  %2795 = vrot.lane.b32.xlu0 %v2772_v21, %s6759_s30 }
 0x45f   : > { %v2561_v48 = vpop.permute.xlu0 %2560 }
 0x460   : > { %2570 = vrot.lane.b32.xlu1 %v2547_v26, %s6753_s23  ;;  %2852 = vrot.lane.b32.xlu0 %v2829_v38, %s6760_s22  ;;  %2585 = vst.msk [vmem:[#allocation7] sm:$0xff] %vm2584_vm1, %v2561_v48 }
 0x464   : > { %2627 = vrot.lane.b32.xlu1 %v2604_v45, %s6750_s15  ;;  %2909 = vrot.lane.b32.xlu0 %v2886_v46, %s4764_s0 }
 0x468   : > { %2683 = vrot.lane.b32.xlu1 %v2660_v57, %s6749_s20  ;;  %2966 = vrot.lane.b32.xlu0 %v2943_v61, %s6762_s2 }
 0x46c   : > { %2740 = vrot.lane.b32.xlu1 %v2717_v60, %s6761_s1  ;;  %2572 = vrot.lane.b32.xlu0 %v2549_v14, %s6753_s23 }
 0x470   : > { %2797 = vrot.lane.b32.xlu1 %v2774_v63, %s6759_s30  ;;  %2629 = vrot.lane.b32.xlu0 %v2606_v16, %s6750_s15 }
 0x474   : > { %2854 = vrot.lane.b32.xlu1 %v2831_v22, %s6760_s22  ;;  %2685 = vrot.lane.b32.xlu0 %v2662_v20, %s6749_s20 }
 0x478   : > { %2911 = vrot.lane.b32.xlu1 %v2888_v3, %s4764_s0  ;;  %2742 = vrot.lane.b32.xlu0 %v2719_v18, %s6761_s1 }
 0x47c   : > { %2968 = vrot.lane.b32.xlu1 %v2945_v24, %s6762_s2  ;;  %2799 = vrot.lane.b32.xlu0 %v2776_v28, %s6759_s30 }
 0x480   : > { %2574 = vrot.lane.b32.xlu1 %v2551_v37, %s6753_s23  ;;  %2856 = vrot.lane.b32.xlu0 %v2833_v56, %s6760_s22 }
 0x484   : > { %2631 = vrot.lane.b32.xlu1 %v2608_v49, %s6750_s15  ;;  %2913 = vrot.lane.b32.xlu0 %v2890_v50, %s4764_s0 }
 0x486   : > { %v2674_v58 = vpop.permute.xlu0 %2673 }
 0x488   : > { %2687 = vrot.lane.b32.xlu1 %v2664_v59, %s6749_s20  ;;  %2970 = vrot.lane.b32.xlu0 %v2947_v62, %s6762_s2 }
 0x48a   : > { %v2731_v19 = vpop.permute.xlu0 %2730 }
 0x48c   : > { %2744 = vrot.lane.b32.xlu1 %v2721_v27, %s6761_s1  ;;  %3003 = vperm.xlu0 %4683, %v3000_v2  }
 0x48e   : > { %v2788_v6 = vpop.permute.xlu0 %2787  ;;  %v2563_v4 = vpop.permute.xlu1 %2562 }
 0x48f   : > { %2586 = vst.msk [vmem:[#allocation7 + $0x8] sm:$0xff] %vm2584_vm1, %v2563_v4 }
 0x490   : > { %2801 = vrot.lane.b32.xlu1 %v2778_v7, %s6759_s30 }
 0x492   : > { %v2845_v51 = vpop.permute.xlu0 %2844  ;;  %v2618_v54 = vpop.permute.xlu1 %2617 }
 0x493   : > { %2642 = vst.msk [vmem:[#allocation7] sm:$0xff] %vm2641_vm2, %v2618_v54 }
 0x494   : > { %2698 = vst.msk [vmem:[#allocation7] sm:$0xff] %vm2697_vm14, %v2674_v58  ;;  %2858 = vrot.lane.b32.xlu1 %v2835_v55, %s6760_s22 }
 0x495   : > { %2755 = vst.msk [vmem:[#allocation7] sm:$0xff] %vm2754_vm15, %v2731_v19 }
 0x496   : > { %v2902_v34 = vpop.permute.xlu0 %2901  ;;  %2812 = vst.msk [vmem:[#allocation7] sm:$0xff] %vm2811_vm11, %v2788_v6  ;;  %v2620_v39 = vpop.permute.xlu1 %2619 }
 0x497   : > { %2869 = vst.msk [vmem:[#allocation7] sm:$0xff] %vm2868_vm10, %v2845_v51 }
 0x498   : > { %2643 = vst.msk [vmem:[#allocation7 + $0x8] sm:$0xff] %vm2641_vm2, %v2620_v39  ;;  %2915 = vrot.lane.b32.xlu1 %v2892_v41, %s4764_s0 }
 0x499   : > { %2926 = vst.msk [vmem:[#allocation7] sm:$0xff] %vm2925_vm9, %v2902_v34 }
 0x49a   : > { %v2959_v47 = vpop.permute.xlu0 %2958  ;;  %v2676_v53 = vpop.permute.xlu1 %2675 }
 0x49b   : > { %2983 = vst.msk [vmem:[#allocation7] sm:$0xff] %vm2982_vm8, %v2959_v47 }
 0x49c   : > { %2699 = vst.msk [vmem:[#allocation7 + $0x8] sm:$0xff] %vm2697_vm14, %v2676_v53  ;;  %2972 = vrot.lane.b32.xlu1 %v2949_v11, %s6762_s2 }
 0x49e   : > { %v2565_v17 = vpop.permute.xlu0 %2564  ;;  %v2733_v5 = vpop.permute.xlu1 %2732 }
 0x49f   : > { %2587 = vst.msk [vmem:[#allocation7 + $0x10] sm:$0xff] %vm2584_vm1, %v2565_v17 }
 0x4a0   : > { %2756 = vst.msk [vmem:[#allocation7 + $0x8] sm:$0xff] %vm2754_vm15, %v2733_v5  ;;  %3458 = vrot.lane.b32.xlu1 %v3435_v8, %s6760_s22 }
 0x4a2   : > { %v2622_v23 = vpop.permute.xlu0 %2621  ;;  %v2790_v29 = vpop.permute.xlu1 %2789  ;;  %v2992_v32 = vld [vmem:[#allocation7] sm:$0xff] }
 0x4a3   : > { %2644 = vst.msk [vmem:[#allocation7 + $0x10] sm:$0xff] %vm2641_vm2, %v2622_v23 }
 0x4a4   : > { %2813 = vst.msk [vmem:[#allocation7 + $0x8] sm:$0xff] %vm2811_vm11, %v2790_v29  ;;  %3506 = vrot.lane.b32.xlu1 %v3483_v15, %s4764_s0 }
 0x4a6   : > { %v2678_v30 = vpop.permute.xlu0 %2677  ;;  %v2847_v52 = vpop.permute.xlu1 %2846 }
 0x4a7   : > { %2700 = vst.msk [vmem:[#allocation7 + $0x10] sm:$0xff] %vm2697_vm14, %v2678_v30 }
 0x4a8   : > { %2870 = vst.msk [vmem:[#allocation7 + $0x8] sm:$0xff] %vm2868_vm10, %v2847_v52  ;;  %v2991_v52 = vld [vmem:[%s6700_s3] sm:$0xff] }
 0x4aa   : > { %v2735_v33 = vpop.permute.xlu0 %2734  ;;  %v2904_v36 = vpop.permute.xlu1 %2903 }
 0x4ab   : > { %2757 = vst.msk [vmem:[#allocation7 + $0x10] sm:$0xff] %vm2754_vm15, %v2735_v33 }
 0x4ac   : > { %2927 = vst.msk [vmem:[#allocation7 + $0x8] sm:$0xff] %vm2925_vm9, %v2904_v36 }
 0x4ae   : > { %v2792_v43 = vpop.permute.xlu0 %2791  ;;  %v2961_v25 = vpop.permute.xlu1 %2960 }
 0x4af   : > { %2814 = vst.msk [vmem:[#allocation7 + $0x10] sm:$0xff] %vm2811_vm11, %v2792_v43 }
 0x4b0   : > { %2984 = vst.msk [vmem:[#allocation7 + $0x8] sm:$0xff] %vm2982_vm8, %v2961_v25 }
 0x4b2   : > { %v2849_v40 = vpop.permute.xlu0 %2848  ;;  %v2567_v31 = vpop.permute.xlu1 %2566 }
 0x4b3   : > { %2871 = vst.msk [vmem:[#allocation7 + $0x10] sm:$0xff] %vm2868_vm10, %v2849_v40 }
 0x4b4   : > { %2588 = vst.msk [vmem:[#allocation7 + $0x18] sm:$0xff] %vm2584_vm1, %v2567_v31  ;;  %v3187_v31 = vld [vmem:[#allocation4 + $0x1] sm:$0xff] }
 0x4b5   : > { %3203 = vrot.lane.b32.xlu0 %v3187_v31, %s6753_s23 }
 0x4b6   : > { %v2906_v9 = vpop.permute.xlu0 %2905  ;;  %v2624_v42 = vpop.permute.xlu1 %2623 }
 0x4b7   : > { %v2993_v10 = vld [vmem:[#allocation7 + $0x8] sm:$0xff]  ;;  %2928 = vst.msk [vmem:[#allocation7 + $0x10] sm:$0xff] %vm2925_vm9, %v2906_v9 }
 0x4b8   : > { %2645 = vst.msk [vmem:[#allocation7 + $0x18] sm:$0xff] %vm2641_vm2, %v2624_v42  ;;  %v4584_v44 = vpack.c.bf16 %v2993_v10, %v2992_v32  ;;  %v3235_v9 = vld [vmem:[#allocation4 + $0x2] sm:$0xff] }
 0x4b9   : > { %3251 = vrot.lane.b32.xlu0 %v3235_v9, %s6750_s15  ;;  %v3171_v42 = vld [vmem:[#allocation4] sm:$0xff] }
 0x4ba   : > { %4586 = vmatpush3.bf16.xpose.msk.msra.mxu1 %vm6283_vm5, %v4584_v44  ;;  %v2963_v1 = vpop.permute.xlu0 %2962  ;;  %v2680_v21 = vpop.permute.xlu1 %2679  ;;  %3179 = vst.msk [vmem:[#allocation7] sm:$0xff] %vm2370_vm13, %v3171_v42  ;;  %v3581_v42 = vld [vmem:[%s6703_s6] sm:$0xf] }
 0x4bb   : > { %4587 = vmatprep.subr.bf16.mxu1 %v4766_v35  ;;  %2985 = vst.msk [vmem:[#allocation7 + $0x10] sm:$0xff] %vm2982_vm8, %v2963_v1 }
 0x4bc   : > { %2701 = vst.msk [vmem:[#allocation7 + $0x18] sm:$0xff] %vm2697_vm14, %v2680_v21 }
 0x4be   : > { %v2569_v26 = vpop.permute.xlu0 %2568  ;;  %v2737_v38 = vpop.permute.xlu1 %2736 }
 0x4bf   : > { %2589 = vst.msk [vmem:[#allocation7 + $0x20] sm:$0xff] %vm2584_vm1, %v2569_v26 }
 0x4c0   : > { %2758 = vst.msk [vmem:[#allocation7 + $0x18] sm:$0xff] %vm2754_vm15, %v2737_v38 }
 0x4c2   : > { %v2626_v48 = vpop.permute.xlu0 %2625  ;;  %v2794_v45 = vpop.permute.xlu1 %2793  ;;  %v2994_v18 = vld [vmem:[#allocation7 + $0x10] sm:$0xff] }
 0x4c3   : > { %2646 = vst.msk [vmem:[#allocation7 + $0x20] sm:$0xff] %vm2641_vm2, %v2626_v48 }
 0x4c4   : > { %2815 = vst.msk [vmem:[#allocation7 + $0x18] sm:$0xff] %vm2811_vm11, %v2794_v45 }
 0x4c6   : > { %v2682_v46 = vpop.permute.xlu0 %2681  ;;  %v2851_v57 = vpop.permute.xlu1 %2850 }
 0x4c7   : > { %2702 = vst.msk [vmem:[#allocation7 + $0x20] sm:$0xff] %vm2697_vm14, %v2682_v46 }
 0x4c8   : > { %2872 = vst.msk [vmem:[#allocation7 + $0x18] sm:$0xff] %vm2868_vm10, %v2851_v57 }
 0x4ca   : > { %v2739_v61 = vpop.permute.xlu0 %2738  ;;  %v2908_v14 = vpop.permute.xlu1 %2907 }
 0x4cb   : > { %2759 = vst.msk [vmem:[#allocation7 + $0x20] sm:$0xff] %vm2754_vm15, %v2739_v61 }
 0x4cc   : > { %2929 = vst.msk [vmem:[#allocation7 + $0x18] sm:$0xff] %vm2925_vm9, %v2908_v14 }
 0x4ce   : > { %v2796_v60 = vpop.permute.xlu0 %2795  ;;  %v2965_v63 = vpop.permute.xlu1 %2964 }
 0x4cf   : > { %2816 = vst.msk [vmem:[#allocation7 + $0x20] sm:$0xff] %vm2811_vm11, %v2796_v60 }
 0x4d0   : > { %2986 = vst.msk [vmem:[#allocation7 + $0x18] sm:$0xff] %vm2982_vm8, %v2965_v63 }
 0x4d2   : > { %v2853_v16 = vpop.permute.xlu0 %2852  ;;  %v2571_v20 = vpop.permute.xlu1 %2570 }
 0x4d3   : > { %2873 = vst.msk [vmem:[#allocation7 + $0x20] sm:$0xff] %vm2868_vm10, %v2853_v16 }
 0x4d4   : > { %2590 = vst.msk [vmem:[#allocation7 + $0x28] sm:$0xff] %vm2584_vm1, %v2571_v20 }
 0x4d6   : > { %v2910_v22 = vpop.permute.xlu0 %2909  ;;  %v2628_v3 = vpop.permute.xlu1 %2627 }
 0x4d7   : > { %v2995_v24 = vld [vmem:[#allocation7 + $0x18] sm:$0xff]  ;;  %2930 = vst.msk [vmem:[#allocation7 + $0x20] sm:$0xff] %vm2925_vm9, %v2910_v22 }
 0x4d8   : > { %2647 = vst.msk [vmem:[#allocation7 + $0x28] sm:$0xff] %vm2641_vm2, %v2628_v3  ;;  %v4588_v28 = vpack.c.bf16 %v2995_v24, %v2994_v18 }
 0x4da   : > { %4590 = vmatpush3.bf16.xpose.msk.msra.mxu1 %vm6283_vm5, %v4588_v28  ;;  %v2967_v37 = vpop.permute.xlu0 %2966  ;;  %v2684_v56 = vpop.permute.xlu1 %2683 }
 0x4db   : > { %4591 = vmatprep.subr.bf16.mxu1 %v4766_v35  ;;  %2987 = vst.msk [vmem:[#allocation7 + $0x20] sm:$0xff] %vm2982_vm8, %v2967_v37 }
 0x4dc   : > { %2703 = vst.msk [vmem:[#allocation7 + $0x28] sm:$0xff] %vm2697_vm14, %v2684_v56 }
 0x4de   : > { %v2573_v49 = vpop.permute.xlu0 %2572  ;;  %v2741_v50 = vpop.permute.xlu1 %2740 }
 0x4df   : > { %2591 = vst.msk [vmem:[#allocation7 + $0x30] sm:$0xff] %vm2584_vm1, %v2573_v49 }
 0x4e0   : > { %2760 = vst.msk [vmem:[#allocation7 + $0x28] sm:$0xff] %vm2754_vm15, %v2741_v50 }
 0x4e2   : > { %v2630_v58 = vpop.permute.xlu0 %2629  ;;  %v2798_v59 = vpop.permute.xlu1 %2797  ;;  %v2996_v34 = vld [vmem:[#allocation7 + $0x20] sm:$0xff] }
 0x4e3   : > { %2648 = vst.msk [vmem:[#allocation7 + $0x30] sm:$0xff] %vm2641_vm2, %v2630_v58 }
 0x4e4   : > { %2817 = vst.msk [vmem:[#allocation7 + $0x28] sm:$0xff] %vm2811_vm11, %v2798_v59 }
 0x4e6   : > { %v2686_v62 = vpop.permute.xlu0 %2685  ;;  %v2855_v2 = vpop.permute.xlu1 %2854 }
 0x4e7   : > { %2704 = vst.msk [vmem:[#allocation7 + $0x30] sm:$0xff] %vm2697_vm14, %v2686_v62 }
 0x4e8   : > { %2874 = vst.msk [vmem:[#allocation7 + $0x28] sm:$0xff] %vm2868_vm10, %v2855_v2 }
 0x4ea   : > { %v2743_v19 = vpop.permute.xlu0 %2742  ;;  %v2912_v27 = vpop.permute.xlu1 %2911 }
 0x4eb   : > { %2761 = vst.msk [vmem:[#allocation7 + $0x30] sm:$0xff] %vm2754_vm15, %v2743_v19 }
 0x4ec   : > { %2931 = vst.msk [vmem:[#allocation7 + $0x28] sm:$0xff] %vm2925_vm9, %v2912_v27 }
 0x4ee   : > { %v2800_v6 = vpop.permute.xlu0 %2799  ;;  %v2969_v4 = vpop.permute.xlu1 %2968 }
 0x4ef   : > { %2818 = vst.msk [vmem:[#allocation7 + $0x30] sm:$0xff] %vm2811_vm11, %v2800_v6 }
 0x4f0   : > { %2988 = vst.msk [vmem:[#allocation7 + $0x28] sm:$0xff] %vm2982_vm8, %v2969_v4 }
 0x4f2   : > { %v2857_v7 = vpop.permute.xlu0 %2856  ;;  %v2575_v51 = vpop.permute.xlu1 %2574 }
 0x4f3   : > { %2875 = vst.msk [vmem:[#allocation7 + $0x30] sm:$0xff] %vm2868_vm10, %v2857_v7 }
 0x4f4   : > { %2592 = vst.msk [vmem:[#allocation7 + $0x38] sm:$0xff] %vm2584_vm1, %v2575_v51  ;;  %v3531_v51 = vld [vmem:[#allocation4 + $0x92] sm:$0xff] }
 0x4f6   : > { %v2914_v54 = vpop.permute.xlu0 %2913  ;;  %v2632_v55 = vpop.permute.xlu1 %2631 }
 0x4f7   : > { %v2997_v39 = vld [vmem:[#allocation7 + $0x28] sm:$0xff]  ;;  %2932 = vst.msk [vmem:[#allocation7 + $0x30] sm:$0xff] %vm2925_vm9, %v2914_v54 }
 0x4f8   : > { %2649 = vst.msk [vmem:[#allocation7 + $0x38] sm:$0xff] %vm2641_vm2, %v2632_v55  ;;  %v4592_v41 = vpack.c.bf16 %v2997_v39, %v2996_v34 }
 0x4fa   : > { %4594 = vmatpush3.bf16.xpose.msk.msra.mxu1 %vm6283_vm5, %v4592_v41  ;;  %v2971_v47 = vpop.permute.xlu0 %2970  ;;  %v2688_v53 = vpop.permute.xlu1 %2687 }
 0x4fb   : > { %4595 = vmatprep.subr.bf16.mxu1 %v4766_v35  ;;  %2989 = vst.msk [vmem:[#allocation7 + $0x30] sm:$0xff] %vm2982_vm8, %v2971_v47 }
 0x4fc   : > { %2705 = vst.msk [vmem:[#allocation7 + $0x38] sm:$0xff] %vm2697_vm14, %v2688_v53 }
 0x4fe   : > { %v2745_v11 = vpop.permute.xlu1 %2744 }
 0x4ff   : > { %2762 = vst.msk [vmem:[#allocation7 + $0x38] sm:$0xff] %vm2754_vm15, %v2745_v11 }
 0x502   : > { %v2802_v17 = vpop.permute.xlu1 %2801  ;;  %v2998_v29 = vld [vmem:[#allocation7 + $0x30] sm:$0xff] }
 0x503   : > { %2819 = vst.msk [vmem:[#allocation7 + $0x38] sm:$0xff] %vm2811_vm11, %v2802_v17 }
 0x506   : > { %v2859_v5 = vpop.permute.xlu1 %2858 }
 0x507   : > { %2876 = vst.msk [vmem:[#allocation7 + $0x38] sm:$0xff] %vm2868_vm10, %v2859_v5 }
 0x50a   : > { %v2916_v8 = vpop.permute.xlu1 %2915 }
 0x50b   : > { %2933 = vst.msk [vmem:[#allocation7 + $0x38] sm:$0xff] %vm2925_vm9, %v2916_v8  ;;  %v3004_v33 = vpop.permute.xlu0 %3003 }
 0x50e   : > { %v2973_v23 = vpop.permute.xlu1 %2972 }
 0x50f   : > { %2990 = vst.msk [vmem:[#allocation7 + $0x38] sm:$0xff] %vm2982_vm8, %v2973_v23 }
 0x512   : > { %v6350_v10 = vpop.permute.xlu1 %3458 }
 0x516   : > { %v2999_v15 = vld [vmem:[#allocation7 + $0x38] sm:$0xff]  ;;  %v6353_v1 = vpop.permute.xlu1 %3506 }
 0x517   : > { %v4596_v30 = vpack.c.bf16 %v2999_v15, %v2998_v29 }
 0x519   : > { %4598 = vmatpush3.bf16.xpose.msk.msra.mxu1 %vm6283_vm5, %v4596_v30 }
 0x51a   : > { %4599 = vmatprep.subr.bf16.mxu1 %v4766_v35 }
 0x520   : > { %4489 = vmatmul.mubr.msk.f32.vlgmr.msra.gmra.mrb[0].mxu1 %vm3006_vm6, %v2991_v52 }
 0x521   : > { %4507 = vmatprep.mubr.msk.f32.mxu1 %vm4767_vm7, %v4752_v0 }
 0x527   : > { %v3204_v32 = vpop.permute.xlu0 %3203 }
 0x528   : > { %3227 = vst.msk [vmem:[#allocation7] sm:$0xff] %vm2584_vm1, %v3204_v32 }
 0x52b   : > { %v3252_v44 = vpop.permute.xlu0 %3251 }
 0x52c   : > { %3275 = vst.msk [vmem:[#allocation7] sm:$0xff] %vm2641_vm2, %v3252_v44 }
 0x5f3   : > { %v3100_v36 = vpop.f32.mrb[0].mxu1 }
 0x5f4   : > { %v3101_v43 = vadd.f32 %v3100_v36, %v3004_v33  ;;  %v4490_v25 = vpop.f32.mrb[1].mxu1 }
 0x5f6   : > { %v3104_v40 = vmax.f32 %v3101_v43, 0.0 }
 0x5f8   : > { %3130 = vxpose.xlu1.b32.start.end [1/1] (short) (narrow) %v3104_v40, 64 }
 0x678   : > { %v3146_v21 = vpop.trf.xlu1 }
 0x679   : > { %3163 = vst.msk [vmem:[#allocation4 + $0x11] sm:$0xff] %vm2370_vm13, %v3146_v21 }
 0x67c   : > { %v3147_v26 = vpop.trf.xlu1 }
 0x67d   : > { %3164 = vst.msk [vmem:[#allocation4 + $0x21] sm:$0xff] %vm2370_vm13, %v3147_v26 }
 0x680   : > { %v3148_v38 = vpop.trf.xlu1  ;;  %v3188_v48 = vld [vmem:[#allocation4 + $0x11] sm:$0xff] }
 0x681   : > { %v3283_v45 = vld [vmem:[#allocation4 + $0x10] sm:$0xff]  ;;  %3165 = vst.msk [vmem:[#allocation4 + $0x31] sm:$0xff] %vm2370_vm13, %v3148_v38  ;;  %3205 = vrot.lane.b32.xlu0 %v3188_v48, %s6753_s23 }
 0x682   : > { %3180 = vst.msk [vmem:[#allocation7 + $0x8] sm:$0xff] %vm2370_vm13, %v3283_v45  ;;  %v3236_v57 = vld [vmem:[#allocation4 + $0x12] sm:$0xff] }
 0x684   : > { %v3149_v46 = vpop.trf.xlu1  ;;  %v3428_v61 = vld [vmem:[#allocation4 + $0x20] sm:$0xff] }
 0x685   : > { %3166 = vst.msk [vmem:[#allocation4 + $0x41] sm:$0xff] %vm2370_vm13, %v3149_v46  ;;  %3253 = vrot.lane.b32.xlu0 %v3236_v57, %s6750_s15  ;;  %3444 = vrot.lane.b32.xlu1 %v3428_v61, %s6760_s22  ;;  %3181 = vst.msk [vmem:[#allocation7 + $0x10] sm:$0xff] %vm2370_vm13, %v3428_v61  ;;  %v3332_v56 = vld [vmem:[#allocation4 + $0x21] sm:$0xff] }
 0x686   : > { %v3380_v50 = vld [vmem:[#allocation4 + $0x22] sm:$0xff] }
 0x688   : > { %v3150_v14 = vpop.trf.xlu1  ;;  %v3429_v60 = vld [vmem:[#allocation4 + $0x30] sm:$0xff] }
 0x689   : > { %3167 = vst.msk [vmem:[#allocation4 + $0x51] sm:$0xff] %vm2370_vm13, %v3150_v14  ;;  %3299 = vrot.lane.b32.xlu0 %v3283_v45, %s6749_s20  ;;  %3182 = vst.msk [vmem:[#allocation7 + $0x18] sm:$0xff] %vm2370_vm13, %v3429_v60  ;;  %v3477_v2 = vld [vmem:[#allocation4 + $0x31] sm:$0xff] }
 0x68a   : > { %v3525_v27 = vld [vmem:[#allocation4 + $0x32] sm:$0xff] }
 0x68c   : > { %v6367_v63 = vld [vmem:[#allocation4 + $0x42] sm:$0xff]  ;;  %v3151_v16 = vpop.trf.xlu1 }
 0x68d   : > { %v6369_v20 = vld [vmem:[#allocation4 + $0x40] sm:$0xff]  ;;  %3347 = vrot.lane.b32.xlu0 %v3188_v48, %s6761_s1  ;;  %3401 = vrot.lane.b32.xlu1 %v6367_v63, %s6759_s30  ;;  %3168 = vst.msk [vmem:[#allocation4 + $0x61] sm:$0xff] %vm2370_vm13, %v3151_v16 }
 0x68e   : > { %3183 = vst.msk [vmem:[#allocation7 + $0x20] sm:$0xff] %vm2370_vm13, %v6369_v20  ;;  %v3334_v54 = vld [vmem:[#allocation4 + $0x41] sm:$0xff] }
 0x690   : > { %v6377_v22 = vld [vmem:[#allocation4 + $0x50] sm:$0xff]  ;;  %v3152_v3 = vpop.trf.xlu1 }
 0x691   : > { %3395 = vrot.lane.b32.xlu0 %v3236_v57, %s6759_s30  ;;  %3450 = vrot.lane.b32.xlu1 %v6377_v22, %s6760_s22  ;;  %3169 = vst.msk [vmem:[#allocation4 + $0x71] sm:$0xff] %vm2370_vm13, %v3152_v3  ;;  %3184 = vst.msk [vmem:[#allocation7 + $0x28] sm:$0xff] %vm2370_vm13, %v6377_v22  ;;  %v3479_v18 = vld [vmem:[#allocation4 + $0x51] sm:$0xff] }
 0x692   : > { %v3527_v37 = vld [vmem:[#allocation4 + $0x52] sm:$0xff] }
 0x694   : > { %v6385_v24 = vld [vmem:[#allocation4 + $0x60] sm:$0xff]  ;;  %v3153_v28 = vpop.trf.xlu1 }
 0x695   : > { %3301 = vrot.lane.b32.xlu0 %v3428_v61, %s6749_s20  ;;  %3498 = vrot.lane.b32.xlu1 %v3479_v18, %s4764_s0  ;;  %3170 = vst.msk [vmem:[#allocation4 + $0x81] sm:$0xff] %vm2370_vm13, %v3153_v28  ;;  %3185 = vst.msk [vmem:[#allocation7 + $0x30] sm:$0xff] %vm2370_vm13, %v6385_v24  ;;  %v3336_v58 = vld [vmem:[#allocation4 + $0x61] sm:$0xff] }
 0x696   : > { %v3384_v59 = vld [vmem:[#allocation4 + $0x62] sm:$0xff] }
 0x698   : > { %v6392_v49 = vld [vmem:[#allocation4 + $0x70] sm:$0xff] }
 0x699   : > { %3349 = vrot.lane.b32.xlu0 %v3332_v56, %s6761_s1  ;;  %3546 = vrot.lane.b32.xlu1 %v3527_v37, %s6762_s2  ;;  %3186 = vst.msk [vmem:[#allocation7 + $0x38] sm:$0xff] %vm2370_vm13, %v6392_v49  ;;  %v6412_v62 = vld [vmem:[#allocation4 + $0x71] sm:$0xff] }
 0x69a   : > { %v6417_v19 = vld [vmem:[#allocation4 + $0x72] sm:$0xff] }
 0x69c   : > { %v3290_v6 = vld [vmem:[#allocation4 + $0x80] sm:$0xff] }
 0x69d   : > { %3397 = vrot.lane.b32.xlu0 %v3380_v50, %s6759_s30  ;;  %3213 = vrot.lane.b32.xlu1 %v3479_v18, %s6753_s23  ;;  %v6430_v4 = vld [vmem:[#allocation4 + $0x81] sm:$0xff] }
 0x69e   : > { %v6435_v7 = vld [vmem:[#allocation4 + $0x82] sm:$0xff] }
 0x6a1   : > { %3492 = vrot.lane.b32.xlu0 %v3332_v56, %s4764_s0  ;;  %3261 = vrot.lane.b32.xlu1 %v3527_v37, %s6750_s15 }
 0x6a5   : > { %3540 = vrot.lane.b32.xlu0 %v3380_v50, %s6762_s2  ;;  %3309 = vrot.lane.b32.xlu1 %v6385_v24, %s6749_s20 }
 0x6a9   : > { %3207 = vrot.lane.b32.xlu0 %v3332_v56, %s6753_s23  ;;  %3357 = vrot.lane.b32.xlu1 %v3336_v58, %s6761_s1 }
 0x6ad   : > { %3255 = vrot.lane.b32.xlu0 %v3380_v50, %s6750_s15  ;;  %3405 = vrot.lane.b32.xlu1 %v3384_v59, %s6759_s30 }
 0x6b1   : > { %3446 = vrot.lane.b32.xlu0 %v3429_v60, %s6760_s22  ;;  %3454 = vrot.lane.b32.xlu1 %v6392_v49, %s6760_s22 }
 0x6b5   : > { %3494 = vrot.lane.b32.xlu0 %v3477_v2, %s4764_s0  ;;  %3502 = vrot.lane.b32.xlu1 %v6412_v62, %s4764_s0 }
 0x6b9   : > { %3542 = vrot.lane.b32.xlu0 %v3525_v27, %s6762_s2  ;;  %3550 = vrot.lane.b32.xlu1 %v6417_v19, %s6762_s2 }
 0x6bd   : > { %3209 = vrot.lane.b32.xlu0 %v3477_v2, %s6753_s23  ;;  %3217 = vrot.lane.b32.xlu1 %v6412_v62, %s6753_s23 }
 0x6c1   : > { %3257 = vrot.lane.b32.xlu0 %v3525_v27, %s6750_s15  ;;  %3265 = vrot.lane.b32.xlu1 %v6417_v19, %s6750_s15 }
 0x6c5   : > { %3303 = vrot.lane.b32.xlu0 %v3429_v60, %s6749_s20  ;;  %3313 = vrot.lane.b32.xlu1 %v3290_v6, %s6749_s20 }
 0x6c9   : > { %3351 = vrot.lane.b32.xlu0 %v3477_v2, %s6761_s1  ;;  %3361 = vrot.lane.b32.xlu1 %v6430_v4, %s6761_s1 }
 0x6cd   : > { %3399 = vrot.lane.b32.xlu0 %v3525_v27, %s6759_s30  ;;  %3409 = vrot.lane.b32.xlu1 %v6435_v7, %s6759_s30 }
 0x6d1   : > { %3305 = vrot.lane.b32.xlu0 %v6369_v20, %s6749_s20  ;;  %3554 = vrot.lane.b32.xlu1 %v3531_v51, %s6762_s2 }
 0x6d5   : > { %3353 = vrot.lane.b32.xlu0 %v3334_v54, %s6761_s1 }
 0x6d9   : > { %3448 = vrot.lane.b32.xlu0 %v6369_v20, %s6760_s22 }
 0x6dd   : > { %3496 = vrot.lane.b32.xlu0 %v3334_v54, %s4764_s0 }
 0x6e1   : > { %3544 = vrot.lane.b32.xlu0 %v6367_v63, %s6762_s2 }
 0x6e5   : > { %3211 = vrot.lane.b32.xlu0 %v3334_v54, %s6753_s23 }
 0x6e9   : > { %3259 = vrot.lane.b32.xlu0 %v6367_v63, %s6750_s15 }
 0x6ed   : > { %3307 = vrot.lane.b32.xlu0 %v6377_v22, %s6749_s20 }
 0x6f1   : > { %3355 = vrot.lane.b32.xlu0 %v3479_v18, %s6761_s1 }
 0x6f3   : > { %v3206_v55 = vpop.permute.xlu0 %3205 }
 0x6f4   : > { %3228 = vst.msk [vmem:[#allocation7 + $0x8] sm:$0xff] %vm2584_vm1, %v3206_v55 }
 0x6f5   : > { %3403 = vrot.lane.b32.xlu0 %v3527_v37, %s6759_s30 }
 0x6f7   : > { %v3254_v34 = vpop.permute.xlu0 %3253  ;;  %v3445_v39 = vpop.permute.xlu1 %3444 }
 0x6f8   : > { %3276 = vst.msk [vmem:[#allocation7 + $0x8] sm:$0xff] %vm2641_vm2, %v3254_v34 }
 0x6f9   : > { %3452 = vrot.lane.b32.xlu0 %v6385_v24, %s6760_s22 }
 0x6fb   : > { %v3300_v41 = vpop.permute.xlu0 %3299 }
 0x6fc   : > { %3323 = vst.msk [vmem:[#allocation7] sm:$0xff] %vm2697_vm14, %v3300_v41 }
 0x6fd   : > { %3500 = vrot.lane.b32.xlu0 %v3336_v58, %s4764_s0 }
 0x6ff   : > { %v3348_v47 = vpop.permute.xlu0 %3347  ;;  %v6462_v53 = vpop.permute.xlu1 %3401 }
 0x700   : > { %3371 = vst.msk [vmem:[#allocation7] sm:$0xff] %vm2754_vm15, %v3348_v47 }
 0x701   : > { %3548 = vrot.lane.b32.xlu0 %v3384_v59, %s6762_s2 }
 0x703   : > { %v3396_v11 = vpop.permute.xlu0 %3395  ;;  %v6466_v17 = vpop.permute.xlu1 %3450 }
 0x704   : > { %3419 = vst.msk [vmem:[#allocation7] sm:$0xff] %vm2811_vm11, %v3396_v11 }
 0x705   : > { %3468 = vst.msk [vmem:[#allocation7] sm:$0xff] %vm2868_vm10, %v3445_v39  ;;  %3215 = vrot.lane.b32.xlu0 %v3336_v58, %s6753_s23 }
 0x707   : > { %v3302_v5 = vpop.permute.xlu0 %3301  ;;  %v6471_v8 = vpop.permute.xlu1 %3498 }
 0x708   : > { %3324 = vst.msk [vmem:[#allocation7 + $0x8] sm:$0xff] %vm2697_vm14, %v3302_v5 }
 0x709   : > { %3263 = vrot.lane.b32.xlu0 %v3384_v59, %s6750_s15 }
 0x70b   : > { %v3350_v23 = vpop.permute.xlu0 %3349  ;;  %v6475_v29 = vpop.permute.xlu1 %3546 }
 0x70c   : > { %3372 = vst.msk [vmem:[#allocation7 + $0x8] sm:$0xff] %vm2754_vm15, %v3350_v23 }
 0x70d   : > { %3311 = vrot.lane.b32.xlu0 %v6392_v49, %s6749_s20 }
 0x70f   : > { %v3398_v15 = vpop.permute.xlu0 %3397  ;;  %v3214_v30 = vpop.permute.xlu1 %3213 }
 0x710   : > { %3420 = vst.msk [vmem:[#allocation7 + $0x8] sm:$0xff] %vm2811_vm11, %v3398_v15 }
 0x711   : > { %3232 = vst.msk [vmem:[#allocation7 + $0x28] sm:$0xff] %vm2584_vm1, %v3214_v30  ;;  %3359 = vrot.lane.b32.xlu0 %v6412_v62, %s6761_s1  ;;  %v3572_v30 = vld [vmem:[%s6702_s5] sm:$0xf] }
 0x713   : > { %v3493_v52 = vpop.permute.xlu0 %3492  ;;  %v3262_v33 = vpop.permute.xlu1 %3261 }
 0x714   : > { %3516 = vst.msk [vmem:[#allocation7] sm:$0xff] %vm2925_vm9, %v3493_v52 }
 0x715   : > { %3280 = vst.msk [vmem:[#allocation7 + $0x28] sm:$0xff] %vm2641_vm2, %v3262_v33  ;;  %3407 = vrot.lane.b32.xlu0 %v6417_v19, %s6759_s30  ;;  %s431_s30 = sand.u32 1, %s4742_s26  }
 0x717   : > { %v3541_v36 = vpop.permute.xlu0 %3540  ;;  %v3310_v43 = vpop.permute.xlu1 %3309 }
 0x718   : > { %3564 = vst.msk [vmem:[#allocation7] sm:$0xff] %vm2982_vm8, %v3541_v36 }
 0x719   : > { %3328 = vst.msk [vmem:[#allocation7 + $0x28] sm:$0xff] %vm2697_vm14, %v3310_v43  ;;  %3456 = vrot.lane.b32.xlu0 %v3290_v6, %s6760_s22  ;;  %s4405_s22 = sshll.u32 %s4860_s29, 4  ;;  %s4768_s29 = smov [#allocation10]  }
 0x71b   : > { %v3208_v25 = vpop.permute.xlu0 %3207  ;;  %v3358_v40 = vpop.permute.xlu1 %3357 }
 0x71c   : > { %3229 = vst.msk [vmem:[#allocation7 + $0x10] sm:$0xff] %vm2584_vm1, %v3208_v25 }
 0x71d   : > { %3376 = vst.msk [vmem:[#allocation7 + $0x28] sm:$0xff] %vm2754_vm15, %v3358_v40  ;;  %3504 = vrot.lane.b32.xlu0 %v6430_v4, %s4764_s0 }
 0x71f   : > { %v3256_v31 = vpop.permute.xlu0 %3255  ;;  %v3406_v9 = vpop.permute.xlu1 %3405  ;;  %v3573_v14 = vld [vmem:[#allocation7] sm:$0xff] }
 0x720   : > { %3277 = vst.msk [vmem:[#allocation7 + $0x10] sm:$0xff] %vm2641_vm2, %v3256_v31 }
 0x721   : > { %3424 = vst.msk [vmem:[#allocation7 + $0x28] sm:$0xff] %vm2811_vm11, %v3406_v9  ;;  %3552 = vrot.lane.b32.xlu0 %v6435_v7, %s6762_s2  ;;  %v3769_v9 = vld [vmem:[#allocation5 + $0x1] ss:$2 sm:$0xf]  ;;  %s432_s2 = scalar_lea.vmem [#allocation10], %s431_s30 }
 0x722   : > { %s4219_s0 = sshll.u32 %s432_s2, 4  ;;  %s6657_s0 = int_to_ptr.vmem [resolvable:$true] %s4219_s0 }
 0x723   : > { %v3447_v32 = vpop.permute.xlu0 %3446  ;;  %v3455_v44 = vpop.permute.xlu1 %3454 }
 0x724   : > { %3469 = vst.msk [vmem:[#allocation7 + $0x8] sm:$0xff] %vm2868_vm10, %v3447_v32  ;;  %3473 = vst.msk [vmem:[#allocation7 + $0x28] sm:$0xff] %vm2868_vm10, %v3455_v44  ;;  %v3751_v44 = vld [vmem:[#allocation5] ss:$2 sm:$0xf] }
 0x725   : > { %3584 = vperm.xlu0 %4683, %v3581_v42  }
 0x727   : > { %v3495_v21 = vpop.permute.xlu0 %3494  ;;  %v3503_v26 = vpop.permute.xlu1 %3502 }
 0x728   : > { %3517 = vst.msk [vmem:[#allocation7 + $0x8] sm:$0xff] %vm2925_vm9, %v3495_v21  ;;  %3521 = vst.msk [vmem:[#allocation7 + $0x28] sm:$0xff] %vm2925_vm9, %v3503_v26  ;;  %v3791_v26 = vld [vmem:[#allocation5 + $0x2] ss:$2 sm:$0xf] }
 0x72b   : > { %v3543_v38 = vpop.permute.xlu0 %3542  ;;  %v3551_v48 = vpop.permute.xlu1 %3550 }
 0x72c   : > { %3565 = vst.msk [vmem:[#allocation7 + $0x8] sm:$0xff] %vm2982_vm8, %v3543_v38  ;;  %3569 = vst.msk [vmem:[#allocation7 + $0x28] sm:$0xff] %vm2982_vm8, %v3551_v48 }
 0x72f   : > { %v3210_v45 = vpop.permute.xlu0 %3209  ;;  %v3218_v46 = vpop.permute.xlu1 %3217 }
 0x730   : > { %3230 = vst.msk [vmem:[#allocation7 + $0x18] sm:$0xff] %vm2584_vm1, %v3210_v45  ;;  %3234 = vst.msk [vmem:[#allocation7 + $0x38] sm:$0xff] %vm2584_vm1, %v3218_v46 }
 0x733   : > { %v3258_v57 = vpop.permute.xlu0 %3257  ;;  %v3266_v61 = vpop.permute.xlu1 %3265  ;;  %v3574_v60 = vld [vmem:[#allocation7 + $0x8] sm:$0xff] }
 0x734   : > { %3278 = vst.msk [vmem:[#allocation7 + $0x18] sm:$0xff] %vm2641_vm2, %v3258_v57  ;;  %3282 = vst.msk [vmem:[#allocation7 + $0x38] sm:$0xff] %vm2641_vm2, %v3266_v61  ;;  %v4600_v63 = vpack.c.bf16 %v3574_v60, %v3573_v14  ;;  %v3578_v55 = vld [vmem:[#allocation7 + $0x28] sm:$0xff] }
 0x736   : > { %4602 = vmatpush3.bf16.xpose.msk.msra.mxu1 %vm6283_vm5, %v4600_v63 }
 0x737   : > { %v3304_v16 = vpop.permute.xlu0 %3303  ;;  %v3314_v20 = vpop.permute.xlu1 %3313  ;;  %4603 = vmatprep.subr.bf16.mxu1 %v4766_v35 }
 0x738   : > { %3325 = vst.msk [vmem:[#allocation7 + $0x10] sm:$0xff] %vm2697_vm14, %v3304_v16  ;;  %3330 = vst.msk [vmem:[#allocation7 + $0x38] sm:$0xff] %vm2697_vm14, %v3314_v20 }
 0x73b   : > { %v3352_v22 = vpop.permute.xlu0 %3351  ;;  %v3362_v3 = vpop.permute.xlu1 %3361 }
 0x73c   : > { %3373 = vst.msk [vmem:[#allocation7 + $0x10] sm:$0xff] %vm2754_vm15, %v3352_v22  ;;  %3378 = vst.msk [vmem:[#allocation7 + $0x38] sm:$0xff] %vm2754_vm15, %v3362_v3 }
 0x73f   : > { %v3400_v18 = vpop.permute.xlu0 %3399  ;;  %v3410_v24 = vpop.permute.xlu1 %3409 }
 0x740   : > { %3421 = vst.msk [vmem:[#allocation7 + $0x10] sm:$0xff] %vm2811_vm11, %v3400_v18  ;;  %3426 = vst.msk [vmem:[#allocation7 + $0x38] sm:$0xff] %vm2811_vm11, %v3410_v24 }
 0x741   : > { %3475 = vst.msk [vmem:[#allocation7 + $0x38] sm:$0xff] %vm2868_vm10, %v6350_v10 }
 0x742   : > { %3523 = vst.msk [vmem:[#allocation7 + $0x38] sm:$0xff] %vm2925_vm9, %v6353_v1 }
 0x743   : > { %v3306_v28 = vpop.permute.xlu0 %3305  ;;  %v3555_v37 = vpop.permute.xlu1 %3554 }
 0x744   : > { %3326 = vst.msk [vmem:[#allocation7 + $0x18] sm:$0xff] %vm2697_vm14, %v3306_v28 }
 0x745   : > { %3571 = vst.msk [vmem:[#allocation7 + $0x38] sm:$0xff] %vm2982_vm8, %v3555_v37 }
 0x747   : > { %v3354_v56 = vpop.permute.xlu0 %3353 }
 0x748   : > { %3374 = vst.msk [vmem:[#allocation7 + $0x18] sm:$0xff] %vm2754_vm15, %v3354_v56 }
 0x749   : > { %3422 = vst.msk [vmem:[#allocation7 + $0x18] sm:$0xff] %vm2811_vm11, %v6462_v53 }
 0x74a   : > { %3471 = vst.msk [vmem:[#allocation7 + $0x18] sm:$0xff] %vm2868_vm10, %v6466_v17 }
 0x74b   : > { %3519 = vst.msk [vmem:[#allocation7 + $0x18] sm:$0xff] %vm2925_vm9, %v6471_v8  ;;  %v3449_v10 = vpop.permute.xlu0 %3448 }
 0x74c   : > { %3567 = vst.msk [vmem:[#allocation7 + $0x18] sm:$0xff] %vm2982_vm8, %v6475_v29  ;;  %v3580_v23 = vld [vmem:[#allocation7 + $0x38] sm:$0xff] }
 0x74d   : > { %3470 = vst.msk [vmem:[#allocation7 + $0x10] sm:$0xff] %vm2868_vm10, %v3449_v10 }
 0x74f   : > { %v3497_v1 = vpop.permute.xlu0 %3496 }
 0x750   : > { %3518 = vst.msk [vmem:[#allocation7 + $0x10] sm:$0xff] %vm2925_vm9, %v3497_v1 }
 0x753   : > { %v3545_v49 = vpop.permute.xlu0 %3544  ;;  %v3576_v58 = vld [vmem:[#allocation7 + $0x18] sm:$0xff] }
 0x754   : > { %3566 = vst.msk [vmem:[#allocation7 + $0x10] sm:$0xff] %vm2982_vm8, %v3545_v49 }
 0x757   : > { %v3212_v50 = vpop.permute.xlu0 %3211 }
 0x758   : > { %3231 = vst.msk [vmem:[#allocation7 + $0x20] sm:$0xff] %vm2584_vm1, %v3212_v50 }
 0x75b   : > { %v3260_v59 = vpop.permute.xlu0 %3259  ;;  %v3575_v62 = vld [vmem:[#allocation7 + $0x10] sm:$0xff] }
 0x75c   : > { %3279 = vst.msk [vmem:[#allocation7 + $0x20] sm:$0xff] %vm2641_vm2, %v3260_v59  ;;  %v4604_v2 = vpack.c.bf16 %v3576_v58, %v3575_v62 }
 0x75e   : > { %4606 = vmatpush3.bf16.xpose.msk.msra.mxu1 %vm6283_vm5, %v4604_v2 }
 0x75f   : > { %v3308_v19 = vpop.permute.xlu0 %3307  ;;  %4607 = vmatprep.subr.bf16.mxu1 %v4766_v35 }
 0x760   : > { %3327 = vst.msk [vmem:[#allocation7 + $0x20] sm:$0xff] %vm2697_vm14, %v3308_v19 }
 0x763   : > { %v3356_v27 = vpop.permute.xlu0 %3355 }
 0x764   : > { %3375 = vst.msk [vmem:[#allocation7 + $0x20] sm:$0xff] %vm2754_vm15, %v3356_v27 }
 0x767   : > { %v3404_v6 = vpop.permute.xlu0 %3403 }
 0x768   : > { %3423 = vst.msk [vmem:[#allocation7 + $0x20] sm:$0xff] %vm2811_vm11, %v3404_v6 }
 0x76b   : > { %v3453_v4 = vpop.permute.xlu0 %3452 }
 0x76c   : > { %3472 = vst.msk [vmem:[#allocation7 + $0x20] sm:$0xff] %vm2868_vm10, %v3453_v4 }
 0x76f   : > { %v3501_v7 = vpop.permute.xlu0 %3500 }
 0x770   : > { %3520 = vst.msk [vmem:[#allocation7 + $0x20] sm:$0xff] %vm2925_vm9, %v3501_v7 }
 0x773   : > { %v3549_v51 = vpop.permute.xlu0 %3548 }
 0x774   : > { %3568 = vst.msk [vmem:[#allocation7 + $0x20] sm:$0xff] %vm2982_vm8, %v3549_v51 }
 0x777   : > { %v3216_v54 = vpop.permute.xlu0 %3215 }
 0x778   : > { %3233 = vst.msk [vmem:[#allocation7 + $0x30] sm:$0xff] %vm2584_vm1, %v3216_v54  ;;  %vm6774_vm1 = vcmask 261344  }
 0x77b   : > { %v3264_v34 = vpop.permute.xlu0 %3263  ;;  %v3577_v39 = vld [vmem:[#allocation7 + $0x20] sm:$0xff] }
 0x77c   : > { %3281 = vst.msk [vmem:[#allocation7 + $0x30] sm:$0xff] %vm2641_vm2, %v3264_v34  ;;  %v4608_v41 = vpack.c.bf16 %v3578_v55, %v3577_v39 }
 0x77e   : > { %4610 = vmatpush3.bf16.xpose.msk.msra.mxu1 %vm6283_vm5, %v4608_v41 }
 0x77f   : > { %v3312_v47 = vpop.permute.xlu0 %3311  ;;  %4611 = vmatprep.subr.bf16.mxu1 %v4766_v35 }
 0x780   : > { %3329 = vst.msk [vmem:[#allocation7 + $0x30] sm:$0xff] %vm2697_vm14, %v3312_v47  ;;  %vm6778_vm14 = vcmask 293888  }
 0x783   : > { %v3360_v53 = vpop.permute.xlu0 %3359 }
 0x784   : > { %3377 = vst.msk [vmem:[#allocation7 + $0x30] sm:$0xff] %vm2754_vm15, %v3360_v53  ;;  %vm4046_vm15 = vcmask 261120  }
 0x787   : > { %v3408_v11 = vpop.permute.xlu0 %3407 }
 0x788   : > { %3425 = vst.msk [vmem:[#allocation7 + $0x30] sm:$0xff] %vm2811_vm11, %v3408_v11 }
 0x78b   : > { %v3457_v17 = vpop.permute.xlu0 %3456 }
 0x78c   : > { %3474 = vst.msk [vmem:[#allocation7 + $0x30] sm:$0xff] %vm2868_vm10, %v3457_v17 }
 0x78f   : > { %v3505_v5 = vpop.permute.xlu0 %3504 }
 0x790   : > { %3522 = vst.msk [vmem:[#allocation7 + $0x30] sm:$0xff] %vm2925_vm9, %v3505_v5 }
 0x793   : > { %v3553_v8 = vpop.permute.xlu0 %3552 }
 0x794   : > { %3570 = vst.msk [vmem:[#allocation7 + $0x30] sm:$0xff] %vm2982_vm8, %v3553_v8  ;;  %vm6769_vm8 = vcmask 228544  }
 0x795   : > { %vm6773_vm13 = vmmov %vm6769_vm8 }
 0x79b   : > { %v3579_v29 = vld [vmem:[#allocation7 + $0x30] sm:$0xff] }
 0x79c   : > { %v4612_v15 = vpack.c.bf16 %v3580_v23, %v3579_v29 }
 0x79e   : > { %4614 = vmatpush3.bf16.xpose.msk.msra.mxu1 %vm6283_vm5, %v4612_v15  ;;  %vm6767_vm5 = vcmask 162944  }
 0x79f   : > { %4619 = vmatprep.subr.bf16.mxu1 %v4766_v35  ;;  %vm6771_vm10 = vmmov %vm6767_vm5 }
 0x7a4   : > { %v3585_v52 = vpop.permute.xlu0 %3584 }
 0x7a5   : > { %4508 = vmatmul.mubr.msk.f32.vlgmr.msra.gmra.mrb[2].mxu1 %vm3006_vm6, %v3572_v30  ;;  %vm6768_vm6 = vcmask 195744  }
 0x7a6   : > { %4525 = vmatprep.mubr.msk.f32.mxu1 %vm4767_vm7, %v4752_v0  ;;  %vm6772_vm11 = vmmov %vm6768_vm6 }
 0x878   : > { %v3680_v33 = vpop.f32.mrb[2].mxu1 }
 0x879   : > { %v3681_v36 = vadd.f32 %v3680_v33, %v3585_v52  ;;  %v4509_v43 = vpop.f32.mrb[3].mxu1 }
 0x87b   : > { %v3684_v25 = vmax.f32 %v3681_v36, 0.0 }
 0x87d   : > { %3710 = vxpose.xlu1.b32.start.end [1/1] (short) (narrow) %v3684_v25, 64 }
 0x8fd   : > { %v3726_v40 = vpop.trf.xlu1 }
 0x8fe   : > { %3743 = vst.msk [vmem:[#allocation5 + $0x11] sm:$0xff] %vm438_vm0, %v3726_v40 }
 0x901   : > { %v3727_v13 = vpop.trf.xlu1 }
 0x902   : > { %3744 = vst.msk [vmem:[#allocation5 + $0x21] sm:$0xff] %vm438_vm0, %v3727_v13  ;;  %v3946_v13 = vld [vmem:[%s6705_s8] sm:$0x3] }
 0x905   : > { %v3728_v31 = vpop.trf.xlu1  ;;  %v3812_v60 = vld [vmem:[#allocation5 + $0x10] ss:$2 sm:$0xf]  ;;  %v3834_v22 = vld [vmem:[#allocation5 + $0x11] ss:$2 sm:$0xf] }
 0x906   : > { %3745 = vst.msk [vmem:[#allocation5 + $0x31] sm:$0xff] %vm438_vm0, %v3728_v31  ;;  %v3856_v28 = vld [vmem:[#allocation5 + $0x12] ss:$2 sm:$0xf] }
 0x909   : > { %v3729_v42 = vpop.trf.xlu1  ;;  %v3771_v32 = vld [vmem:[#allocation5 + $0x21] ss:$2 sm:$0xf]  ;;  %v3793_v38 = vld [vmem:[#allocation5 + $0x22] ss:$2 sm:$0xf] }
 0x90a   : > { %3746 = vst.msk [vmem:[#allocation5 + $0x41] sm:$0xff] %vm438_vm0, %v3729_v42  ;;  %v3780_v21 = vcombine.low %v3769_v9, %v3771_v32  ;;  %v3753_v48 = vld [vmem:[#allocation5 + $0x20] ss:$2 sm:$0xf]  ;;  %v3802_v57 = vcombine.low %v3791_v26, %v3793_v38 }
 0x90b   : > { %v3762_v45 = vcombine.low %v3751_v44, %v3753_v48  ;;  %v3878_v50 = vld [vmem:[#allocation5 + $0x20] ss:$2 sm:$0xf]  ;;  %v3900_v8 = vld [vmem:[#allocation5 + $0x21] ss:$2 sm:$0xf] }
 0x90c   : > { %3782 = vrot.lane.b32.xlu0 %v3780_v21, %s6765_s27  ;;  %v3922_v15 = vld [vmem:[#allocation5 + $0x22] ss:$2 sm:$0xf] }
 0x90d   : > { %v3730_v46 = vpop.trf.xlu1  ;;  %3766 = vst.msk [vmem:[#allocation8] sm:$0xff] %vm438_vm0, %v3762_v45  ;;  %v3814_v61 = vld [vmem:[#allocation5 + $0x30] ss:$2 sm:$0xf] }
 0x90e   : > { %3747 = vst.msk [vmem:[#allocation5 + $0x51] sm:$0xff] %vm438_vm0, %v3730_v46  ;;  %v3823_v63 = vcombine.low %v3812_v60, %v3814_v61  ;;  %v3836_v16 = vld [vmem:[#allocation5 + $0x31] ss:$2 sm:$0xf] }
 0x90f   : > { %v3845_v3 = vcombine.low %v3834_v22, %v3836_v16  ;;  %v3858_v18 = vld [vmem:[#allocation5 + $0x32] ss:$2 sm:$0xf] }
 0x910   : > { %3804 = vrot.lane.b32.xlu0 %v3802_v57, %s6753_s23  ;;  %v3867_v56 = vcombine.low %v3856_v28, %v3858_v18  ;;  %v4041_v18 = vld [vmem:[%s6706_s9] sm:$0xff] }
 0x911   : > { %v3731_v14 = vpop.trf.xlu1  ;;  %v3755_v37 = vld [vmem:[#allocation5 + $0x40] ss:$2 sm:$0xf]  ;;  %v3773_v59 = vld [vmem:[#allocation5 + $0x41] ss:$2 sm:$0xf]  ;;  %v4620_v28 = vpack.c.bf16 %v4042_v12, %v4041_v18 }
 0x912   : > { %3748 = vst.msk [vmem:[#allocation5 + $0x61] sm:$0xff] %vm438_vm0, %v3731_v14  ;;  %v3880_v10 = vld [vmem:[#allocation5 + $0x40] ss:$2 sm:$0xf] }
 0x913   : > { %v3889_v58 = vcombine.low %v3878_v50, %v3880_v10  ;;  %v3795_v4 = vld [vmem:[#allocation5 + $0x42] ss:$2 sm:$0xf]  ;;  %v3902_v5 = vld [vmem:[#allocation5 + $0x41] ss:$2 sm:$0xf]  ;;  %4621 = vmatpush3.bf16.msra.mxu1 %v4620_v28 }
 0x914   : > { %3825 = vrot.lane.b32.xlu0 %v3823_v63, %s6756_s24  ;;  %v3911_v23 = vcombine.low %v3900_v8, %v3902_v5  ;;  %v3924_v29 = vld [vmem:[#allocation5 + $0x42] ss:$2 sm:$0xf]  ;;  %4622 = vmatprep.subr.bf16.mxu1 %v4766_v35 }
 0x915   : > { %v3732_v20 = vpop.trf.xlu1  ;;  %v3816_v54 = vld [vmem:[#allocation5 + $0x50] ss:$2 sm:$0xf]  ;;  %v3838_v39 = vld [vmem:[#allocation5 + $0x51] ss:$2 sm:$0xf]  ;;  %v3933_v30 = vcombine.low %v3922_v15, %v3924_v29 }
 0x916   : > { %3749 = vst.msk [vmem:[#allocation5 + $0x71] sm:$0xff] %vm438_vm0, %v3732_v20  ;;  %v3860_v53 = vld [vmem:[#allocation5 + $0x52] ss:$2 sm:$0xf] }
 0x918   : > { %3847 = vrot.lane.b32.xlu0 %v3845_v3, %s6750_s15  ;;  %v3943_v3 = vld [vmem:[%s6704_s7] sm:$0x3] }
 0x919   : > { %v3733_v24 = vpop.trf.xlu1  ;;  %v3757_v1 = vld [vmem:[#allocation5 + $0x60] ss:$2 sm:$0xf]  ;;  %v3775_v62 = vld [vmem:[#allocation5 + $0x61] ss:$2 sm:$0xf] }
 0x91a   : > { %3750 = vst.msk [vmem:[#allocation5 + $0x81] sm:$0xff] %vm438_vm0, %v3733_v24  ;;  %v3763_v49 = vcombine.low %v3755_v37, %v3757_v1  ;;  %v3882_v2 = vld [vmem:[#allocation5 + $0x60] ss:$2 sm:$0xf]  ;;  %v3781_v27 = vcombine.low %v3773_v59, %v3775_v62  ;;  %v4043_v24 = vld [vmem:[%s6706_s9 + $0x10] sm:$0xff]  ;;  %v4044_v37 = vld [vmem:[%s6706_s9 + $0x18] sm:$0xff] }
 0x91b   : > { %v3797_v7 = vld [vmem:[#allocation5 + $0x62] ss:$2 sm:$0xf]  ;;  %v3904_v52 = vld [vmem:[#allocation5 + $0x61] ss:$2 sm:$0xf] }
 0x91c   : > { %3869 = vrot.lane.b32.xlu0 %v3867_v56, %s6755_s16  ;;  %3767 = vst.msk [vmem:[#allocation8 + $0x8] sm:$0xff] %vm438_vm0, %v3763_v49  ;;  %v3803_v51 = vcombine.low %v3795_v4, %v3797_v7  ;;  %v3926_v43 = vld [vmem:[#allocation5 + $0x62] ss:$2 sm:$0xf]  ;;  %vm6766_vm0 = vcmask 130144   ;;  %v4623_v56 = vpack.c.bf16 %v4044_v37, %v4043_v24 }
 0x91d   : > { %v3818_v55 = vld [vmem:[#allocation5 + $0x70] ss:$2 sm:$0xf]  ;;  %v3840_v41 = vld [vmem:[#allocation5 + $0x71] ss:$2 sm:$0xf]  ;;  %vm6770_vm9 = vmmov %vm6766_vm0 }
 0x91e   : > { %v3824_v34 = vcombine.low %v3816_v54, %v3818_v55  ;;  %v3846_v47 = vcombine.low %v3838_v39, %v3840_v41  ;;  %v3862_v11 = vld [vmem:[#allocation5 + $0x72] ss:$2 sm:$0xf]  ;;  %4624 = vmatpush3.bf16.msra.mxu1 %v4623_v56  ;;  %v4122_v62 = vld [vmem:[%s6708_s11 + $0x8] sm:$0xff] }
 0x91f   : > { %v3868_v17 = vcombine.low %v3860_v53, %v3862_v11 }
 0x920   : > { %3891 = vrot.lane.b32.xlu0 %v3889_v58, %s6749_s20 }
 0x921   : > { %v3884_v19 = vld [vmem:[#allocation5 + $0x80] ss:$2 sm:$0xf]  ;;  %v3906_v33 = vld [vmem:[#allocation5 + $0x81] ss:$2 sm:$0xf] }
 0x922   : > { %v3890_v6 = vcombine.low %v3882_v2, %v3884_v19  ;;  %v3912_v36 = vcombine.low %v3904_v52, %v3906_v33  ;;  %v3928_v25 = vld [vmem:[#allocation5 + $0x82] ss:$2 sm:$0xf]  ;;  %v4045_v19 = vld [vmem:[%s6707_s10] sm:$0x1] }
 0x923   : > { %v3934_v40 = vcombine.low %v3926_v43, %v3928_v25 }
 0x924   : > { %3784 = vrot.lane.b32.xlu0 %v3781_v27, %s6765_s27  ;;  %3893 = vrot.lane.b32.xlu1 %v3890_v6, %s6749_s20  ;;  %s6655_s20 = scalar_lea.hbm %s6710_s13, %s4405_s22 }
 0x928   : > { %3806 = vrot.lane.b32.xlu0 %v3803_v51, %s6753_s23  ;;  %v4123_v51 = vld [vmem:[%s6709_s12] sm:$0x1]  ;;  %s4692_s23 = sshll.u32 %s4768_s29, 4  ;;  %s4693_s23 = int_to_ptr.vmem [resolvable:$false] %s4692_s23 }
 0x929   : > { %p4695_p0 = scmp.lt.s32.totalorder %s6657_s0, %s4693_s23 }
 0x92c   : > { %3827 = vrot.lane.b32.xlu0 %v3824_v34, %s6756_s24  ;;  %s4694_s24 = scalar_lea.vmem %s4693_s23, 32 }
 0x930   : > { %3849 = vrot.lane.b32.xlu0 %v3846_v47, %s6750_s15 }
 0x934   : > { %3871 = vrot.lane.b32.xlu0 %v3868_v17, %s6755_s16 }
 0x938   : > { %3913 = vrot.lane.b32.xlu0 %v3911_v23, %s6754_s21 }
 0x93c   : > { %3935 = vrot.lane.b32.xlu0 %v3933_v30, %s6761_s1 }
 0x940   : > { %3915 = vrot.lane.b32.xlu0 %v3912_v36, %s6754_s21  ;;  %s4688_s21 = scalar_lea.vmem %s6657_s0, 16 }
 0x941   : > { %p4689_p11 = scmp.ne.s32.totalorder %s6657_s0, %s4688_s21  ;;  %p4696_p1 = scmp.lt.s32.totalorder %s4694_s24, %s4688_s21 }
 0x943   : > { %p4690_p12 = pnand %p4689_p11, %p4877_p5  ;;  %p4697_p2 = por %p4696_p1, %p4695_p0 }
 0x944   : > { %3937 = vrot.lane.b32.xlu0 %v3934_v40, %s6761_s1  ;;  %s4207_s1 = scalar_lea.sflag [#allocation11], %s431_s30 }
 0x945   : > { %p4691_p13 = pneg %p4690_p12 }
 0x947   : > { %p4698_p3 = pnand %p4697_p2, %p4691_p13 }
 0x948   : > { %3949 = vperm.xlu0 %4683, %v3946_v13  }
 0x97e   : > { %v3783_v31 = vpop.permute.xlu0 %3782 }
 0x97f   : > { %3788 = vst.msk [vmem:[#allocation8] sm:$0xff] %vm773_vm3, %v3783_v31 }
 0x982   : > { %v3805_v9 = vpop.permute.xlu0 %3804 }
 0x983   : > { %3810 = vst.msk [vmem:[#allocation8] sm:$0xff] %vm966_vm4, %v3805_v9 }
 0x986   : > { %v3826_v42 = vpop.permute.xlu0 %3825 }
 0x987   : > { %3831 = vst.msk [vmem:[#allocation8] sm:$0xff] %vm6766_vm0, %v3826_v42  ;;  %vm4124_vm0 = vcmask 130048  }
 0x98a   : > { %v3848_v32 = vpop.permute.xlu0 %3847 }
 0x98b   : > { %3853 = vst.msk [vmem:[#allocation8] sm:$0xff] %vm6767_vm5, %v3848_v32  ;;  %vm4204_vm5 = vcmask 40960  }
 0x98e   : > { %v3870_v44 = vpop.permute.xlu0 %3869 }
 0x98f   : > { %3875 = vst.msk [vmem:[#allocation8] sm:$0xff] %vm6768_vm6, %v3870_v44 }
 0x992   : > { %v3892_v21 = vpop.permute.xlu0 %3891 }
 0x993   : > { %3897 = vst.msk [vmem:[#allocation8] sm:$0xff] %vm6769_vm8, %v3892_v21 }
 0x996   : > { %v3785_v26 = vpop.permute.xlu0 %3784  ;;  %v3894_v57 = vpop.permute.xlu1 %3893 }
 0x997   : > { %3789 = vst.msk [vmem:[#allocation8 + $0x8] sm:$0xff] %vm773_vm3, %v3785_v26  ;;  %vm6775_vm3 = vcmask 294144  }
 0x998   : > { %vm6777_vm2 = vmmov %vm6775_vm3 }
 0x99a   : > { %v3807_v38 = vpop.permute.xlu0 %3806 }
 0x99b   : > { %3811 = vst.msk [vmem:[#allocation8 + $0x8] sm:$0xff] %vm966_vm4, %v3807_v38  ;;  %vm6776_vm4 = vmmov %vm6774_vm1 }
 0x99e   : > { %v3828_v48 = vpop.permute.xlu0 %3827 }
 0x99f   : > { %3832 = vst.msk [vmem:[#allocation8 + $0x8] sm:$0xff] %vm6770_vm9, %v3828_v48 }
 0x9a2   : > { %v3850_v45 = vpop.permute.xlu0 %3849 }
 0x9a3   : > { %3854 = vst.msk [vmem:[#allocation8 + $0x8] sm:$0xff] %vm6771_vm10, %v3850_v45 }
 0x9a6   : > { %v3872_v46 = vpop.permute.xlu0 %3871 }
 0x9a7   : > { %3876 = vst.msk [vmem:[#allocation8 + $0x8] sm:$0xff] %vm6772_vm11, %v3872_v46 }
 0x9a8   : > { %3898 = vst.msk [vmem:[#allocation8 + $0x8] sm:$0xff] %vm6773_vm13, %v3894_v57 }
 0x9aa   : > { %v3914_v61 = vpop.permute.xlu0 %3913 }
 0x9ab   : > { %3919 = vst.msk [vmem:[#allocation8] sm:$0xff] %vm6774_vm1, %v3914_v61 }
 0x9ae   : > { %v3936_v14 = vpop.permute.xlu0 %3935 }
 0x9af   : > { %3941 = vst.msk [vmem:[#allocation8] sm:$0xff] %vm6775_vm3, %v3936_v14 }
 0x9b2   : > { %v3916_v60 = vpop.permute.xlu0 %3915 }
 0x9b3   : > { %3920 = vst.msk [vmem:[#allocation8 + $0x8] sm:$0xff] %vm6776_vm4, %v3916_v60 }
 0x9b6   : > { %v3938_v63 = vpop.permute.xlu0 %3937  ;;  %v3944_v16 = vld [vmem:[#allocation8] sm:$0xff] }
 0x9b7   : > { %3942 = vst.msk [vmem:[#allocation8 + $0x8] sm:$0xff] %vm6777_vm2, %v3938_v63 }
 0x9be   : > { %v3945_v20 = vld [vmem:[#allocation8 + $0x8] sm:$0xff] }
 0x9bf   : > { %v4616_v22 = vpack.c.bf16 %v3945_v20, %v3944_v16 }
 0x9c1   : > { %4618 = vmatpush3.bf16.xpose.msk.msra.mxu0 %vm5369_vm12, %v4616_v22  ;;  %vm4038_vm12 = vcmask 255105  }
 0x9c2   : > { %4625 = vmatprep.subr.bf16.mxu0 %v4766_v35  ;;  %v4121_v35 = vld [vmem:[%s6708_s11] sm:$0xff] }
 0x9c3   : > { %v4626_v2 = vpack.c.bf16 %v4122_v62, %v4121_v35 }
 0x9c8   : > { %4515 = vmatmul.mubr.msk.f32.vlgmr.msra.gmra.mrb[2].mxu0 %vm6778_vm14, %v3943_v3 }
 0x9c9   : > { %4532 = vmatprep.mubr.msk.f32.mxu0 %vm4767_vm7, %v4752_v0  ;;  %v3950_v0 = vpop.permute.xlu0 %3949  ;;  %vm4032_vm7 = vcmask 122880   ;;  %4627 = vmatpush3.bf16.msra.mxu0 %v4626_v2 }
 0xa9b   : > { %v4027_v10 = vpop.f32.mrb[2].mxu0 }
 0xa9c   : > { %v4028_v1 = vadd.f32 %v4027_v10, %v3950_v0  ;;  %v4516_v49 = vpop.f32.mrb[3].mxu0 }
 0xa9e   : > { %v4031_v50 = vmax.f32 %v4028_v1, 0.0 }
 0xaa0   : > { %4033 = vst.msk [vmem:[#allocation9] sm:$0x1] %vm4032_vm7, %v4031_v50  ;;  %4035 = vrot.lane.b32.xlu0 %v4031_v50, %s6750_s15 }
 0xb12   : > { %v4036_v58 = vpop.permute.xlu0 %4035 }
 0xb13   : > { %4039 = vst.msk [vmem:[#allocation9 - $0x1] sm:$0x2] %vm4038_vm12, %v4036_v58 }
 0xb1a   : > { %v4040_v59 = vld [vmem:[#allocation9] sm:$0x1] }
 0xb1b   : > { %4526 = vmatmul.mubr.msk.f32.vlgmr.msra.gmra.mrb[4].mxu1 %vm4046_vm15, %v4040_v59 }
 0xbee   : > { %v4116_v27 = vpop.f32.mrb[4].mxu1 }
 0xbef   : > { %v4117_v6 = vadd.f32 %v4116_v27, %v4045_v19  ;;  %v4527_v4 = vpop.f32.mrb[5].mxu1 }
 0xbf1   : > { %v4120_v7 = vmax.f32 %v4117_v6, 0.0 }
 0xbf3   : > { %4533 = vmatmul.mubr.msk.f32.vlgmr.msra.gmra.mrb[4].mxu0 %vm4124_vm0, %v4120_v7 }
 0xcc6   : > { %v4194_v54 = vpop.f32.mrb[4].mxu0 }
 0xcc7   : > { %v4195_v55 = vadd.f32 %v4194_v54, %v4123_v51  ;;  %v4534_v34 = vpop.f32.mrb[5].mxu0 }
 0xcc9   : > { %v4404_v39 = vmul.f32 -1.442695, %v4195_v55 }
 0xccb   : > { %4684 = vpow2.f32 %v4404_v39 }
 0xcd5   : > { %v4685_v41 = vpop.eup %4684 }
 0xcd6   : > { %v4201_v47 = vadd.f32 1.0, %v4685_v41 }
 0xcd8   : > { %4686 = vrcp.f32 %v4201_v47 }
 0xce2   : > { %v4687_v53 = vpop.eup %4686 }
 0xce3   : > { %4205 = vst.msk [vmem:[%s432_s2] sm:$0x1] %vm4204_vm5, %v4687_v53 }
 0xce4   : > { %4701 = shalt.err (!%p4698_p3)
}
 0xce5   : > { %s4702_s15 = scalar_lea.hbm %s6655_s20, 16  ;;  %s4706_s22 = scalar_lea.hbm %s6710_s13, 32 }
 0xce6   : > { %p4703_p4 = scmp.ne.s32.totalorder %s6655_s20, %s4702_s15  ;;  %p4707_p9 = scmp.lt.u32.totalorder %s6655_s20, %s6710_s13 }
 0xce7   : > { %p4708_p10 = scmp.lt.u32.totalorder %s4706_s22, %s4702_s15  ;;  %p4710_p12 = scmp.lt.u32.totalorder %s4702_s15, %s6655_s20 }
 0xce8   : > { %p4704_p7 = pnand %p4703_p4, %p4877_p5 }
 0xce9   : > { %p4709_p11 = por %p4708_p10, %p4707_p9 }
 0xcea   : > { %p4705_p8 = pneg %p4704_p7 }
 0xceb   : > { %p4711_p13 = por %p4710_p12, %p4709_p11 }
 0xced   : > { %p4712_p0 = pnand %p4711_p13, %p4705_p8 }
 0xcef   : > { %4715 = shalt.err (!%p4712_p0)
}
 0xcf0   : > { %4628 = dma.vmem_to_hbm [thread:$0]  (%p4877_p5), %s6657_s0, 16, %s6655_s20, %s4207_s1  }
 0xcf1 PF: > { %p4634_p1 = scmp.ge.s32.totalorder %s4750_s28, 2  ;;  %s4231_s16 = sand.u32 1, %s4738_s25  }
 0xcf2   : > { %s4232_s21 = scalar_lea.sflag [#allocation11], %s4231_s16 }
 0xcf3   : > { %p4631_p2 = pnand %p4634_p1, %p4881_p6 }
 0xcf5   : > { %4733 = dma.done.wait (!%p4631_p2), %s4232_s21, 16  }
 0xcf6   : > { %4735 = vsyncadd (!%p4631_p2), %s4232_s21, 4294967280  ;;  %s6779_s29 = sld [smem:[#allocation13_spill]]  ;;  %s6780_s27 = sld [smem:[#allocation14_spill]] }
 0xcf7   : > { %p23_p3 = scmp.ge.s32.totalorder %s4864_s14, 4   ;;  %s6781_s25 = smov %s4742_s26 }
 0xcf8   : > { %s6783_s28 = smov %s4864_s14 }
 0xcf9   :  { %25 = sbr.rel (!%p23_p3) target bundleno = 7 (0x7), region = 221 }
 0xcfc   : > { %s6782_s26 = smov %s6779_s29 }
 0xd00   :  { %4236 = vsyncpa [#allocation11], 1 }
 0xd01   :  { %4238 = vsyncpa [#allocation11 + $0x1], 1 }

</bundles_post_ra>
